<compile_context>
chip_gen: v5e
topology: v5e:2x2
jax: 0.10.0
libtpu: 0.0.40
codegen_flags: <defaults>
</compile_context>

<pallas_src>
import functools
import math

import jax
import jax.numpy as jnp
from jax.experimental import pallas as pl
from jax.experimental.pallas import tpu as pltpu

# ------------------------- model config (toy, lane-dense) -------------------
HIDDEN = 128          # stand-in for 768
NUM_HEADS = 4
HEAD_DIM = HIDDEN // NUM_HEADS
FFN = 512             # stand-in for 3072
NUM_LAYERS = 2
VOCAB = 128
MAX_POS = 128         # matches tokenizer max_length=128
OUTPUT_DIM = 128      # stand-in for output_dim=768
LN_EPS = 1e-12        # BERT layer-norm epsilon


# ------------------------------ in-kernel helpers ----------------------------
def _ln(x, g, b):
    """Row-wise layernorm over the last (hidden) axis, f32 math."""
    mean = jnp.mean(x, axis=-1, keepdims=True)
    var = jnp.mean((x - mean) ** 2, axis=-1, keepdims=True)
    return (x - mean) * jax.lax.rsqrt(var + LN_EPS) * g + b


def _gelu(x):
    # TODO(synk): HF BERT uses exact erf-GELU; tanh approximation kept here for
    # robust Mosaic lowering (small numeric divergence from the reference).
    c = 0.7978845608028654  # sqrt(2/pi)
    return 0.5 * x * (1.0 + jnp.tanh(c * (x + 0.044715 * x * x * x)))


# --------------------- fully fused BERT forward kernel -----------------------
def _bert_forward_kernel(word_ref, postype_ref, embg_ref, embb_ref,
                         wqkv_ref, bqkv_ref, wo_ref, bo_ref,
                         ln1g_ref, ln1b_ref, w1_ref, b1_ref,
                         w2_ref, b2_ref, ln2g_ref, ln2b_ref,
                         fcw_ref, fcb_ref, o_ref, *, scale):
    """Embedding-LN -> NUM_LAYERS encoder layers -> [CLS] -> fc -> ReLU.

    One grid step processes one batch element ([1, S, H] block).
    """
    # ---- embeddings: word + (pos + token_type), then LayerNorm ----
    x = word_ref[0].astype(jnp.float32) + postype_ref[0].astype(jnp.float32)
    x = _ln(x, embg_ref[...], embb_ref[...])                         # [S, H]

    # ---- transformer layers, fully unrolled in-kernel ----
    for li in range(NUM_LAYERS):
        # fused QKV projection: bf16 MXU inputs, f32 accumulation
        qkv = jnp.dot(x.astype(jnp.bfloat16), wqkv_ref[li],
                      preferred_element_type=jnp.float32) + bqkv_ref[li]  # [S, 3H]

        # per-head attention, entirely in-kernel (no head transposes)
        # TODO(synk): no attention mask; inputs assumed unpadded (like the
        # original module when every string tokenizes to the same length).
        ctx_heads = []
        for hi in range(NUM_HEADS):
            lo = hi * HEAD_DIM
            q_i = qkv[:, lo:lo + HEAD_DIM]
            k_i = qkv[:, HIDDEN + lo:HIDDEN + lo + HEAD_DIM]
            v_i = qkv[:, 2 * HIDDEN + lo:2 * HIDDEN + lo + HEAD_DIM]
            s_i = jax.lax.dot_general(
                q_i.astype(jnp.bfloat16), k_i.astype(jnp.bfloat16),
                dimension_numbers=(((1,), (1,)), ((), ())),
                preferred_element_type=jnp.float32) * scale          # [S, S]
            m_i = jnp.max(s_i, axis=-1, keepdims=True)
            p_i = jnp.exp(s_i - m_i)
            p_i = p_i * pl.reciprocal(jnp.sum(p_i, axis=-1, keepdims=True),
                                      approx=True)
            ctx_heads.append(
                jnp.dot(p_i.astype(jnp.bfloat16), v_i.astype(jnp.bfloat16),
                        preferred_element_type=jnp.float32))         # [S, HD]
        ctx = jnp.concatenate(ctx_heads, axis=-1)                    # [S, H]

        # output projection + residual + post-LN (BERT)
        attn = jnp.dot(ctx.astype(jnp.bfloat16), wo_ref[li],
                       preferred_element_type=jnp.float32) + bo_ref[li]
        h1 = _ln(attn + x, ln1g_ref[li], ln1b_ref[li])

        # FFN (GELU) + residual + post-LN
        ff = _gelu(jnp.dot(h1.astype(jnp.bfloat16), w1_ref[li],
                           preferred_element_type=jnp.float32) + b1_ref[li])
        ff = jnp.dot(ff.astype(jnp.bfloat16), w2_ref[li],
                     preferred_element_type=jnp.float32) + b2_ref[li]
        x = _ln(ff + h1, ln2g_ref[li], ln2b_ref[li])

    # ---- [CLS] token -> fc -> ReLU ----
    cls = x[0:1, :]                                                  # [1, H]
    y = jnp.dot(cls.astype(jnp.bfloat16), fcw_ref[...],
                preferred_element_type=jnp.float32) + fcb_ref[...]   # [1, OUT]
    o_ref[0] = jnp.maximum(y, 0.0).astype(o_ref.dtype)


def bert_forward(params, word, postype):
    """word: [B, S, H] gathered word embeddings; postype: [1, S, H]."""
    b, s, hidden = word.shape
    scale = 1.0 / math.sqrt(HEAD_DIM)

    flops_layer = (2 * s * HIDDEN * 3 * HIDDEN            # QKV
                   + 2 * 2 * s * s * HIDDEN               # scores + ctx
                   + 2 * s * HIDDEN * HIDDEN               # out proj
                   + 2 * 2 * s * HIDDEN * FFN)             # FFN
    flops = b * (NUM_LAYERS * flops_layer + 2 * HIDDEN * OUTPUT_DIM)
    transcendentals = b * NUM_LAYERS * (NUM_HEADS * s * s + s * FFN)
    weight_bytes = (NUM_LAYERS * 2 * (3 * HIDDEN * HIDDEN + HIDDEN * HIDDEN
                                      + 2 * HIDDEN * FFN)
                    + 2 * HIDDEN * OUTPUT_DIM)
    bytes_accessed = (b * s * HIDDEN * 4 + s * HIDDEN * 4
                      + b * OUTPUT_DIM * 4 + weight_bytes)

    def full(shape):
        return pl.BlockSpec(shape, lambda i: (0,) * len(shape))

    out = pl.pallas_call(
        functools.partial(_bert_forward_kernel, scale=scale),
        out_shape=jax.ShapeDtypeStruct((b, 1, OUTPUT_DIM), jnp.float32),
        grid=(b,),
        in_specs=[
            pl.BlockSpec((1, s, hidden), lambda i: (i, 0, 0)),       # word emb
            pl.BlockSpec((1, s, hidden), lambda i: (0, 0, 0)),       # pos+type
            full((1, HIDDEN)), full((1, HIDDEN)),                    # emb LN
            full((NUM_LAYERS, HIDDEN, 3 * HIDDEN)),                  # wqkv
            full((NUM_LAYERS, 1, 3 * HIDDEN)),                       # bqkv
            full((NUM_LAYERS, HIDDEN, HIDDEN)),                      # wo
            full((NUM_LAYERS, 1, HIDDEN)),                           # bo
            full((NUM_LAYERS, 1, HIDDEN)), full((NUM_LAYERS, 1, HIDDEN)),  # ln1
            full((NUM_LAYERS, HIDDEN, FFN)),                         # w1
            full((NUM_LAYERS, 1, FFN)),                              # b1
            full((NUM_LAYERS, FFN, HIDDEN)),                         # w2
            full((NUM_LAYERS, 1, HIDDEN)),                           # b2
            full((NUM_LAYERS, 1, HIDDEN)), full((NUM_LAYERS, 1, HIDDEN)),  # ln2
            full((HIDDEN, OUTPUT_DIM)), full((1, OUTPUT_DIM)),       # fc
        ],
        out_specs=pl.BlockSpec((1, 1, OUTPUT_DIM), lambda i: (i, 0, 0)),
        compiler_params=pltpu.CompilerParams(dimension_semantics=("parallel",)),
        cost_estimate=pl.CostEstimate(flops=flops,
                                      transcendentals=transcendentals,
                                      bytes_accessed=bytes_accessed),
    )(word, postype,
      params["emb_ln_g"], params["emb_ln_b"],
      params["wqkv"], params["bqkv"], params["wo"], params["bo"],
      params["ln1_g"], params["ln1_b"], params["w1"], params["b1"],
      params["w2"], params["b2"], params["ln2_g"], params["ln2_b"],
      params["fc_w"], params["fc_b"])
    return out.reshape(b, OUTPUT_DIM)


# --------------------------------- parameters --------------------------------
def init_params(key):
    def dense(k, *shape):
        # Weights stored in bf16 (MXU operands); f32 accumulate in-kernel.
        return (jax.random.normal(k, shape, jnp.float32) * 0.02
                ).astype(jnp.bfloat16)

    keys = jax.random.split(key, 8)
    return {
        "word_emb": jax.random.normal(keys[0], (VOCAB, HIDDEN), jnp.float32) * 0.02,
        "pos_emb": jax.random.normal(keys[1], (MAX_POS, HIDDEN), jnp.float32) * 0.02,
        "type_emb": jax.random.normal(keys[2], (2, HIDDEN), jnp.float32) * 0.02,
        "emb_ln_g": jnp.ones((1, HIDDEN), jnp.float32),
        "emb_ln_b": jnp.zeros((1, HIDDEN), jnp.float32),
        # Layer params stacked along a leading [L] axis (kernel unrolls layers).
        "wqkv": dense(keys[3], NUM_LAYERS, HIDDEN, 3 * HIDDEN),   # fused [Wq|Wk|Wv]
        "bqkv": jnp.zeros((NUM_LAYERS, 1, 3 * HIDDEN), jnp.float32),
        "wo": dense(keys[4], NUM_LAYERS, HIDDEN, HIDDEN),
        "bo": jnp.zeros((NUM_LAYERS, 1, HIDDEN), jnp.float32),
        "ln1_g": jnp.ones((NUM_LAYERS, 1, HIDDEN), jnp.float32),
        "ln1_b": jnp.zeros((NUM_LAYERS, 1, HIDDEN), jnp.float32),
        "w1": dense(keys[5], NUM_LAYERS, HIDDEN, FFN),
        "b1": jnp.zeros((NUM_LAYERS, 1, FFN), jnp.float32),
        "w2": dense(keys[6], NUM_LAYERS, FFN, HIDDEN),
        "b2": jnp.zeros((NUM_LAYERS, 1, HIDDEN), jnp.float32),
        "ln2_g": jnp.ones((NUM_LAYERS, 1, HIDDEN), jnp.float32),
        "ln2_b": jnp.zeros((NUM_LAYERS, 1, HIDDEN), jnp.float32),
        "fc_w": dense(keys[7], HIDDEN, OUTPUT_DIM),
        "fc_b": jnp.zeros((1, OUTPUT_DIM), jnp.float32),
    }


# -------------------------------- forward pass --------------------------------
def bio_clinical_bert_encoder(params, input_ids):
    """input_ids: int32 [B, S] (pre-tokenized text); returns [B, OUTPUT_DIM]."""
    # TODO(synk): HF tokenizer (string -> ids, padding, attention_mask) has no
    # Pallas equivalent; inputs are assumed pre-tokenized with no padding.
    b, s = input_ids.shape
    assert s <= MAX_POS, (s, MAX_POS)

    # Embedding gathers stay in plain JAX (glue); everything else is one
    # fused Pallas kernel.
    word = params["word_emb"][input_ids]                         # [B, S, H]
    postype = (params["pos_emb"][:s] + params["type_emb"][0][None, :])[None]  # [1,S,H]
    return bert_forward(params, word, postype)                   # [B, OUT]


# ------------------------------------ main ------------------------------------
if __name__ == "__main__":
    key = jax.random.PRNGKey(0)
    pkey, dkey = jax.random.split(key)
    params = init_params(pkey)

    B, S = 2, 8
    input_ids = jax.random.randint(dkey, (B, S), 0, VOCAB, dtype=jnp.int32)

    fwd = jax.jit(bio_clinical_bert_encoder)
    out = jax.block_until_ready(fwd(params, input_ids))

    assert out.shape == (B, OUTPUT_DIM), out.shape
    assert bool(jnp.all(out >= 0.0)) and bool(jnp.all(jnp.isfinite(out)))
    print("KERNEL_OK")
</pallas_src>

<mosaic_0001>
module attributes {stable_mosaic.version = 11 : i64} {
  func.func @_bert_forward_kernel(%arg0: i32, %arg1: memref<1x8x128xf32, #tpu.memory_space<vmem>>, %arg2: memref<1x8x128xf32, #tpu.memory_space<vmem>>, %arg3: memref<1x128xf32, #tpu.memory_space<vmem>>, %arg4: memref<1x128xf32, #tpu.memory_space<vmem>>, %arg5: memref<2x128x384xbf16, #tpu.memory_space<vmem>>, %arg6: memref<2x1x384xf32, #tpu.memory_space<vmem>>, %arg7: memref<2x128x128xbf16, #tpu.memory_space<vmem>>, %arg8: memref<2x1x128xf32, #tpu.memory_space<vmem>>, %arg9: memref<2x1x128xf32, #tpu.memory_space<vmem>>, %arg10: memref<2x1x128xf32, #tpu.memory_space<vmem>>, %arg11: memref<2x128x512xbf16, #tpu.memory_space<vmem>>, %arg12: memref<2x1x512xf32, #tpu.memory_space<vmem>>, %arg13: memref<2x512x128xbf16, #tpu.memory_space<vmem>>, %arg14: memref<2x1x128xf32, #tpu.memory_space<vmem>>, %arg15: memref<2x1x128xf32, #tpu.memory_space<vmem>>, %arg16: memref<2x1x128xf32, #tpu.memory_space<vmem>>, %arg17: memref<128x128xbf16, #tpu.memory_space<vmem>>, %arg18: memref<1x128xf32, #tpu.memory_space<vmem>>, %arg19: memref<1x1x128xf32, #tpu.memory_space<vmem>>) attributes {dimension_semantics = [#tpu.dimension_semantics<parallel>], iteration_bounds = array<i64: 2>, scalar_prefetch = 0 : i64, scratch_operands = 0 : i64, tpu.core_type = #tpu.core_type<tc>, window_params = [{transform_indices = @transform_0, window_bounds = array<i64: 1, 8, 128>}, {pipeline_mode = #tpu.pipeline_mode<synchronous>, transform_indices = @transform_1, window_bounds = array<i64: 1, 8, 128>}, {pipeline_mode = #tpu.pipeline_mode<synchronous>, transform_indices = @transform_2, window_bounds = array<i64: 1, 128>}, {pipeline_mode = #tpu.pipeline_mode<synchronous>, transform_indices = @transform_3, window_bounds = array<i64: 1, 128>}, {pipeline_mode = #tpu.pipeline_mode<synchronous>, transform_indices = @transform_4, window_bounds = array<i64: 2, 128, 384>}, {pipeline_mode = #tpu.pipeline_mode<synchronous>, transform_indices = @transform_5, window_bounds = array<i64: 2, 1, 384>}, {pipeline_mode = #tpu.pipeline_mode<synchronous>, transform_indices = @transform_6, window_bounds = array<i64: 2, 128, 128>}, {pipeline_mode = #tpu.pipeline_mode<synchronous>, transform_indices = @transform_7, window_bounds = array<i64: 2, 1, 128>}, {pipeline_mode = #tpu.pipeline_mode<synchronous>, transform_indices = @transform_8, window_bounds = array<i64: 2, 1, 128>}, {pipeline_mode = #tpu.pipeline_mode<synchronous>, transform_indices = @transform_9, window_bounds = array<i64: 2, 1, 128>}, {pipeline_mode = #tpu.pipeline_mode<synchronous>, transform_indices = @transform_10, window_bounds = array<i64: 2, 128, 512>}, {pipeline_mode = #tpu.pipeline_mode<synchronous>, transform_indices = @transform_11, window_bounds = array<i64: 2, 1, 512>}, {pipeline_mode = #tpu.pipeline_mode<synchronous>, transform_indices = @transform_12, window_bounds = array<i64: 2, 512, 128>}, {pipeline_mode = #tpu.pipeline_mode<synchronous>, transform_indices = @transform_13, window_bounds = array<i64: 2, 1, 128>}, {pipeline_mode = #tpu.pipeline_mode<synchronous>, transform_indices = @transform_14, window_bounds = array<i64: 2, 1, 128>}, {pipeline_mode = #tpu.pipeline_mode<synchronous>, transform_indices = @transform_15, window_bounds = array<i64: 2, 1, 128>}, {pipeline_mode = #tpu.pipeline_mode<synchronous>, transform_indices = @transform_16, window_bounds = array<i64: 128, 128>}, {pipeline_mode = #tpu.pipeline_mode<synchronous>, transform_indices = @transform_17, window_bounds = array<i64: 1, 128>}, {transform_indices = @transform_18, window_bounds = array<i64: 1, 1, 128>}]} {
    %c0 = arith.constant 0 : index
    %c0_0 = arith.constant 0 : index
    %c0_1 = arith.constant 0 : index
    %0 = vector.load %arg1[%c0, %c0_0, %c0_1] : memref<1x8x128xf32, #tpu.memory_space<vmem>>, vector<1x8x128xf32>
    %1 = vector.shape_cast %0 : vector<1x8x128xf32> to vector<8x128xf32>
    %c0_2 = arith.constant 0 : index
    %c0_3 = arith.constant 0 : index
    %c0_4 = arith.constant 0 : index
    %2 = vector.load %arg2[%c0_2, %c0_3, %c0_4] : memref<1x8x128xf32, #tpu.memory_space<vmem>>, vector<1x8x128xf32>
    %3 = vector.shape_cast %2 : vector<1x8x128xf32> to vector<8x128xf32>
    %4 = arith.addf %1, %3 : vector<8x128xf32>
    %c0_5 = arith.constant 0 : index
    %c0_6 = arith.constant 0 : index
    %5 = vector.load %arg3[%c0_5, %c0_6] : memref<1x128xf32, #tpu.memory_space<vmem>>, vector<1x128xf32>
    %c0_7 = arith.constant 0 : index
    %c0_8 = arith.constant 0 : index
    %6 = vector.load %arg4[%c0_7, %c0_8] : memref<1x128xf32, #tpu.memory_space<vmem>>, vector<1x128xf32>
    %cst = arith.constant dense<0.000000e+00> : vector<8xf32>
    %7 = vector.multi_reduction <add>, %4, %cst [1] : vector<8x128xf32> to vector<8xf32>
    %8 = vector.shape_cast %7 : vector<8xf32> to vector<8x1xf32>
    %cst_9 = arith.constant 1.280000e+02 : f32
    %9 = vector.broadcast %cst_9 : f32 to vector<8x1xf32>
    %10 = arith.divf %8, %9 : vector<8x1xf32>
    %11 = vector.broadcast %10 : vector<8x1xf32> to vector<8x128xf32>
    %12 = arith.subf %4, %11 : vector<8x128xf32>
    %13 = arith.mulf %12, %12 : vector<8x128xf32>
    %cst_10 = arith.constant dense<0.000000e+00> : vector<8xf32>
    %14 = vector.multi_reduction <add>, %13, %cst_10 [1] : vector<8x128xf32> to vector<8xf32>
    %15 = vector.shape_cast %14 : vector<8xf32> to vector<8x1xf32>
    %cst_11 = arith.constant 1.280000e+02 : f32
    %16 = vector.broadcast %cst_11 : f32 to vector<8x1xf32>
    %17 = arith.divf %15, %16 : vector<8x1xf32>
    %18 = vector.broadcast %10 : vector<8x1xf32> to vector<8x128xf32>
    %19 = arith.subf %4, %18 : vector<8x128xf32>
    %cst_12 = arith.constant 9.99999996E-13 : f32
    %20 = vector.broadcast %cst_12 : f32 to vector<8x1xf32>
    %21 = arith.addf %17, %20 : vector<8x1xf32>
    %22 = math.rsqrt %21 : vector<8x1xf32>
    %23 = vector.broadcast %22 : vector<8x1xf32> to vector<8x128xf32>
    %24 = arith.mulf %19, %23 : vector<8x128xf32>
    %25 = vector.broadcast %5 : vector<1x128xf32> to vector<8x128xf32>
    %26 = arith.mulf %24, %25 : vector<8x128xf32>
    %27 = vector.broadcast %6 : vector<1x128xf32> to vector<8x128xf32>
    %28 = arith.addf %26, %27 : vector<8x128xf32>
    %29 = arith.truncf %28 : vector<8x128xf32> to vector<8x128xbf16>
    %c0_13 = arith.constant 0 : index
    %c0_14 = arith.constant 0 : index
    %c0_15 = arith.constant 0 : index
    %30 = vector.load %arg5[%c0_13, %c0_14, %c0_15] : memref<2x128x384xbf16, #tpu.memory_space<vmem>>, vector<1x128x384xbf16>
    %31 = vector.shape_cast %30 : vector<1x128x384xbf16> to vector<128x384xbf16>
    %cst_16 = arith.constant dense<0.000000e+00> : vector<8x384xf32>
    %32 = tpu.matmul %29, %31, %cst_16 {dimension_numbers = #tpu.dot_dimension_numbers<[1], [0], [0], [1], [0, 0, 1, 1], [], []>} : vector<8x128xbf16>, vector<128x384xbf16>, vector<8x384xf32> -> vector<8x384xf32>
    %c0_17 = arith.constant 0 : index
    %c0_18 = arith.constant 0 : index
    %c0_19 = arith.constant 0 : index
    %33 = vector.load %arg6[%c0_17, %c0_18, %c0_19] : memref<2x1x384xf32, #tpu.memory_space<vmem>>, vector<1x1x384xf32>
    %34 = vector.shape_cast %33 : vector<1x1x384xf32> to vector<1x384xf32>
    %35 = vector.broadcast %34 : vector<1x384xf32> to vector<8x384xf32>
    %36 = arith.addf %32, %35 : vector<8x384xf32>
    %37 = vector.extract_strided_slice %36 {offsets = [0, 0], sizes = [8, 32], strides = [1, 1]} : vector<8x384xf32> to vector<8x32xf32>
    %38 = vector.extract_strided_slice %36 {offsets = [0, 128], sizes = [8, 32], strides = [1, 1]} : vector<8x384xf32> to vector<8x32xf32>
    %39 = vector.extract_strided_slice %36 {offsets = [0, 256], sizes = [8, 32], strides = [1, 1]} : vector<8x384xf32> to vector<8x32xf32>
    %40 = arith.truncf %37 : vector<8x32xf32> to vector<8x32xbf16>
    %41 = arith.truncf %38 : vector<8x32xf32> to vector<8x32xbf16>
    %cst_20 = arith.constant dense<0.000000e+00> : vector<8x8xf32>
    %42 = tpu.matmul %40, %41, %cst_20 {dimension_numbers = #tpu.dot_dimension_numbers<[1], [1], [0], [0], [0, 0, 1, 0], [], []>} : vector<8x32xbf16>, vector<8x32xbf16>, vector<8x8xf32> -> vector<8x8xf32>
    %cst_21 = arith.constant 0.176776692 : f32
    %43 = vector.broadcast %cst_21 : f32 to vector<8x8xf32>
    %44 = arith.mulf %42, %43 : vector<8x8xf32>
    %cst_22 = arith.constant dense<0xFF800000> : vector<8xf32>
    %45 = vector.multi_reduction <maximumf>, %44, %cst_22 [1] : vector<8x8xf32> to vector<8xf32>
    %46 = vector.shape_cast %45 : vector<8xf32> to vector<8x1xf32>
    %47 = vector.broadcast %46 : vector<8x1xf32> to vector<8x8xf32>
    %48 = arith.subf %44, %47 : vector<8x8xf32>
    %49 = math.exp %48 : vector<8x8xf32>
    %cst_23 = arith.constant dense<0.000000e+00> : vector<8xf32>
    %50 = vector.multi_reduction <add>, %49, %cst_23 [1] : vector<8x8xf32> to vector<8xf32>
    %51 = vector.shape_cast %50 : vector<8xf32> to vector<8x1xf32>
    %52 = tpu.reciprocal %51 {approx = true} : vector<8x1xf32> -> vector<8x1xf32>
    %53 = vector.broadcast %52 : vector<8x1xf32> to vector<8x8xf32>
    %54 = arith.mulf %49, %53 : vector<8x8xf32>
    %55 = arith.truncf %54 : vector<8x8xf32> to vector<8x8xbf16>
    %56 = arith.truncf %39 : vector<8x32xf32> to vector<8x32xbf16>
    %cst_24 = arith.constant dense<0.000000e+00> : vector<8x32xf32>
    %57 = tpu.matmul %55, %56, %cst_24 {dimension_numbers = #tpu.dot_dimension_numbers<[1], [0], [0], [1], [0, 0, 1, 1], [], []>} : vector<8x8xbf16>, vector<8x32xbf16>, vector<8x32xf32> -> vector<8x32xf32>
    %58 = vector.extract_strided_slice %36 {offsets = [0, 32], sizes = [8, 32], strides = [1, 1]} : vector<8x384xf32> to vector<8x32xf32>
    %59 = vector.extract_strided_slice %36 {offsets = [0, 160], sizes = [8, 32], strides = [1, 1]} : vector<8x384xf32> to vector<8x32xf32>
    %60 = vector.extract_strided_slice %36 {offsets = [0, 288], sizes = [8, 32], strides = [1, 1]} : vector<8x384xf32> to vector<8x32xf32>
    %61 = arith.truncf %58 : vector<8x32xf32> to vector<8x32xbf16>
    %62 = arith.truncf %59 : vector<8x32xf32> to vector<8x32xbf16>
    %cst_25 = arith.constant dense<0.000000e+00> : vector<8x8xf32>
    %63 = tpu.matmul %61, %62, %cst_25 {dimension_numbers = #tpu.dot_dimension_numbers<[1], [1], [0], [0], [0, 0, 1, 0], [], []>} : vector<8x32xbf16>, vector<8x32xbf16>, vector<8x8xf32> -> vector<8x8xf32>
    %cst_26 = arith.constant 0.176776692 : f32
    %64 = vector.broadcast %cst_26 : f32 to vector<8x8xf32>
    %65 = arith.mulf %63, %64 : vector<8x8xf32>
    %cst_27 = arith.constant dense<0xFF800000> : vector<8xf32>
    %66 = vector.multi_reduction <maximumf>, %65, %cst_27 [1] : vector<8x8xf32> to vector<8xf32>
    %67 = vector.shape_cast %66 : vector<8xf32> to vector<8x1xf32>
    %68 = vector.broadcast %67 : vector<8x1xf32> to vector<8x8xf32>
    %69 = arith.subf %65, %68 : vector<8x8xf32>
    %70 = math.exp %69 : vector<8x8xf32>
    %cst_28 = arith.constant dense<0.000000e+00> : vector<8xf32>
    %71 = vector.multi_reduction <add>, %70, %cst_28 [1] : vector<8x8xf32> to vector<8xf32>
    %72 = vector.shape_cast %71 : vector<8xf32> to vector<8x1xf32>
    %73 = tpu.reciprocal %72 {approx = true} : vector<8x1xf32> -> vector<8x1xf32>
    %74 = vector.broadcast %73 : vector<8x1xf32> to vector<8x8xf32>
    %75 = arith.mulf %70, %74 : vector<8x8xf32>
    %76 = arith.truncf %75 : vector<8x8xf32> to vector<8x8xbf16>
    %77 = arith.truncf %60 : vector<8x32xf32> to vector<8x32xbf16>
    %cst_29 = arith.constant dense<0.000000e+00> : vector<8x32xf32>
    %78 = tpu.matmul %76, %77, %cst_29 {dimension_numbers = #tpu.dot_dimension_numbers<[1], [0], [0], [1], [0, 0, 1, 1], [], []>} : vector<8x8xbf16>, vector<8x32xbf16>, vector<8x32xf32> -> vector<8x32xf32>
    %79 = vector.extract_strided_slice %36 {offsets = [0, 64], sizes = [8, 32], strides = [1, 1]} : vector<8x384xf32> to vector<8x32xf32>
    %80 = vector.extract_strided_slice %36 {offsets = [0, 192], sizes = [8, 32], strides = [1, 1]} : vector<8x384xf32> to vector<8x32xf32>
    %81 = vector.extract_strided_slice %36 {offsets = [0, 320], sizes = [8, 32], strides = [1, 1]} : vector<8x384xf32> to vector<8x32xf32>
    %82 = arith.truncf %79 : vector<8x32xf32> to vector<8x32xbf16>
    %83 = arith.truncf %80 : vector<8x32xf32> to vector<8x32xbf16>
    %cst_30 = arith.constant dense<0.000000e+00> : vector<8x8xf32>
    %84 = tpu.matmul %82, %83, %cst_30 {dimension_numbers = #tpu.dot_dimension_numbers<[1], [1], [0], [0], [0, 0, 1, 0], [], []>} : vector<8x32xbf16>, vector<8x32xbf16>, vector<8x8xf32> -> vector<8x8xf32>
    %cst_31 = arith.constant 0.176776692 : f32
    %85 = vector.broadcast %cst_31 : f32 to vector<8x8xf32>
    %86 = arith.mulf %84, %85 : vector<8x8xf32>
    %cst_32 = arith.constant dense<0xFF800000> : vector<8xf32>
    %87 = vector.multi_reduction <maximumf>, %86, %cst_32 [1] : vector<8x8xf32> to vector<8xf32>
    %88 = vector.shape_cast %87 : vector<8xf32> to vector<8x1xf32>
    %89 = vector.broadcast %88 : vector<8x1xf32> to vector<8x8xf32>
    %90 = arith.subf %86, %89 : vector<8x8xf32>
    %91 = math.exp %90 : vector<8x8xf32>
    %cst_33 = arith.constant dense<0.000000e+00> : vector<8xf32>
    %92 = vector.multi_reduction <add>, %91, %cst_33 [1] : vector<8x8xf32> to vector<8xf32>
    %93 = vector.shape_cast %92 : vector<8xf32> to vector<8x1xf32>
    %94 = tpu.reciprocal %93 {approx = true} : vector<8x1xf32> -> vector<8x1xf32>
    %95 = vector.broadcast %94 : vector<8x1xf32> to vector<8x8xf32>
    %96 = arith.mulf %91, %95 : vector<8x8xf32>
    %97 = arith.truncf %96 : vector<8x8xf32> to vector<8x8xbf16>
    %98 = arith.truncf %81 : vector<8x32xf32> to vector<8x32xbf16>
    %cst_34 = arith.constant dense<0.000000e+00> : vector<8x32xf32>
    %99 = tpu.matmul %97, %98, %cst_34 {dimension_numbers = #tpu.dot_dimension_numbers<[1], [0], [0], [1], [0, 0, 1, 1], [], []>} : vector<8x8xbf16>, vector<8x32xbf16>, vector<8x32xf32> -> vector<8x32xf32>
    %100 = vector.extract_strided_slice %36 {offsets = [0, 96], sizes = [8, 32], strides = [1, 1]} : vector<8x384xf32> to vector<8x32xf32>
    %101 = vector.extract_strided_slice %36 {offsets = [0, 224], sizes = [8, 32], strides = [1, 1]} : vector<8x384xf32> to vector<8x32xf32>
    %102 = vector.extract_strided_slice %36 {offsets = [0, 352], sizes = [8, 32], strides = [1, 1]} : vector<8x384xf32> to vector<8x32xf32>
    %103 = arith.truncf %100 : vector<8x32xf32> to vector<8x32xbf16>
    %104 = arith.truncf %101 : vector<8x32xf32> to vector<8x32xbf16>
    %cst_35 = arith.constant dense<0.000000e+00> : vector<8x8xf32>
    %105 = tpu.matmul %103, %104, %cst_35 {dimension_numbers = #tpu.dot_dimension_numbers<[1], [1], [0], [0], [0, 0, 1, 0], [], []>} : vector<8x32xbf16>, vector<8x32xbf16>, vector<8x8xf32> -> vector<8x8xf32>
    %cst_36 = arith.constant 0.176776692 : f32
    %106 = vector.broadcast %cst_36 : f32 to vector<8x8xf32>
    %107 = arith.mulf %105, %106 : vector<8x8xf32>
    %cst_37 = arith.constant dense<0xFF800000> : vector<8xf32>
    %108 = vector.multi_reduction <maximumf>, %107, %cst_37 [1] : vector<8x8xf32> to vector<8xf32>
    %109 = vector.shape_cast %108 : vector<8xf32> to vector<8x1xf32>
    %110 = vector.broadcast %109 : vector<8x1xf32> to vector<8x8xf32>
    %111 = arith.subf %107, %110 : vector<8x8xf32>
    %112 = math.exp %111 : vector<8x8xf32>
    %cst_38 = arith.constant dense<0.000000e+00> : vector<8xf32>
    %113 = vector.multi_reduction <add>, %112, %cst_38 [1] : vector<8x8xf32> to vector<8xf32>
    %114 = vector.shape_cast %113 : vector<8xf32> to vector<8x1xf32>
    %115 = tpu.reciprocal %114 {approx = true} : vector<8x1xf32> -> vector<8x1xf32>
    %116 = vector.broadcast %115 : vector<8x1xf32> to vector<8x8xf32>
    %117 = arith.mulf %112, %116 : vector<8x8xf32>
    %118 = arith.truncf %117 : vector<8x8xf32> to vector<8x8xbf16>
    %119 = arith.truncf %102 : vector<8x32xf32> to vector<8x32xbf16>
    %cst_39 = arith.constant dense<0.000000e+00> : vector<8x32xf32>
    %120 = tpu.matmul %118, %119, %cst_39 {dimension_numbers = #tpu.dot_dimension_numbers<[1], [0], [0], [1], [0, 0, 1, 1], [], []>} : vector<8x8xbf16>, vector<8x32xbf16>, vector<8x32xf32> -> vector<8x32xf32>
    %121 = tpu.concatenate %57, %78, %99, %120 in 1 : vector<8x32xf32>, vector<8x32xf32>, vector<8x32xf32>, vector<8x32xf32> -> vector<8x128xf32>
    %122 = arith.truncf %121 : vector<8x128xf32> to vector<8x128xbf16>
    %c0_40 = arith.constant 0 : index
    %c0_41 = arith.constant 0 : index
    %c0_42 = arith.constant 0 : index
    %123 = vector.load %arg7[%c0_40, %c0_41, %c0_42] : memref<2x128x128xbf16, #tpu.memory_space<vmem>>, vector<1x128x128xbf16>
    %124 = vector.shape_cast %123 : vector<1x128x128xbf16> to vector<128x128xbf16>
    %cst_43 = arith.constant dense<0.000000e+00> : vector<8x128xf32>
    %125 = tpu.matmul %122, %124, %cst_43 {dimension_numbers = #tpu.dot_dimension_numbers<[1], [0], [0], [1], [0, 0, 1, 1], [], []>} : vector<8x128xbf16>, vector<128x128xbf16>, vector<8x128xf32> -> vector<8x128xf32>
    %c0_44 = arith.constant 0 : index
    %c0_45 = arith.constant 0 : index
    %c0_46 = arith.constant 0 : index
    %126 = vector.load %arg8[%c0_44, %c0_45, %c0_46] : memref<2x1x128xf32, #tpu.memory_space<vmem>>, vector<1x1x128xf32>
    %127 = vector.shape_cast %126 : vector<1x1x128xf32> to vector<1x128xf32>
    %128 = vector.broadcast %127 : vector<1x128xf32> to vector<8x128xf32>
    %129 = arith.addf %125, %128 : vector<8x128xf32>
    %130 = arith.addf %129, %28 : vector<8x128xf32>
    %c0_47 = arith.constant 0 : index
    %c0_48 = arith.constant 0 : index
    %c0_49 = arith.constant 0 : index
    %131 = vector.load %arg9[%c0_47, %c0_48, %c0_49] : memref<2x1x128xf32, #tpu.memory_space<vmem>>, vector<1x1x128xf32>
    %132 = vector.shape_cast %131 : vector<1x1x128xf32> to vector<1x128xf32>
    %c0_50 = arith.constant 0 : index
    %c0_51 = arith.constant 0 : index
    %c0_52 = arith.constant 0 : index
    %133 = vector.load %arg10[%c0_50, %c0_51, %c0_52] : memref<2x1x128xf32, #tpu.memory_space<vmem>>, vector<1x1x128xf32>
    %134 = vector.shape_cast %133 : vector<1x1x128xf32> to vector<1x128xf32>
    %cst_53 = arith.constant dense<0.000000e+00> : vector<8xf32>
    %135 = vector.multi_reduction <add>, %130, %cst_53 [1] : vector<8x128xf32> to vector<8xf32>
    %136 = vector.shape_cast %135 : vector<8xf32> to vector<8x1xf32>
    %cst_54 = arith.constant 1.280000e+02 : f32
    %137 = vector.broadcast %cst_54 : f32 to vector<8x1xf32>
    %138 = arith.divf %136, %137 : vector<8x1xf32>
    %139 = vector.broadcast %138 : vector<8x1xf32> to vector<8x128xf32>
    %140 = arith.subf %130, %139 : vector<8x128xf32>
    %141 = arith.mulf %140, %140 : vector<8x128xf32>
    %cst_55 = arith.constant dense<0.000000e+00> : vector<8xf32>
    %142 = vector.multi_reduction <add>, %141, %cst_55 [1] : vector<8x128xf32> to vector<8xf32>
    %143 = vector.shape_cast %142 : vector<8xf32> to vector<8x1xf32>
    %cst_56 = arith.constant 1.280000e+02 : f32
    %144 = vector.broadcast %cst_56 : f32 to vector<8x1xf32>
    %145 = arith.divf %143, %144 : vector<8x1xf32>
    %146 = vector.broadcast %138 : vector<8x1xf32> to vector<8x128xf32>
    %147 = arith.subf %130, %146 : vector<8x128xf32>
    %cst_57 = arith.constant 9.99999996E-13 : f32
    %148 = vector.broadcast %cst_57 : f32 to vector<8x1xf32>
    %149 = arith.addf %145, %148 : vector<8x1xf32>
    %150 = math.rsqrt %149 : vector<8x1xf32>
    %151 = vector.broadcast %150 : vector<8x1xf32> to vector<8x128xf32>
    %152 = arith.mulf %147, %151 : vector<8x128xf32>
    %153 = vector.broadcast %132 : vector<1x128xf32> to vector<8x128xf32>
    %154 = arith.mulf %152, %153 : vector<8x128xf32>
    %155 = vector.broadcast %134 : vector<1x128xf32> to vector<8x128xf32>
    %156 = arith.addf %154, %155 : vector<8x128xf32>
    %157 = arith.truncf %156 : vector<8x128xf32> to vector<8x128xbf16>
    %c0_58 = arith.constant 0 : index
    %c0_59 = arith.constant 0 : index
    %c0_60 = arith.constant 0 : index
    %158 = vector.load %arg11[%c0_58, %c0_59, %c0_60] : memref<2x128x512xbf16, #tpu.memory_space<vmem>>, vector<1x128x512xbf16>
    %159 = vector.shape_cast %158 : vector<1x128x512xbf16> to vector<128x512xbf16>
    %cst_61 = arith.constant dense<0.000000e+00> : vector<8x512xf32>
    %160 = tpu.matmul %157, %159, %cst_61 {dimension_numbers = #tpu.dot_dimension_numbers<[1], [0], [0], [1], [0, 0, 1, 1], [], []>} : vector<8x128xbf16>, vector<128x512xbf16>, vector<8x512xf32> -> vector<8x512xf32>
    %c0_62 = arith.constant 0 : index
    %c0_63 = arith.constant 0 : index
    %c0_64 = arith.constant 0 : index
    %161 = vector.load %arg12[%c0_62, %c0_63, %c0_64] : memref<2x1x512xf32, #tpu.memory_space<vmem>>, vector<1x1x512xf32>
    %162 = vector.shape_cast %161 : vector<1x1x512xf32> to vector<1x512xf32>
    %163 = vector.broadcast %162 : vector<1x512xf32> to vector<8x512xf32>
    %164 = arith.addf %160, %163 : vector<8x512xf32>
    %cst_65 = arith.constant 5.000000e-01 : f32
    %165 = vector.broadcast %cst_65 : f32 to vector<8x512xf32>
    %166 = arith.mulf %165, %164 : vector<8x512xf32>
    %cst_66 = arith.constant 4.471500e-02 : f32
    %167 = vector.broadcast %cst_66 : f32 to vector<8x512xf32>
    %168 = arith.mulf %167, %164 : vector<8x512xf32>
    %169 = arith.mulf %168, %164 : vector<8x512xf32>
    %170 = arith.mulf %169, %164 : vector<8x512xf32>
    %171 = arith.addf %164, %170 : vector<8x512xf32>
    %cst_67 = arith.constant 0.797884583 : f32
    %172 = vector.broadcast %cst_67 : f32 to vector<8x512xf32>
    %173 = arith.mulf %172, %171 : vector<8x512xf32>
    %174 = math.tanh %173 : vector<8x512xf32>
    %cst_68 = arith.constant 1.000000e+00 : f32
    %175 = vector.broadcast %cst_68 : f32 to vector<8x512xf32>
    %176 = arith.addf %175, %174 : vector<8x512xf32>
    %177 = arith.mulf %166, %176 : vector<8x512xf32>
    %178 = arith.truncf %177 : vector<8x512xf32> to vector<8x512xbf16>
    %c0_69 = arith.constant 0 : index
    %c0_70 = arith.constant 0 : index
    %c0_71 = arith.constant 0 : index
    %179 = vector.load %arg13[%c0_69, %c0_70, %c0_71] : memref<2x512x128xbf16, #tpu.memory_space<vmem>>, vector<1x512x128xbf16>
    %180 = vector.shape_cast %179 : vector<1x512x128xbf16> to vector<512x128xbf16>
    %cst_72 = arith.constant dense<0.000000e+00> : vector<8x128xf32>
    %181 = tpu.matmul %178, %180, %cst_72 {dimension_numbers = #tpu.dot_dimension_numbers<[1], [0], [0], [1], [0, 0, 1, 1], [], []>} : vector<8x512xbf16>, vector<512x128xbf16>, vector<8x128xf32> -> vector<8x128xf32>
    %c0_73 = arith.constant 0 : index
    %c0_74 = arith.constant 0 : index
    %c0_75 = arith.constant 0 : index
    %182 = vector.load %arg14[%c0_73, %c0_74, %c0_75] : memref<2x1x128xf32, #tpu.memory_space<vmem>>, vector<1x1x128xf32>
    %183 = vector.shape_cast %182 : vector<1x1x128xf32> to vector<1x128xf32>
    %184 = vector.broadcast %183 : vector<1x128xf32> to vector<8x128xf32>
    %185 = arith.addf %181, %184 : vector<8x128xf32>
    %186 = arith.addf %185, %156 : vector<8x128xf32>
    %c0_76 = arith.constant 0 : index
    %c0_77 = arith.constant 0 : index
    %c0_78 = arith.constant 0 : index
    %187 = vector.load %arg15[%c0_76, %c0_77, %c0_78] : memref<2x1x128xf32, #tpu.memory_space<vmem>>, vector<1x1x128xf32>
    %188 = vector.shape_cast %187 : vector<1x1x128xf32> to vector<1x128xf32>
    %c0_79 = arith.constant 0 : index
    %c0_80 = arith.constant 0 : index
    %c0_81 = arith.constant 0 : index
    %189 = vector.load %arg16[%c0_79, %c0_80, %c0_81] : memref<2x1x128xf32, #tpu.memory_space<vmem>>, vector<1x1x128xf32>
    %190 = vector.shape_cast %189 : vector<1x1x128xf32> to vector<1x128xf32>
    %cst_82 = arith.constant dense<0.000000e+00> : vector<8xf32>
    %191 = vector.multi_reduction <add>, %186, %cst_82 [1] : vector<8x128xf32> to vector<8xf32>
    %192 = vector.shape_cast %191 : vector<8xf32> to vector<8x1xf32>
    %cst_83 = arith.constant 1.280000e+02 : f32
    %193 = vector.broadcast %cst_83 : f32 to vector<8x1xf32>
    %194 = arith.divf %192, %193 : vector<8x1xf32>
    %195 = vector.broadcast %194 : vector<8x1xf32> to vector<8x128xf32>
    %196 = arith.subf %186, %195 : vector<8x128xf32>
    %197 = arith.mulf %196, %196 : vector<8x128xf32>
    %cst_84 = arith.constant dense<0.000000e+00> : vector<8xf32>
    %198 = vector.multi_reduction <add>, %197, %cst_84 [1] : vector<8x128xf32> to vector<8xf32>
    %199 = vector.shape_cast %198 : vector<8xf32> to vector<8x1xf32>
    %cst_85 = arith.constant 1.280000e+02 : f32
    %200 = vector.broadcast %cst_85 : f32 to vector<8x1xf32>
    %201 = arith.divf %199, %200 : vector<8x1xf32>
    %202 = vector.broadcast %194 : vector<8x1xf32> to vector<8x128xf32>
    %203 = arith.subf %186, %202 : vector<8x128xf32>
    %cst_86 = arith.constant 9.99999996E-13 : f32
    %204 = vector.broadcast %cst_86 : f32 to vector<8x1xf32>
    %205 = arith.addf %201, %204 : vector<8x1xf32>
    %206 = math.rsqrt %205 : vector<8x1xf32>
    %207 = vector.broadcast %206 : vector<8x1xf32> to vector<8x128xf32>
    %208 = arith.mulf %203, %207 : vector<8x128xf32>
    %209 = vector.broadcast %188 : vector<1x128xf32> to vector<8x128xf32>
    %210 = arith.mulf %208, %209 : vector<8x128xf32>
    %211 = vector.broadcast %190 : vector<1x128xf32> to vector<8x128xf32>
    %212 = arith.addf %210, %211 : vector<8x128xf32>
    %213 = arith.truncf %212 : vector<8x128xf32> to vector<8x128xbf16>
    %c1 = arith.constant 1 : index
    %c0_87 = arith.constant 0 : index
    %c0_88 = arith.constant 0 : index
    %214 = vector.load %arg5[%c1, %c0_87, %c0_88] : memref<2x128x384xbf16, #tpu.memory_space<vmem>>, vector<1x128x384xbf16>
    %215 = vector.shape_cast %214 : vector<1x128x384xbf16> to vector<128x384xbf16>
    %cst_89 = arith.constant dense<0.000000e+00> : vector<8x384xf32>
    %216 = tpu.matmul %213, %215, %cst_89 {dimension_numbers = #tpu.dot_dimension_numbers<[1], [0], [0], [1], [0, 0, 1, 1], [], []>} : vector<8x128xbf16>, vector<128x384xbf16>, vector<8x384xf32> -> vector<8x384xf32>
    %c1_90 = arith.constant 1 : index
    %c0_91 = arith.constant 0 : index
    %c0_92 = arith.constant 0 : index
    %217 = vector.load %arg6[%c1_90, %c0_91, %c0_92] : memref<2x1x384xf32, #tpu.memory_space<vmem>>, vector<1x1x384xf32>
    %218 = vector.shape_cast %217 : vector<1x1x384xf32> to vector<1x384xf32>
    %219 = vector.broadcast %218 : vector<1x384xf32> to vector<8x384xf32>
    %220 = arith.addf %216, %219 : vector<8x384xf32>
    %221 = vector.extract_strided_slice %220 {offsets = [0, 0], sizes = [8, 32], strides = [1, 1]} : vector<8x384xf32> to vector<8x32xf32>
    %222 = vector.extract_strided_slice %220 {offsets = [0, 128], sizes = [8, 32], strides = [1, 1]} : vector<8x384xf32> to vector<8x32xf32>
    %223 = vector.extract_strided_slice %220 {offsets = [0, 256], sizes = [8, 32], strides = [1, 1]} : vector<8x384xf32> to vector<8x32xf32>
    %224 = arith.truncf %221 : vector<8x32xf32> to vector<8x32xbf16>
    %225 = arith.truncf %222 : vector<8x32xf32> to vector<8x32xbf16>
    %cst_93 = arith.constant dense<0.000000e+00> : vector<8x8xf32>
    %226 = tpu.matmul %224, %225, %cst_93 {dimension_numbers = #tpu.dot_dimension_numbers<[1], [1], [0], [0], [0, 0, 1, 0], [], []>} : vector<8x32xbf16>, vector<8x32xbf16>, vector<8x8xf32> -> vector<8x8xf32>
    %cst_94 = arith.constant 0.176776692 : f32
    %227 = vector.broadcast %cst_94 : f32 to vector<8x8xf32>
    %228 = arith.mulf %226, %227 : vector<8x8xf32>
    %cst_95 = arith.constant dense<0xFF800000> : vector<8xf32>
    %229 = vector.multi_reduction <maximumf>, %228, %cst_95 [1] : vector<8x8xf32> to vector<8xf32>
    %230 = vector.shape_cast %229 : vector<8xf32> to vector<8x1xf32>
    %231 = vector.broadcast %230 : vector<8x1xf32> to vector<8x8xf32>
    %232 = arith.subf %228, %231 : vector<8x8xf32>
    %233 = math.exp %232 : vector<8x8xf32>
    %cst_96 = arith.constant dense<0.000000e+00> : vector<8xf32>
    %234 = vector.multi_reduction <add>, %233, %cst_96 [1] : vector<8x8xf32> to vector<8xf32>
    %235 = vector.shape_cast %234 : vector<8xf32> to vector<8x1xf32>
    %236 = tpu.reciprocal %235 {approx = true} : vector<8x1xf32> -> vector<8x1xf32>
    %237 = vector.broadcast %236 : vector<8x1xf32> to vector<8x8xf32>
    %238 = arith.mulf %233, %237 : vector<8x8xf32>
    %239 = arith.truncf %238 : vector<8x8xf32> to vector<8x8xbf16>
    %240 = arith.truncf %223 : vector<8x32xf32> to vector<8x32xbf16>
    %cst_97 = arith.constant dense<0.000000e+00> : vector<8x32xf32>
    %241 = tpu.matmul %239, %240, %cst_97 {dimension_numbers = #tpu.dot_dimension_numbers<[1], [0], [0], [1], [0, 0, 1, 1], [], []>} : vector<8x8xbf16>, vector<8x32xbf16>, vector<8x32xf32> -> vector<8x32xf32>
    %242 = vector.extract_strided_slice %220 {offsets = [0, 32], sizes = [8, 32], strides = [1, 1]} : vector<8x384xf32> to vector<8x32xf32>
    %243 = vector.extract_strided_slice %220 {offsets = [0, 160], sizes = [8, 32], strides = [1, 1]} : vector<8x384xf32> to vector<8x32xf32>
    %244 = vector.extract_strided_slice %220 {offsets = [0, 288], sizes = [8, 32], strides = [1, 1]} : vector<8x384xf32> to vector<8x32xf32>
    %245 = arith.truncf %242 : vector<8x32xf32> to vector<8x32xbf16>
    %246 = arith.truncf %243 : vector<8x32xf32> to vector<8x32xbf16>
    %cst_98 = arith.constant dense<0.000000e+00> : vector<8x8xf32>
    %247 = tpu.matmul %245, %246, %cst_98 {dimension_numbers = #tpu.dot_dimension_numbers<[1], [1], [0], [0], [0, 0, 1, 0], [], []>} : vector<8x32xbf16>, vector<8x32xbf16>, vector<8x8xf32> -> vector<8x8xf32>
    %cst_99 = arith.constant 0.176776692 : f32
    %248 = vector.broadcast %cst_99 : f32 to vector<8x8xf32>
    %249 = arith.mulf %247, %248 : vector<8x8xf32>
    %cst_100 = arith.constant dense<0xFF800000> : vector<8xf32>
    %250 = vector.multi_reduction <maximumf>, %249, %cst_100 [1] : vector<8x8xf32> to vector<8xf32>
    %251 = vector.shape_cast %250 : vector<8xf32> to vector<8x1xf32>
    %252 = vector.broadcast %251 : vector<8x1xf32> to vector<8x8xf32>
    %253 = arith.subf %249, %252 : vector<8x8xf32>
    %254 = math.exp %253 : vector<8x8xf32>
    %cst_101 = arith.constant dense<0.000000e+00> : vector<8xf32>
    %255 = vector.multi_reduction <add>, %254, %cst_101 [1] : vector<8x8xf32> to vector<8xf32>
    %256 = vector.shape_cast %255 : vector<8xf32> to vector<8x1xf32>
    %257 = tpu.reciprocal %256 {approx = true} : vector<8x1xf32> -> vector<8x1xf32>
    %258 = vector.broadcast %257 : vector<8x1xf32> to vector<8x8xf32>
    %259 = arith.mulf %254, %258 : vector<8x8xf32>
    %260 = arith.truncf %259 : vector<8x8xf32> to vector<8x8xbf16>
    %261 = arith.truncf %244 : vector<8x32xf32> to vector<8x32xbf16>
    %cst_102 = arith.constant dense<0.000000e+00> : vector<8x32xf32>
    %262 = tpu.matmul %260, %261, %cst_102 {dimension_numbers = #tpu.dot_dimension_numbers<[1], [0], [0], [1], [0, 0, 1, 1], [], []>} : vector<8x8xbf16>, vector<8x32xbf16>, vector<8x32xf32> -> vector<8x32xf32>
    %263 = vector.extract_strided_slice %220 {offsets = [0, 64], sizes = [8, 32], strides = [1, 1]} : vector<8x384xf32> to vector<8x32xf32>
    %264 = vector.extract_strided_slice %220 {offsets = [0, 192], sizes = [8, 32], strides = [1, 1]} : vector<8x384xf32> to vector<8x32xf32>
    %265 = vector.extract_strided_slice %220 {offsets = [0, 320], sizes = [8, 32], strides = [1, 1]} : vector<8x384xf32> to vector<8x32xf32>
    %266 = arith.truncf %263 : vector<8x32xf32> to vector<8x32xbf16>
    %267 = arith.truncf %264 : vector<8x32xf32> to vector<8x32xbf16>
    %cst_103 = arith.constant dense<0.000000e+00> : vector<8x8xf32>
    %268 = tpu.matmul %266, %267, %cst_103 {dimension_numbers = #tpu.dot_dimension_numbers<[1], [1], [0], [0], [0, 0, 1, 0], [], []>} : vector<8x32xbf16>, vector<8x32xbf16>, vector<8x8xf32> -> vector<8x8xf32>
    %cst_104 = arith.constant 0.176776692 : f32
    %269 = vector.broadcast %cst_104 : f32 to vector<8x8xf32>
    %270 = arith.mulf %268, %269 : vector<8x8xf32>
    %cst_105 = arith.constant dense<0xFF800000> : vector<8xf32>
    %271 = vector.multi_reduction <maximumf>, %270, %cst_105 [1] : vector<8x8xf32> to vector<8xf32>
    %272 = vector.shape_cast %271 : vector<8xf32> to vector<8x1xf32>
    %273 = vector.broadcast %272 : vector<8x1xf32> to vector<8x8xf32>
    %274 = arith.subf %270, %273 : vector<8x8xf32>
    %275 = math.exp %274 : vector<8x8xf32>
    %cst_106 = arith.constant dense<0.000000e+00> : vector<8xf32>
    %276 = vector.multi_reduction <add>, %275, %cst_106 [1] : vector<8x8xf32> to vector<8xf32>
    %277 = vector.shape_cast %276 : vector<8xf32> to vector<8x1xf32>
    %278 = tpu.reciprocal %277 {approx = true} : vector<8x1xf32> -> vector<8x1xf32>
    %279 = vector.broadcast %278 : vector<8x1xf32> to vector<8x8xf32>
    %280 = arith.mulf %275, %279 : vector<8x8xf32>
    %281 = arith.truncf %280 : vector<8x8xf32> to vector<8x8xbf16>
    %282 = arith.truncf %265 : vector<8x32xf32> to vector<8x32xbf16>
    %cst_107 = arith.constant dense<0.000000e+00> : vector<8x32xf32>
    %283 = tpu.matmul %281, %282, %cst_107 {dimension_numbers = #tpu.dot_dimension_numbers<[1], [0], [0], [1], [0, 0, 1, 1], [], []>} : vector<8x8xbf16>, vector<8x32xbf16>, vector<8x32xf32> -> vector<8x32xf32>
    %284 = vector.extract_strided_slice %220 {offsets = [0, 96], sizes = [8, 32], strides = [1, 1]} : vector<8x384xf32> to vector<8x32xf32>
    %285 = vector.extract_strided_slice %220 {offsets = [0, 224], sizes = [8, 32], strides = [1, 1]} : vector<8x384xf32> to vector<8x32xf32>
    %286 = vector.extract_strided_slice %220 {offsets = [0, 352], sizes = [8, 32], strides = [1, 1]} : vector<8x384xf32> to vector<8x32xf32>
    %287 = arith.truncf %284 : vector<8x32xf32> to vector<8x32xbf16>
    %288 = arith.truncf %285 : vector<8x32xf32> to vector<8x32xbf16>
    %cst_108 = arith.constant dense<0.000000e+00> : vector<8x8xf32>
    %289 = tpu.matmul %287, %288, %cst_108 {dimension_numbers = #tpu.dot_dimension_numbers<[1], [1], [0], [0], [0, 0, 1, 0], [], []>} : vector<8x32xbf16>, vector<8x32xbf16>, vector<8x8xf32> -> vector<8x8xf32>
    %cst_109 = arith.constant 0.176776692 : f32
    %290 = vector.broadcast %cst_109 : f32 to vector<8x8xf32>
    %291 = arith.mulf %289, %290 : vector<8x8xf32>
    %cst_110 = arith.constant dense<0xFF800000> : vector<8xf32>
    %292 = vector.multi_reduction <maximumf>, %291, %cst_110 [1] : vector<8x8xf32> to vector<8xf32>
    %293 = vector.shape_cast %292 : vector<8xf32> to vector<8x1xf32>
    %294 = vector.broadcast %293 : vector<8x1xf32> to vector<8x8xf32>
    %295 = arith.subf %291, %294 : vector<8x8xf32>
    %296 = math.exp %295 : vector<8x8xf32>
    %cst_111 = arith.constant dense<0.000000e+00> : vector<8xf32>
    %297 = vector.multi_reduction <add>, %296, %cst_111 [1] : vector<8x8xf32> to vector<8xf32>
    %298 = vector.shape_cast %297 : vector<8xf32> to vector<8x1xf32>
    %299 = tpu.reciprocal %298 {approx = true} : vector<8x1xf32> -> vector<8x1xf32>
    %300 = vector.broadcast %299 : vector<8x1xf32> to vector<8x8xf32>
    %301 = arith.mulf %296, %300 : vector<8x8xf32>
    %302 = arith.truncf %301 : vector<8x8xf32> to vector<8x8xbf16>
    %303 = arith.truncf %286 : vector<8x32xf32> to vector<8x32xbf16>
    %cst_112 = arith.constant dense<0.000000e+00> : vector<8x32xf32>
    %304 = tpu.matmul %302, %303, %cst_112 {dimension_numbers = #tpu.dot_dimension_numbers<[1], [0], [0], [1], [0, 0, 1, 1], [], []>} : vector<8x8xbf16>, vector<8x32xbf16>, vector<8x32xf32> -> vector<8x32xf32>
    %305 = tpu.concatenate %241, %262, %283, %304 in 1 : vector<8x32xf32>, vector<8x32xf32>, vector<8x32xf32>, vector<8x32xf32> -> vector<8x128xf32>
    %306 = arith.truncf %305 : vector<8x128xf32> to vector<8x128xbf16>
    %c1_113 = arith.constant 1 : index
    %c0_114 = arith.constant 0 : index
    %c0_115 = arith.constant 0 : index
    %307 = vector.load %arg7[%c1_113, %c0_114, %c0_115] : memref<2x128x128xbf16, #tpu.memory_space<vmem>>, vector<1x128x128xbf16>
    %308 = vector.shape_cast %307 : vector<1x128x128xbf16> to vector<128x128xbf16>
    %cst_116 = arith.constant dense<0.000000e+00> : vector<8x128xf32>
    %309 = tpu.matmul %306, %308, %cst_116 {dimension_numbers = #tpu.dot_dimension_numbers<[1], [0], [0], [1], [0, 0, 1, 1], [], []>} : vector<8x128xbf16>, vector<128x128xbf16>, vector<8x128xf32> -> vector<8x128xf32>
    %c1_117 = arith.constant 1 : index
    %c0_118 = arith.constant 0 : index
    %c0_119 = arith.constant 0 : index
    %310 = vector.load %arg8[%c1_117, %c0_118, %c0_119] : memref<2x1x128xf32, #tpu.memory_space<vmem>>, vector<1x1x128xf32>
    %311 = vector.shape_cast %310 : vector<1x1x128xf32> to vector<1x128xf32>
    %312 = vector.broadcast %311 : vector<1x128xf32> to vector<8x128xf32>
    %313 = arith.addf %309, %312 : vector<8x128xf32>
    %314 = arith.addf %313, %212 : vector<8x128xf32>
    %c1_120 = arith.constant 1 : index
    %c0_121 = arith.constant 0 : index
    %c0_122 = arith.constant 0 : index
    %315 = vector.load %arg9[%c1_120, %c0_121, %c0_122] : memref<2x1x128xf32, #tpu.memory_space<vmem>>, vector<1x1x128xf32>
    %316 = vector.shape_cast %315 : vector<1x1x128xf32> to vector<1x128xf32>
    %c1_123 = arith.constant 1 : index
    %c0_124 = arith.constant 0 : index
    %c0_125 = arith.constant 0 : index
    %317 = vector.load %arg10[%c1_123, %c0_124, %c0_125] : memref<2x1x128xf32, #tpu.memory_space<vmem>>, vector<1x1x128xf32>
    %318 = vector.shape_cast %317 : vector<1x1x128xf32> to vector<1x128xf32>
    %cst_126 = arith.constant dense<0.000000e+00> : vector<8xf32>
    %319 = vector.multi_reduction <add>, %314, %cst_126 [1] : vector<8x128xf32> to vector<8xf32>
    %320 = vector.shape_cast %319 : vector<8xf32> to vector<8x1xf32>
    %cst_127 = arith.constant 1.280000e+02 : f32
    %321 = vector.broadcast %cst_127 : f32 to vector<8x1xf32>
    %322 = arith.divf %320, %321 : vector<8x1xf32>
    %323 = vector.broadcast %322 : vector<8x1xf32> to vector<8x128xf32>
    %324 = arith.subf %314, %323 : vector<8x128xf32>
    %325 = arith.mulf %324, %324 : vector<8x128xf32>
    %cst_128 = arith.constant dense<0.000000e+00> : vector<8xf32>
    %326 = vector.multi_reduction <add>, %325, %cst_128 [1] : vector<8x128xf32> to vector<8xf32>
    %327 = vector.shape_cast %326 : vector<8xf32> to vector<8x1xf32>
    %cst_129 = arith.constant 1.280000e+02 : f32
    %328 = vector.broadcast %cst_129 : f32 to vector<8x1xf32>
    %329 = arith.divf %327, %328 : vector<8x1xf32>
    %330 = vector.broadcast %322 : vector<8x1xf32> to vector<8x128xf32>
    %331 = arith.subf %314, %330 : vector<8x128xf32>
    %cst_130 = arith.constant 9.99999996E-13 : f32
    %332 = vector.broadcast %cst_130 : f32 to vector<8x1xf32>
    %333 = arith.addf %329, %332 : vector<8x1xf32>
    %334 = math.rsqrt %333 : vector<8x1xf32>
    %335 = vector.broadcast %334 : vector<8x1xf32> to vector<8x128xf32>
    %336 = arith.mulf %331, %335 : vector<8x128xf32>
    %337 = vector.broadcast %316 : vector<1x128xf32> to vector<8x128xf32>
    %338 = arith.mulf %336, %337 : vector<8x128xf32>
    %339 = vector.broadcast %318 : vector<1x128xf32> to vector<8x128xf32>
    %340 = arith.addf %338, %339 : vector<8x128xf32>
    %341 = arith.truncf %340 : vector<8x128xf32> to vector<8x128xbf16>
    %c1_131 = arith.constant 1 : index
    %c0_132 = arith.constant 0 : index
    %c0_133 = arith.constant 0 : index
    %342 = vector.load %arg11[%c1_131, %c0_132, %c0_133] : memref<2x128x512xbf16, #tpu.memory_space<vmem>>, vector<1x128x512xbf16>
    %343 = vector.shape_cast %342 : vector<1x128x512xbf16> to vector<128x512xbf16>
    %cst_134 = arith.constant dense<0.000000e+00> : vector<8x512xf32>
    %344 = tpu.matmul %341, %343, %cst_134 {dimension_numbers = #tpu.dot_dimension_numbers<[1], [0], [0], [1], [0, 0, 1, 1], [], []>} : vector<8x128xbf16>, vector<128x512xbf16>, vector<8x512xf32> -> vector<8x512xf32>
    %c1_135 = arith.constant 1 : index
    %c0_136 = arith.constant 0 : index
    %c0_137 = arith.constant 0 : index
    %345 = vector.load %arg12[%c1_135, %c0_136, %c0_137] : memref<2x1x512xf32, #tpu.memory_space<vmem>>, vector<1x1x512xf32>
    %346 = vector.shape_cast %345 : vector<1x1x512xf32> to vector<1x512xf32>
    %347 = vector.broadcast %346 : vector<1x512xf32> to vector<8x512xf32>
    %348 = arith.addf %344, %347 : vector<8x512xf32>
    %cst_138 = arith.constant 5.000000e-01 : f32
    %349 = vector.broadcast %cst_138 : f32 to vector<8x512xf32>
    %350 = arith.mulf %349, %348 : vector<8x512xf32>
    %cst_139 = arith.constant 4.471500e-02 : f32
    %351 = vector.broadcast %cst_139 : f32 to vector<8x512xf32>
    %352 = arith.mulf %351, %348 : vector<8x512xf32>
    %353 = arith.mulf %352, %348 : vector<8x512xf32>
    %354 = arith.mulf %353, %348 : vector<8x512xf32>
    %355 = arith.addf %348, %354 : vector<8x512xf32>
    %cst_140 = arith.constant 0.797884583 : f32
    %356 = vector.broadcast %cst_140 : f32 to vector<8x512xf32>
    %357 = arith.mulf %356, %355 : vector<8x512xf32>
    %358 = math.tanh %357 : vector<8x512xf32>
    %cst_141 = arith.constant 1.000000e+00 : f32
    %359 = vector.broadcast %cst_141 : f32 to vector<8x512xf32>
    %360 = arith.addf %359, %358 : vector<8x512xf32>
    %361 = arith.mulf %350, %360 : vector<8x512xf32>
    %362 = arith.truncf %361 : vector<8x512xf32> to vector<8x512xbf16>
    %c1_142 = arith.constant 1 : index
    %c0_143 = arith.constant 0 : index
    %c0_144 = arith.constant 0 : index
    %363 = vector.load %arg13[%c1_142, %c0_143, %c0_144] : memref<2x512x128xbf16, #tpu.memory_space<vmem>>, vector<1x512x128xbf16>
    %364 = vector.shape_cast %363 : vector<1x512x128xbf16> to vector<512x128xbf16>
    %cst_145 = arith.constant dense<0.000000e+00> : vector<8x128xf32>
    %365 = tpu.matmul %362, %364, %cst_145 {dimension_numbers = #tpu.dot_dimension_numbers<[1], [0], [0], [1], [0, 0, 1, 1], [], []>} : vector<8x512xbf16>, vector<512x128xbf16>, vector<8x128xf32> -> vector<8x128xf32>
    %c1_146 = arith.constant 1 : index
    %c0_147 = arith.constant 0 : index
    %c0_148 = arith.constant 0 : index
    %366 = vector.load %arg14[%c1_146, %c0_147, %c0_148] : memref<2x1x128xf32, #tpu.memory_space<vmem>>, vector<1x1x128xf32>
    %367 = vector.shape_cast %366 : vector<1x1x128xf32> to vector<1x128xf32>
    %368 = vector.broadcast %367 : vector<1x128xf32> to vector<8x128xf32>
    %369 = arith.addf %365, %368 : vector<8x128xf32>
    %370 = arith.addf %369, %340 : vector<8x128xf32>
    %c1_149 = arith.constant 1 : index
    %c0_150 = arith.constant 0 : index
    %c0_151 = arith.constant 0 : index
    %371 = vector.load %arg15[%c1_149, %c0_150, %c0_151] : memref<2x1x128xf32, #tpu.memory_space<vmem>>, vector<1x1x128xf32>
    %372 = vector.shape_cast %371 : vector<1x1x128xf32> to vector<1x128xf32>
    %c1_152 = arith.constant 1 : index
    %c0_153 = arith.constant 0 : index
    %c0_154 = arith.constant 0 : index
    %373 = vector.load %arg16[%c1_152, %c0_153, %c0_154] : memref<2x1x128xf32, #tpu.memory_space<vmem>>, vector<1x1x128xf32>
    %374 = vector.shape_cast %373 : vector<1x1x128xf32> to vector<1x128xf32>
    %cst_155 = arith.constant dense<0.000000e+00> : vector<8xf32>
    %375 = vector.multi_reduction <add>, %370, %cst_155 [1] : vector<8x128xf32> to vector<8xf32>
    %376 = vector.shape_cast %375 : vector<8xf32> to vector<8x1xf32>
    %cst_156 = arith.constant 1.280000e+02 : f32
    %377 = vector.broadcast %cst_156 : f32 to vector<8x1xf32>
    %378 = arith.divf %376, %377 : vector<8x1xf32>
    %379 = vector.broadcast %378 : vector<8x1xf32> to vector<8x128xf32>
    %380 = arith.subf %370, %379 : vector<8x128xf32>
    %381 = arith.mulf %380, %380 : vector<8x128xf32>
    %cst_157 = arith.constant dense<0.000000e+00> : vector<8xf32>
    %382 = vector.multi_reduction <add>, %381, %cst_157 [1] : vector<8x128xf32> to vector<8xf32>
    %383 = vector.shape_cast %382 : vector<8xf32> to vector<8x1xf32>
    %cst_158 = arith.constant 1.280000e+02 : f32
    %384 = vector.broadcast %cst_158 : f32 to vector<8x1xf32>
    %385 = arith.divf %383, %384 : vector<8x1xf32>
    %386 = vector.broadcast %378 : vector<8x1xf32> to vector<8x128xf32>
    %387 = arith.subf %370, %386 : vector<8x128xf32>
    %cst_159 = arith.constant 9.99999996E-13 : f32
    %388 = vector.broadcast %cst_159 : f32 to vector<8x1xf32>
    %389 = arith.addf %385, %388 : vector<8x1xf32>
    %390 = math.rsqrt %389 : vector<8x1xf32>
    %391 = vector.broadcast %390 : vector<8x1xf32> to vector<8x128xf32>
    %392 = arith.mulf %387, %391 : vector<8x128xf32>
    %393 = vector.broadcast %372 : vector<1x128xf32> to vector<8x128xf32>
    %394 = arith.mulf %392, %393 : vector<8x128xf32>
    %395 = vector.broadcast %374 : vector<1x128xf32> to vector<8x128xf32>
    %396 = arith.addf %394, %395 : vector<8x128xf32>
    %397 = vector.extract_strided_slice %396 {offsets = [0, 0], sizes = [1, 128], strides = [1, 1]} : vector<8x128xf32> to vector<1x128xf32>
    %398 = arith.truncf %397 : vector<1x128xf32> to vector<1x128xbf16>
    %c0_160 = arith.constant 0 : index
    %c0_161 = arith.constant 0 : index
    %399 = vector.load %arg17[%c0_160, %c0_161] : memref<128x128xbf16, #tpu.memory_space<vmem>>, vector<128x128xbf16>
    %cst_162 = arith.constant dense<0.000000e+00> : vector<1x128xf32>
    %400 = tpu.matmul %398, %399, %cst_162 {dimension_numbers = #tpu.dot_dimension_numbers<[1], [0], [0], [1], [0, 0, 1, 1], [], []>} : vector<1x128xbf16>, vector<128x128xbf16>, vector<1x128xf32> -> vector<1x128xf32>
    %c0_163 = arith.constant 0 : index
    %c0_164 = arith.constant 0 : index
    %401 = vector.load %arg18[%c0_163, %c0_164] : memref<1x128xf32, #tpu.memory_space<vmem>>, vector<1x128xf32>
    %402 = arith.addf %400, %401 : vector<1x128xf32>
    %cst_165 = arith.constant 0.000000e+00 : f32
    %403 = vector.broadcast %cst_165 : f32 to vector<1x128xf32>
    %404 = arith.maximumf %402, %403 : vector<1x128xf32>
    %c0_166 = arith.constant 0 : index
    %c0_167 = arith.constant 0 : index
    %c0_168 = arith.constant 0 : index
    %405 = vector.load %arg19[%c0_166, %c0_167, %c0_168] : memref<1x1x128xf32, #tpu.memory_space<vmem>>, vector<1x1x128xf32>
    %406 = vector.shape_cast %405 : vector<1x1x128xf32> to vector<1x128xf32>
    %407 = vector.shape_cast %404 : vector<1x128xf32> to vector<1x1x128xf32>
    tpu.vector_store %arg19[%c0_166, %c0_167, %c0_168], %407 {strides = array<i32>} : memref<1x1x128xf32, #tpu.memory_space<vmem>>, vector<1x1x128xf32>,
    return
  }
  func.func @transform_0(%arg0: i32) -> (i32, i32, i32) {
    %c0_i32 = arith.constant 0 : i32
    %c0_i32_0 = arith.constant 0 : i32
    %c0_i32_1 = arith.constant 0 : i32
    return %arg0, %c0_i32, %c0_i32_0 : i32, i32, i32
  }
  func.func @transform_1(%arg0: i32) -> (i32, i32, i32) {
    %c0_i32 = arith.constant 0 : i32
    %c0_i32_0 = arith.constant 0 : i32
    %c0_i32_1 = arith.constant 0 : i32
    %c0_i32_2 = arith.constant 0 : i32
    return %c0_i32, %c0_i32_0, %c0_i32_1 : i32, i32, i32
  }
  func.func @transform_2(%arg0: i32) -> (i32, i32) {
    %c0_i32 = arith.constant 0 : i32
    %c0_i32_0 = arith.constant 0 : i32
    %c0_i32_1 = arith.constant 0 : i32
    return %c0_i32, %c0_i32_0 : i32, i32
  }
  func.func @transform_3(%arg0: i32) -> (i32, i32) {
    %c0_i32 = arith.constant 0 : i32
    %c0_i32_0 = arith.constant 0 : i32
    %c0_i32_1 = arith.constant 0 : i32
    return %c0_i32, %c0_i32_0 : i32, i32
  }
  func.func @transform_4(%arg0: i32) -> (i32, i32, i32) {
    %c0_i32 = arith.constant 0 : i32
    %c0_i32_0 = arith.constant 0 : i32
    %c0_i32_1 = arith.constant 0 : i32
    %c0_i32_2 = arith.constant 0 : i32
    return %c0_i32, %c0_i32_0, %c0_i32_1 : i32, i32, i32
  }
  func.func @transform_5(%arg0: i32) -> (i32, i32, i32) {
    %c0_i32 = arith.constant 0 : i32
    %c0_i32_0 = arith.constant 0 : i32
    %c0_i32_1 = arith.constant 0 : i32
    %c0_i32_2 = arith.constant 0 : i32
    return %c0_i32, %c0_i32_0, %c0_i32_1 : i32, i32, i32
  }
  func.func @transform_6(%arg0: i32) -> (i32, i32, i32) {
    %c0_i32 = arith.constant 0 : i32
    %c0_i32_0 = arith.constant 0 : i32
    %c0_i32_1 = arith.constant 0 : i32
    %c0_i32_2 = arith.constant 0 : i32
    return %c0_i32, %c0_i32_0, %c0_i32_1 : i32, i32, i32
  }
  func.func @transform_7(%arg0: i32) -> (i32, i32, i32) {
    %c0_i32 = arith.constant 0 : i32
    %c0_i32_0 = arith.constant 0 : i32
    %c0_i32_1 = arith.constant 0 : i32
    %c0_i32_2 = arith.constant 0 : i32
    return %c0_i32, %c0_i32_0, %c0_i32_1 : i32, i32, i32
  }
  func.func @transform_8(%arg0: i32) -> (i32, i32, i32) {
    %c0_i32 = arith.constant 0 : i32
    %c0_i32_0 = arith.constant 0 : i32
    %c0_i32_1 = arith.constant 0 : i32
    %c0_i32_2 = arith.constant 0 : i32
    return %c0_i32, %c0_i32_0, %c0_i32_1 : i32, i32, i32
  }
  func.func @transform_9(%arg0: i32) -> (i32, i32, i32) {
    %c0_i32 = arith.constant 0 : i32
    %c0_i32_0 = arith.constant 0 : i32
    %c0_i32_1 = arith.constant 0 : i32
    %c0_i32_2 = arith.constant 0 : i32
    return %c0_i32, %c0_i32_0, %c0_i32_1 : i32, i32, i32
  }
  func.func @transform_10(%arg0: i32) -> (i32, i32, i32) {
    %c0_i32 = arith.constant 0 : i32
    %c0_i32_0 = arith.constant 0 : i32
    %c0_i32_1 = arith.constant 0 : i32
    %c0_i32_2 = arith.constant 0 : i32
    return %c0_i32, %c0_i32_0, %c0_i32_1 : i32, i32, i32
  }
  func.func @transform_11(%arg0: i32) -> (i32, i32, i32) {
    %c0_i32 = arith.constant 0 : i32
    %c0_i32_0 = arith.constant 0 : i32
    %c0_i32_1 = arith.constant 0 : i32
    %c0_i32_2 = arith.constant 0 : i32
    return %c0_i32, %c0_i32_0, %c0_i32_1 : i32, i32, i32
  }
  func.func @transform_12(%arg0: i32) -> (i32, i32, i32) {
    %c0_i32 = arith.constant 0 : i32
    %c0_i32_0 = arith.constant 0 : i32
    %c0_i32_1 = arith.constant 0 : i32
    %c0_i32_2 = arith.constant 0 : i32
    return %c0_i32, %c0_i32_0, %c0_i32_1 : i32, i32, i32
  }
  func.func @transform_13(%arg0: i32) -> (i32, i32, i32) {
    %c0_i32 = arith.constant 0 : i32
    %c0_i32_0 = arith.constant 0 : i32
    %c0_i32_1 = arith.constant 0 : i32
    %c0_i32_2 = arith.constant 0 : i32
    return %c0_i32, %c0_i32_0, %c0_i32_1 : i32, i32, i32
  }
  func.func @transform_14(%arg0: i32) -> (i32, i32, i32) {
    %c0_i32 = arith.constant 0 : i32
    %c0_i32_0 = arith.constant 0 : i32
    %c0_i32_1 = arith.constant 0 : i32
    %c0_i32_2 = arith.constant 0 : i32
    return %c0_i32, %c0_i32_0, %c0_i32_1 : i32, i32, i32
  }
  func.func @transform_15(%arg0: i32) -> (i32, i32, i32) {
    %c0_i32 = arith.constant 0 : i32
    %c0_i32_0 = arith.constant 0 : i32
    %c0_i32_1 = arith.constant 0 : i32
    %c0_i32_2 = arith.constant 0 : i32
    return %c0_i32, %c0_i32_0, %c0_i32_1 : i32, i32, i32
  }
  func.func @transform_16(%arg0: i32) -> (i32, i32) {
    %c0_i32 = arith.constant 0 : i32
    %c0_i32_0 = arith.constant 0 : i32
    %c0_i32_1 = arith.constant 0 : i32
    return %c0_i32, %c0_i32_0 : i32, i32
  }
  func.func @transform_17(%arg0: i32) -> (i32, i32) {
    %c0_i32 = arith.constant 0 : i32
    %c0_i32_0 = arith.constant 0 : i32
    %c0_i32_1 = arith.constant 0 : i32
    return %c0_i32, %c0_i32_0 : i32, i32
  }
  func.func @transform_18(%arg0: i32) -> (i32, i32, i32) {
    %c0_i32 = arith.constant 0 : i32
    %c0_i32_0 = arith.constant 0 : i32
    %c0_i32_1 = arith.constant 0 : i32
    return %arg0, %c0_i32, %c0_i32_0 : i32, i32, i32
  }
}

</mosaic_0001>

<bundles_post_ra>
// kernel: bio_clinical_bert_encoder.1
= control target key start
LH: loop header
LB: loop body
LE: loop exit
PB: predicated region body
PF: predicated region fallthrough
CT: control target
= control target key end

     0   :  { %s5198_s0 = inlined_call_operand.vmem [shape: f32[2,8,128], index: 0, kind: input, shape index: {}]   ;;  %s5199_s1 = inlined_call_operand.vmem [shape: f32[1,8,128], index: 1, kind: input, shape index: {}]   ;;  %s5200_s2 = inlined_call_operand.vmem [shape: f32[1,128], index: 2, kind: input, shape index: {}]   ;;  %s5201_s3 = inlined_call_operand.vmem [shape: f32[1,128], index: 3, kind: input, shape index: {}]   ;;  %s5202_s4 = inlined_call_operand.hbm [shape: bf16[2,128,384], index: 4, kind: input, shape index: {}]   ;;  %s5203_s5 = inlined_call_operand.vmem [shape: f32[2,1,384], index: 5, kind: input, shape index: {}]   ;;  %s5204_s6 = inlined_call_operand.vmem [shape: bf16[2,128,128], index: 6, kind: input, shape index: {}]   ;;  %s5205_s7 = inlined_call_operand.vmem [shape: f32[2,1,128], index: 7, kind: input, shape index: {}]   ;;  %s5206_s8 = inlined_call_operand.vmem [shape: f32[2,1,128], index: 8, kind: input, shape index: {}]   ;;  %s5207_s9 = inlined_call_operand.vmem [shape: f32[2,1,128], index: 9, kind: input, shape index: {}]   ;;  %s5208_s10 = inlined_call_operand.hbm [shape: bf16[2,128,512], index: 10, kind: input, shape index: {}]   ;;  %s5209_s11 = inlined_call_operand.vmem [shape: f32[2,1,512], index: 11, kind: input, shape index: {}]   ;;  %s5210_s12 = inlined_call_operand.hbm [shape: bf16[2,512,128], index: 12, kind: input, shape index: {}]   ;;  %s5211_s13 = inlined_call_operand.vmem [shape: f32[2,1,128], index: 13, kind: input, shape index: {}]   ;;  %s5212_s14 = inlined_call_operand.vmem [shape: f32[2,1,128], index: 14, kind: input, shape index: {}]   ;;  %s5213_s15 = inlined_call_operand.vmem [shape: f32[2,1,128], index: 15, kind: input, shape index: {}]   ;;  %s5214_s16 = inlined_call_operand.hbm [shape: bf16[128,128], index: 16, kind: input, shape index: {}]   ;;  %s5215_s17 = inlined_call_operand.vmem [shape: f32[1,128], index: 17, kind: input, shape index: {}]   ;;  %s5216_s18 = inlined_call_operand.hbm [shape: f32[2,1,128], index: 18, kind: output, shape index: {}]  }
   0x1   :  { %5227 = sst [smem:[#allocation23_spill]] %s5198_s0 }
   0x2   :  { %5228 = sst [smem:[#allocation24_spill]] %s5199_s1 }
   0x3   :  { %5229 = sst [smem:[#allocation25_spill]] %s5200_s2 }
   0x4   :  { %5230 = sst [smem:[#allocation26_spill]] %s5202_s4 }
   0x5   :  { %5231 = sst [smem:[#allocation27_spill]] %s5208_s10 }
   0x6   :  { %5232 = sst [smem:[#allocation28_spill]] %s5215_s17 }
   0x7   :  { %5233 = sst [smem:[#allocation29_spill]] %s5216_s18 }
   0x8   :  { %23 = vsyncpa [#allocation3], 0 }
   0x9   :  { %24 = vsyncpa [#allocation6], 0 }
   0xa   :  { %25 = vsyncpa [#allocation9], 0 }
   0xb   :  { %26 = vsyncpa [#allocation4], 0 }
   0xc   :  { %28 = vsyncpa [#allocation4 + $0x1], 0  ;;  %s4813_s27 = smov 0   ;;  %s4815_s28 = smov 0  }
   0xd   :  { %s4817_s29 = smov 0   ;;  %s4819_s30 = smov 0  }
   0xe LB: > { %5234 = sst [smem:[#allocation15_spill]] %s4690_s27  ;;  %s4834_s0 = sadd.s32 4294967295, %s4702_s30   ;;  %s4702_s30 = sphi %s4819_s30, %s5258_s30   ;;  %s4698_s29 = sphi %s4817_s29, %s5261_s29   ;;  %s4694_s28 = sphi %s4815_s28, %s5260_s28   ;;  %s4690_s27 = sphi %s4813_s27, %s5259_s27  }
   0xf   : > { %5235 = sst [smem:[#allocation16_spill]] %s4694_s28  ;;  %s3289_s19 = sadd.s32 4294967294, %s4702_s30  }
  0x10   : > { %5236 = sst [smem:[#allocation17_spill]] %s4698_s29  ;;  %s4838_s1 = sadd.s32 1, %s4702_s30  }
  0x11   : > { %5237 = sst [smem:[#allocation18_spill]] %s4702_s30  ;;  %s424_s20 = sadd.s32 1, %s4698_s29 }
  0x12   : > { %5238 = sst [smem:[#allocation19_spill]] %s4838_s1  ;;  %s421_s21 = ssub.s32 %s4702_s30, %s4838_s1 }
  0x13   : > { %p434_p0 = scmp.ne.s32.totalorder %s4698_s29, %s4694_s28  ;;  %p422_p1 = scmp.eq.s32.totalorder %s421_s21, 0 }
  0x14   : > { %p435_p2 = scmp.eq.s32.totalorder %s4834_s0, 1  ;;  %p440_p3 = scmp.ne.s32.totalorder %s4694_s28, %s4690_s27 }
  0x15   : > { %p441_p4 = scmp.eq.s32.totalorder %s3289_s19, 1  ;;  %p3290_p7 = scmp.ge.s32.totalorder %s4702_s30, 1 }
  0x16   : > { %s4849_s22 = scalar_select %p422_p1, %s4698_s29, %s424_s20  }
  0x17   : > { %p4851_p5 = por %p435_p2, %p434_p0  ;;  %p4855_p6 = por %p441_p4, %p440_p3 }
  0x18   : > { %5239 = sst [smem:[#allocation20_spill]] %s4849_s22  ;;  %p448_p8 = scmp.lt.s32.totalorder %s4702_s30, 3 }
  0x19   : > { %s5240_s2 = scalar_select %p4851_p5, 1, 0 }
  0x1a   : > { %s5242_s23 = scalar_select %p4855_p6, 1, 0 }
  0x1b   : > { %5241 = sst [smem:[#allocation21_spill]] %s5240_s2  ;;  %p4379_p9 = scmp.eq.s32.totalorder %s4834_s0, 0 }
  0x1c   : > { %5243 = sst [smem:[#allocation22_spill]] %s5242_s23  ;;  %p4862_p10 = pnand %p3290_p7, %p448_p8 }
  0x1d   : > { %s5245_s10 = sld [smem:[#allocation27_spill]]  ;;  %s4704_s20 = smov [#allocation5]  }
  0x1e   : > { %p4362_p11 = pneg %p4862_p10  ;;  %s499_s21 = sshll.u32 %s4704_s20, 4  ;;  %s500_s21 = int_to_ptr.vmem [resolvable:$true] %s499_s21 }
  0x1f   : > { %s5247_s4 = sld [smem:[#allocation26_spill]]  ;;  %s4705_s25 = smov 256  }
  0x20   : > { %p4873_p12 = pnand %p4379_p9, %p4362_p11  ;;  %s4706_s26 = smov 16  }
  0x21   : > { %s4708_s27 = smov 192   ;;  %s4709_s30 = smov 12  }
  0x22   : > { %s514_s29 = sshll.u32 %s5210_s12, 4  ;;  %s4710_s1 = smov [#allocation7]   ;;  %s515_s29 = int_to_ptr.hbm [resolvable:$true] %s514_s29 }
  0x23   : > { %s497_s19 = sshll.u32 %s5245_s10, 4  ;;  %s4707_s10 = smov [#allocation2]   ;;  %s498_s19 = int_to_ptr.hbm [resolvable:$true] %s497_s19 }
  0x24   : > { %4368 = dma.hbm_to_vmem [thread:$0]  (!%p4873_p12), %s498_s19, 8192, %s500_s21, [#allocation6], %s4705_s25, %s4705_s25, %s4706_s26  }
  0x25   : > { %s468_s23 = sshll.u32 %s5247_s4, 4  ;;  %s470_s20 = sshll.u32 %s4707_s10, 4  ;;  %s469_s23 = int_to_ptr.hbm [resolvable:$true] %s468_s23  ;;  %s471_s20 = int_to_ptr.vmem [resolvable:$true] %s470_s20 }
  0x26   : > { %4365 = dma.hbm_to_vmem [thread:$0]  (!%p4873_p12), %s469_s23, 6144, %s471_s20, [#allocation3], %s4708_s27, %s4708_s27, %s4709_s30  }
  0x27   : > { %s516_s4 = sshll.u32 %s4710_s1, 4  ;;  %s537_s19 = sshll.u32 %s5214_s16, 4  ;;  %s517_s4 = int_to_ptr.vmem [resolvable:$true] %s516_s4  ;;  %s538_s19 = int_to_ptr.hbm [resolvable:$true] %s537_s19 }
  0x28   : > { %s4711_s21 = smov 64   ;;  %s4712_s10 = smov 4  }
  0x29   : > { %4371 = dma.hbm_to_vmem [thread:$0]  (!%p4873_p12), %s515_s29, 8192, %s517_s4, [#allocation6], %s4711_s21, %s4711_s21, %s4712_s10  }
  0x2a   : > { %s4713_s25 = smov [#allocation8]   ;;  %565 = sbr.rel (%p4862_p10) target bundleno = 4514 (0x11a2), region = 92 }
  0x2b   : > { %s539_s26 = sshll.u32 %s4713_s25, 4  ;;  %s540_s26 = int_to_ptr.vmem [resolvable:$true] %s539_s26 }
  0x2c   : > { %4374 = dma.hbm_to_vmem [thread:$0]  (!%p4873_p12), %s538_s19, 1024, %s540_s26, [#allocation9], %s4711_s21, %s4711_s21, %s4712_s10  }
  0x2f   : > { %4673 = dma.done.wait (%p4379_p9), [#allocation3], 6144  }
  0x30   : > { %4675 = vsyncadd (%p4379_p9), [#allocation3], 4294961152 }
  0x31   : > { %4677 = dma.done.wait (%p4379_p9), [#allocation6], 16384  }
  0x32   : > { %4679 = vsyncadd (%p4379_p9), [#allocation6], 4294950912 }
  0x33   : > { %4681 = dma.done.wait (%p4379_p9), [#allocation9], 1024  }
  0x34   : > { %4683 = vsyncadd (%p4379_p9), [#allocation9], 4294966272  ;;  %p633_p13 = scmp.lt.s32.totalorder %s4834_s0, 1  ;;  %s5248_s28 = sld [smem:[#allocation23_spill]]  ;;  %v4714_v3 = vmov 128.0   ;;  %vm888_vm4 = vcmask 261120  }
  0x35   : > { %s5249_s23 = sld [smem:[#allocation24_spill]]  ;;  %4448 = vrcp.f32 %v4714_v3  ;;  %v3388_v4 = vld [vmem:[#allocation2 + $0xa8] sm:$0xf]  ;;  %v4166_v5 = vld [vmem:[#allocation2 + $0xb0] sm:$0xf0]  ;;  %s4715_s25 = smov 64  }
  0x36   : > { %s634_s4 = scalar_select %p633_p13, %s4834_s0, 1  ;;  %v4165_v6 = vld [vmem:[#allocation2 + $0xac] sm:$0xf]  ;;  %v3389_v7 = vor.u32 %v4166_v5, %v3388_v4  ;;  %v3390_v8 = vld [vmem:[#allocation2 + $0xb4] sm:$0xf0]  ;;  %vm926_vm5 = vcmask 1043456  }
  0x37   : > { %v3396_v9 = vld [vmem:[#allocation2 + $0xb0] sm:$0xf]  ;;  %v4167_v10 = vld [vmem:[#allocation2 + $0xb8] sm:$0xf0]  ;;  %v3393_v11 = vor.u32 %v4165_v6, %v3390_v8  ;;  %v4162_v25 = vld [vmem:[#allocation2 + $0x94] sm:$0xf] }
  0x38   : > { %s3301_s17 = sshll.u32 %s634_s4, 3  ;;  %v3397_v12 = vor.u32 %v4167_v10, %v3396_v9  ;;  %847 = vmatpush.bf16.msra.mxu0 %v3389_v7  ;;  %v3376_v23 = vld [vmem:[#allocation2 + $0x90] sm:$0xf]  ;;  %v4163_v24 = vld [vmem:[#allocation2 + $0x98] sm:$0xf0]  ;;  %s5250_s29 = sld [smem:[#allocation25_spill]] }
  0x39   : > { %860 = vmatpush.bf16.msra.mxu1 %v3393_v11  ;;  %v3377_v26 = vor.u32 %v4163_v24, %v3376_v23  ;;  %v3378_v27 = vld [vmem:[#allocation2 + $0x9c] sm:$0xf0]  ;;  %v3384_v28 = vld [vmem:[#allocation2 + $0x98] sm:$0xf]  ;;  %v4164_v29 = vld [vmem:[#allocation2 + $0xa0] sm:$0xf0] }
  0x3a   : > { %s636_s30 = scalar_lea.vmem %s5248_s28, %s3301_s17  ;;  %873 = vmatpush.bf16.msra.mxu2 %v3397_v12  ;;  %v3381_v30 = vor.u32 %v4162_v25, %v3378_v27  ;;  %v3385_v31 = vor.u32 %v4164_v29, %v3384_v28  ;;  %v3364_v32 = vld [vmem:[#allocation2 + $0x78] sm:$0xf]  ;;  %v4160_v33 = vld [vmem:[#allocation2 + $0x80] sm:$0xf0]  ;;  %v4159_v34 = vld [vmem:[#allocation2 + $0x7c] sm:$0xf] }
  0x3b   : > { %v638_v0 = vld [vmem:[%s636_s30] sm:$0xff]  ;;  %v4449_v13 = vpop.eup %4448  ;;  %v3365_v35 = vor.u32 %v4160_v33, %v3364_v32  ;;  %v3366_v36 = vld [vmem:[#allocation2 + $0x84] sm:$0xf0]  ;;  %v4161_v38 = vld [vmem:[#allocation2 + $0x88] sm:$0xf0]  ;;  %s4716_s26 = smov 96  }
  0x3c   : > { %v639_v1 = vld [vmem:[%s5249_s23] sm:$0xff]  ;;  %v646_v14 = vmul.f32 128.0, %v4449_v13  ;;  %vm650_vm0 = vweird.f32 %v4449_v13  ;;  %848 = vmatpush.bf16.msra.mxu0 %v3377_v26  ;;  %v3369_v39 = vor.u32 %v4159_v34, %v3366_v36  ;;  %v4157_v42 = vld [vmem:[#allocation2 + $0x68] sm:$0xf0]  ;;  %v3354_v45 = vld [vmem:[#allocation2 + $0x6c] sm:$0xf0] }
  0x3d   : > { %v640_v2 = vadd.f32 %v639_v1, %v638_v0  ;;  %861 = vmatpush.bf16.msra.mxu1 %v3381_v30  ;;  %v3372_v37 = vld [vmem:[#allocation2 + $0x80] sm:$0xf]  ;;  %v4156_v43 = vld [vmem:[#allocation2 + $0x64] sm:$0xf]  ;;  %v3360_v46 = vld [vmem:[#allocation2 + $0x68] sm:$0xf] }
  0x3e   : > { %v647_v15 = vsub.f32 1.0, %v646_v14  ;;  %874 = vmatpush.bf16.msra.mxu2 %v3385_v31  ;;  %v3373_v40 = vor.u32 %v4161_v38, %v3372_v37  ;;  %v3352_v41 = vld [vmem:[#allocation2 + $0x60] sm:$0xf]  ;;  %v4158_v47 = vld [vmem:[#allocation2 + $0x70] sm:$0xf0]  ;;  %v3357_v48 = vor.u32 %v4156_v43, %v3354_v45  ;;  %s4717_s4 = smov 32  }
  0x3f   : > { %643 = vadd.xlane.f32.xlu0 %v640_v2  ;;  %v3353_v44 = vor.u32 %v4157_v42, %v3352_v41  ;;  %v3361_v49 = vor.u32 %v4158_v47, %v3360_v46  ;;  %v3340_v50 = vld [vmem:[#allocation2 + $0x48] sm:$0xf]  ;;  %v4154_v51 = vld [vmem:[#allocation2 + $0x50] sm:$0xf0]  ;;  %v4153_v52 = vld [vmem:[#allocation2 + $0x4c] sm:$0xf] }
  0x40   : > { %v648_v16 = vmul.f32 %v4449_v13, %v647_v15  ;;  %849 = vmatpush.bf16.msra.mxu0 %v3365_v35  ;;  %v3341_v53 = vor.u32 %v4154_v51, %v3340_v50  ;;  %v3342_v54 = vld [vmem:[#allocation2 + $0x54] sm:$0xf0]  ;;  %v3348_v55 = vld [vmem:[#allocation2 + $0x50] sm:$0xf]  ;;  %v4155_v56 = vld [vmem:[#allocation2 + $0x58] sm:$0xf0] }
  0x41   : > { %862 = vmatpush.bf16.msra.mxu1 %v3369_v39  ;;  %v3345_v57 = vor.u32 %v4153_v52, %v3342_v54  ;;  %v3349_v58 = vor.u32 %v4155_v56, %v3348_v55  ;;  %v3328_v59 = vld [vmem:[#allocation2 + $0x30] sm:$0xf]  ;;  %v4151_v60 = vld [vmem:[#allocation2 + $0x38] sm:$0xf0]  ;;  %v4150_v61 = vld [vmem:[#allocation2 + $0x34] sm:$0xf] }
  0x42   : > { %v649_v17 = vadd.f32 %v4449_v13, %v648_v16  ;;  %875 = vmatpush.bf16.msra.mxu2 %v3373_v40  ;;  %v3329_v62 = vor.u32 %v4151_v60, %v3328_v59  ;;  %v3330_v63 = vld [vmem:[#allocation2 + $0x3c] sm:$0xf0]  ;;  %v3336_v0 = vld [vmem:[#allocation2 + $0x38] sm:$0xf]  ;;  %v4152_v1 = vld [vmem:[#allocation2 + $0x40] sm:$0xf0] }
  0x43   : > { %v3337_v3 = vor.u32 %v4152_v1, %v3336_v0  ;;  %v3316_v4 = vld [vmem:[#allocation2 + $0x18] sm:$0xf]  ;;  %v4148_v5 = vld [vmem:[#allocation2 + $0x20] sm:$0xf0]  ;;  %v4147_v6 = vld [vmem:[#allocation2 + $0x1c] sm:$0xf] }
  0x44   : > { %v4916_v18 = vsel %vm650_vm0, %v4449_v13, %v649_v17  ;;  %850 = vmatpush.bf16.msra.mxu0 %v3353_v44  ;;  %v3317_v7 = vor.u32 %v4148_v5, %v3316_v4  ;;  %v3318_v8 = vld [vmem:[#allocation2 + $0x24] sm:$0xf0]  ;;  %v3324_v9 = vld [vmem:[#allocation2 + $0x20] sm:$0xf]  ;;  %v4149_v10 = vld [vmem:[#allocation2 + $0x28] sm:$0xf0] }
  0x45   : > { %863 = vmatpush.bf16.msra.mxu1 %v3357_v48  ;;  %v3321_v11 = vor.u32 %v4147_v6, %v3318_v8  ;;  %v3325_v12 = vor.u32 %v4149_v10, %v3324_v9  ;;  %v3304_v13 = vld [vmem:[#allocation2] sm:$0xf]  ;;  %v4145_v14 = vld [vmem:[#allocation2 + $0x8] sm:$0xf0]  ;;  %v4144_v15 = vld [vmem:[#allocation2 + $0x4] sm:$0xf] }
  0x46   : > { %876 = vmatpush.bf16.msra.mxu2 %v3361_v49  ;;  %v3305_v16 = vor.u32 %v4145_v14, %v3304_v13  ;;  %v3306_v17 = vld [vmem:[#allocation2 + $0xc] sm:$0xf0]  ;;  %v4434_v33 = vld [vmem:[%s5250_s29] ss:$0 sm:$0xff]  ;;  %vm909_vm6 = vcmask 64512   ;;  %vm1130_vm7 = vcmask 523264  }
  0x47   : > { %v4435_v36 = vld [vmem:[%s5201_s3] ss:$0 sm:$0xff]  ;;  %vm1132_vm8 = vcmask 785408   ;;  %s5251_s29 = sld [smem:[#allocation16_spill]] }
  0x48   : > { %851 = vmatpush.bf16.msra.mxu0 %v3341_v53  ;;  %v711_v40 = vld [vmem:[%s5203_s5] sm:$0x7]  ;;  %s5252_s17 = sld [smem:[#allocation29_spill]] }
  0x49   : > { %864 = vmatpush.bf16.msra.mxu1 %v3345_v57  ;;  %v714_v41 = vperm.slane %v711_v40, 1  ;;  %v713_v44 = vperm.slane %v711_v40, 0  ;;  %v715_v46 = vperm.slane %v711_v40, 2  ;;  %s5253_s30 = sld [smem:[#allocation28_spill]] }
  0x4a   : > { %877 = vmatpush.bf16.msra.mxu2 %v3349_v58 }
  0x4c   : > { %852 = vmatpush.bf16.msra.mxu0 %v3329_v62 }
  0x4d   : > { %s631_s21 = sand.u32 1, %s5251_s29  }
  0x4e   : > { %878 = vmatpush.bf16.msra.mxu2 %v3337_v3  ;;  %s3189_s18 = scalar_lea.hbm %s5252_s17, %s4834_s0  ;;  %s632_s2 = scalar_lea.vmem [#allocation10], %s631_s21 }
  0x4f   : > { %s3191_s23 = sshll.u32 %s632_s2, 4  ;;  %s3193_s24 = sshll.u32 %s3189_s18, 4  ;;  %s3192_s23 = int_to_ptr.vmem [resolvable:$true] %s3191_s23  ;;  %s3194_s24 = int_to_ptr.hbm [resolvable:$true] %s3193_s24 }
  0x50   : > { %853 = vmatpush.bf16.msra.mxu0 %v3317_v7  ;;  %s3181_s20 = scalar_lea.sflag [#allocation4], %s631_s21  ;;  %s4642_s29 = sshra.s32 %s3194_s24, 4  ;;  %s4643_s29 = int_to_ptr.hbm [resolvable:$true] %s4642_s29 }
  0x51   : > { %s4644_s1 = scalar_lea.hbm %s4643_s29, 1  ;;  %s4648_s19 = scalar_lea.hbm %s5252_s17, 2 }
  0x52   : > { %879 = vmatpush.bf16.msra.mxu2 %v3325_v12  ;;  %p4645_p0 = scmp.ne.s32.totalorder %s4643_s29, %s4644_s1  ;;  %p4649_p3 = scmp.lt.s32.totalorder %s4643_s29, %s5252_s17 }
  0x53   : > { %p4650_p4 = scmp.lt.s32.totalorder %s4648_s19, %s4644_s1 }
  0x54   : > { %854 = vmatpush.bf16.msra.mxu0 %v3305_v16  ;;  %p4646_p1 = pnand %p4645_p0, %p4851_p5 }
  0x55   : > { %p4651_p7 = por %p4650_p4, %p4649_p3 }
  0x56   : > { %p4647_p2 = pneg %p4646_p1 }
  0x58   : > { %p4652_p8 = pnand %p4651_p7, %p4647_p2 }
  0xb2   : > { %v644_v19 = vpop.xlane.xlu0 %643 }
  0xb3   : > { %v652_v20 = vmul.f32 %v4916_v18, %v644_v19  ;;  %v3312_v19 = vld [vmem:[#allocation2 + $0x8] sm:$0xf] }
  0xb5   : > { %v4919_v21 = vsub.f32 %v640_v2, %v652_v20  ;;  %v3333_v2 = vor.u32 %v4150_v61, %v3330_v63  ;;  %v4146_v20 = vld [vmem:[#allocation2 + $0x10] sm:$0xf0] }
  0xb6   : > { %v3313_v23 = vor.u32 %v4146_v20, %v3312_v19 }
  0xb7   : > { %v654_v22 = vmul.f32 %v4919_v21, %v4919_v21  ;;  %865 = vmatpush.bf16.msra.mxu1 %v3333_v2 }
  0xb8   : > { %880 = vmatpush.bf16.msra.mxu2 %v3313_v23 }
  0xb9   : > { %655 = vadd.xlane.f32.xlu0 %v654_v22  ;;  %v3309_v22 = vor.u32 %v4144_v15, %v3306_v17 }
  0xbb   : > { %866 = vmatpush.bf16.msra.mxu1 %v3321_v11 }
  0xbf   : > { %867 = vmatpush.bf16.msra.mxu1 %v3309_v22 }
 0x12c   : > { %v656_v24 = vpop.xlane.xlu0 %655 }
 0x12d   : > { %v657_v25 = vmul.f32 %v656_v24, %v4916_v18 }
 0x12f   : > { %v658_v26 = vadd.f32 1e-12, %v657_v25 }
 0x131   : > { %4450 = vrsqrt.f32 %v658_v26  ;;  %vm665_vm2 = vweird.f32 %v658_v26 }
 0x137   : > { %v4451_v27 = vpop.eup %4450 }
 0x138   : > { %v660_v28 = vmul.f32 %v4451_v27, %v658_v26  ;;  %vm666_vm1 = vweird.f32 %v4451_v27 }
 0x139   : > { %vm667_vm3 = vmor %vm665_vm2, %vm666_vm1 }
 0x13a   : > { %v661_v29 = vmul.f32 %v4451_v27, %v660_v28 }
 0x13c   : > { %v662_v30 = vmul.f32 0.5, %v661_v29 }
 0x13e   : > { %v663_v31 = vsub.f32 1.5, %v662_v30 }
 0x140   : > { %v664_v32 = vmul.f32 %v4451_v27, %v663_v31 }
 0x142   : > { %v668_v34 = vsel %vm667_vm3, %v4451_v27, %v664_v32 }
 0x143   : > { %v669_v35 = vmul.f32 %v668_v34, %v4919_v21 }
 0x145   : > { %v673_v37 = vmul.f32 %v4434_v33, %v669_v35 }
 0x147   : > { %v4931_v38 = vadd.f32 %v4435_v36, %v673_v37 }
 0x149   : > { %v678_v39 = vpack.c.bf16 %v4931_v38, %v4931_v38 }
 0x14b   : > { %855 = vmatmul.bf16.vlgmr.msra.gmra.mxu0 %v678_v39  ;;  %868 = vmatmul.bf16.vlgmr.msra.gmra.mxu1 %v678_v39 }
 0x14c   : > { %881 = vmatmul.bf16.vlgmr.msra.gmra.mxu2 %v678_v39 }
 0x1c8   : > { %v856_v42 = vpop.f32.mrf.mxu0  ;;  %v869_v21 = vpop.f32.mrf.mxu1 }
 0x1c9   : > { %v870_v43 = vadd.f32 %v869_v21, %v714_v41  ;;  %v857_v48 = vadd.f32 %v856_v42, %v713_v44 }
 0x1cb   : > { %v887_v45 = vpack.c.bf16 %v870_v43, %v870_v43  ;;  %v886_v54 = vpack.c.bf16 %v857_v48, %v857_v48 }
 0x1cd   : > { %1005 = vrot.lane.b32.xlu0 %v887_v45, %s4715_s25  ;;  %947 = vrot.lane.b32.xlu2 %v887_v45, %s4716_s26  ;;  %v893_v47 = vsel %vm888_vm4, %v887_v45, 0 }
 0x1ce   : > { %902 = vmatpush.bf16.xpose.msra.mxu3 %v893_v47 }
 0x1cf   : > { %v882_v49 = vpop.f32.mrf.mxu2 }
 0x1d0   : > { %v883_v50 = vadd.f32 %v882_v49, %v715_v46  ;;  %v858_v51 = vpop.f32.mrf.mxu0  ;;  %v871_v52 = vpop.f32.mrf.mxu1 }
 0x1d2   : > { %v4941_v53 = vpack.c.bf16 %v883_v50, %v883_v50 }
 0x1d4   : > { %v928_v55 = vsel %vm926_vm5, %v4941_v53, 0 }
 0x1d5   : > { %944 = vrot.lane.b32.xlu2 %v886_v54, %s4716_s26  ;;  %3398 = vmatmul.msk.bf16.vlgmr.msra.gmra.mxu3 %vm888_vm4, %v886_v54 }
 0x1d6   : > { %937 = vmatpush.bf16.msrb.mxu3 %v928_v55 }
 0x1d7   : > { %v884_v56 = vpop.f32.mrf.mxu2 }
 0x1dd   : > { %1062 = vrot.lane.b32.xlu2 %v887_v45, %s4717_s4 }
 0x1e5   : > { %1060 = vrot.lane.b32.xlu2 %v886_v54, %s4717_s4 }
 0x227   : > { %v948_v57 = vpop.permute.xlu2 %947 }
 0x228   : > { %v953_v58 = vsel %vm888_vm4, %v948_v57, 0 }
 0x229   : > { %962 = vmatpush.bf16.xpose.msra.mxu3 %v953_v58 }
 0x22f   : > { %v945_v10 = vpop.permute.xlu2 %944 }
 0x237   : > { %v1063_v11 = vpop.permute.xlu2 %1062 }
 0x238   : > { %v1068_v12 = vsel %vm888_vm4, %v1063_v11, 0  ;;  %v4170_v11 = vld [vmem:[%s5204_s6 + $0x10] sm:$0xff] }
 0x23f   : > { %v1006_v7 = vpop.permute.xlu0 %1005  ;;  %v1061_v14 = vpop.permute.xlu2 %1060 }
 0x240   : > { %v1011_v9 = vsel %vm888_vm4, %v1006_v7, 0  ;;  %v4174_v7 = vld [vmem:[%s5204_s6 + $0x30] sm:$0xff] }
 0x258   : > { %v904_v59 = vpop.f32.mrf.mxu3 }
 0x259   : > { %v908_v60 = vmul.f32 0.17677669, %v904_v59 }
 0x25b   : > { %v910_v61 = vsel %vm909_vm6, %v908_v60, -inf }
 0x25c   : > { %911 = vmax.xlane.f32.xlu1 %v910_v61 }
 0x260   : > { %v906_v62 = vpop.f32.mrf.mxu3 }
 0x2cf   : > { %v912_v63 = vpop.xlane.xlu1 %911 }
 0x2d0   : > { %v913_v0 = vsub.f32 %v908_v60, %v912_v63 }
 0x2d2   : > { %v914_v1 = vmul.f32 1.442695, %v913_v0 }
 0x2d4   : > { %4452 = vpow2.f32 %v914_v1 }
 0x2da   : > { %v4453_v2 = vpop.eup %4452 }
 0x2db   : > { %v916_v3 = vsel %vm909_vm6, %v4453_v2, 0.0 }
 0x2dc   : > { %917 = vadd.xlane.f32.xlu1 %v916_v3  ;;  %v4175_v3 = vld [vmem:[%s5204_s6 + $0x38] sm:$0xff] }
 0x2dd   : > { %1203 = vmatpush.bf16.msrb.mxu1 %v4175_v3  ;;  %v3504_v3 = vld [vmem:[#allocation5 + $0x80] sm:$0xf] }
 0x2e1   : > { %1204 = vmatpush.bf16.msrb.mxu1 %v4174_v7  ;;  %v3506_v7 = vld [vmem:[#allocation5 + $0x90] sm:$0xf0] }
 0x2f5   : > { %1003 = vrot.lane.b32.xlu1 %v886_v54, %s4715_s25 }
 0x34f   : > { %v918_v4 = vpop.xlane.xlu1 %917 }
 0x350   : > { %4454 = vrcp.f32 %v918_v4 }
 0x356   : > { %v4455_v5 = vpop.eup %4454 }
 0x357   : > { %v920_v6 = vmul.f32 %v4455_v5, %v4453_v2 }
 0x359   : > { %v921_v8 = vpack.c.bf16 %v920_v6, %v920_v6 }
 0x35b   : > { %3399 = vmatmul.msk.bf16.vlgmr.msrb.gmra.mxu3 %vm909_vm6, %v921_v8  ;;  %v4173_v8 = vld [vmem:[%s5204_s6 + $0x28] sm:$0xff] }
 0x35c   : > { %1020 = vmatpush.bf16.xpose.msrb.mxu3 %v1011_v9  ;;  %1205 = vmatpush.bf16.msrb.mxu1 %v4173_v8  ;;  %v4172_v9 = vld [vmem:[%s5204_s6 + $0x20] sm:$0xff]  ;;  %v3512_v8 = vld [vmem:[#allocation5 + $0x88] sm:$0xf] }
 0x360   : > { %1206 = vmatpush.bf16.msrb.mxu1 %v4172_v9  ;;  %v4195_v9 = vld [vmem:[#allocation5 + $0x94] sm:$0xf0] }
 0x367   : > { %v1004_v13 = vpop.permute.xlu1 %1003 }
 0x36b   : > { %3400 = vmatmul.msk.bf16.vlgmr.msra.gmra.mxu3 %vm888_vm4, %v945_v10  ;;  %v4171_v10 = vld [vmem:[%s5204_s6 + $0x18] sm:$0xff] }
 0x36c   : > { %1077 = vmatpush.bf16.xpose.msra.mxu3 %v1068_v12  ;;  %1207 = vmatpush.bf16.msrb.mxu1 %v4171_v10  ;;  %v4169_v12 = vld [vmem:[%s5204_s6 + $0x8] sm:$0xff] }
 0x370   : > { %1208 = vmatpush.bf16.msrb.mxu1 %v4170_v11  ;;  %v3513_v11 = vor.u32 %v4195_v9, %v3512_v8 }
 0x374   : > { %1209 = vmatpush.bf16.msrb.mxu1 %v4169_v12  ;;  %v4193_v12 = vld [vmem:[#allocation5 + $0x8c] sm:$0xf] }
 0x37b   : > { %3402 = vmatmul.msk.bf16.vlgmr.msrb.gmra.mxu3 %vm888_vm4, %v1004_v13  ;;  %v4168_v13 = vld [vmem:[%s5204_s6] sm:$0xff] }
 0x37c   : > { %1210 = vmatpush.bf16.msrb.mxu1 %v4168_v13  ;;  %v3514_v13 = vld [vmem:[#allocation5 + $0x98] sm:$0xf0] }
 0x38b   : > { %3404 = vmatmul.msk.bf16.vlgmr.msra.gmra.mxu3 %vm888_vm4, %v1061_v14 }
 0x3de   : > { %v4959_v15 = vpop.f32.mrf.mxu3 }
 0x3e6   : > { %v941_v16 = vpop.f32.mrf.mxu3 }
 0x3ee   : > { %v964_v17 = vpop.f32.mrf.mxu3 }
 0x3ef   : > { %v968_v19 = vmul.f32 0.17677669, %v964_v17 }
 0x3f1   : > { %v969_v20 = vsel %vm909_vm6, %v968_v19, -inf }
 0x3f2   : > { %970 = vmax.xlane.f32.xlu2 %v969_v20 }
 0x3f6   : > { %v966_v22 = vpop.f32.mrf.mxu3 }
 0x3fe   : > { %v1022_v23 = vpop.f32.mrf.mxu3 }
 0x3ff   : > { %v1026_v24 = vmul.f32 0.17677669, %v1022_v23 }
 0x401   : > { %v1027_v25 = vsel %vm909_vm6, %v1026_v24, -inf }
 0x402   : > { %1028 = vmax.xlane.f32.xlu0 %v1027_v25 }
 0x406   : > { %v1024_v26 = vpop.f32.mrf.mxu3 }
 0x40e   : > { %v1079_v27 = vpop.f32.mrf.mxu3 }
 0x40f   : > { %v1083_v28 = vmul.f32 0.17677669, %v1079_v27 }
 0x411   : > { %v1084_v29 = vsel %vm909_vm6, %v1083_v28, -inf }
 0x412   : > { %1085 = vmax.xlane.f32.xlu1 %v1084_v29  ;;  %v4206_v29 = vld [vmem:[#allocation5 + $0xec] sm:$0xf0] }
 0x416   : > { %982 = vrot.lane.b32.xlu0 %v4941_v53, %s4716_s26  ;;  %v1081_v30 = vpop.f32.mrf.mxu3 }
 0x417   : > { %v4204_v30 = vld [vmem:[#allocation5 + $0xe4] sm:$0xf] }
 0x465   : > { %v971_v31 = vpop.xlane.xlu2 %970 }
 0x466   : > { %v972_v32 = vsub.f32 %v968_v19, %v971_v31 }
 0x468   : > { %v973_v33 = vmul.f32 1.442695, %v972_v32  ;;  %v3554_v32 = vld [vmem:[#allocation5 + $0xf0] sm:$0xf0] }
 0x46a   : > { %4456 = vpow2.f32 %v973_v33  ;;  %v3560_v33 = vld [vmem:[#allocation5 + $0xe8] sm:$0xf] }
 0x470   : > { %v4457_v34 = vpop.eup %4456 }
 0x471   : > { %v975_v35 = vsel %vm909_vm6, %v4457_v34, 0.0 }
 0x472   : > { %976 = vadd.xlane.f32.xlu2 %v975_v35  ;;  %v3557_v35 = vor.u32 %v4204_v30, %v3554_v32  ;;  %v4186_v30 = vld [vmem:[#allocation5 + $0x4c] sm:$0xf0] }
 0x474   : > { %1463 = vmatpush.bf16.msrb.mxu3 %v3557_v35  ;;  %v4187_v35 = vld [vmem:[#allocation5 + $0x54] sm:$0xf0] }
 0x475   : > { %v1029_v36 = vpop.xlane.xlu0 %1028 }
 0x476   : > { %v1030_v37 = vsub.f32 %v1026_v24, %v1029_v36  ;;  %v4436_v24 = vld [vmem:[%s5205_s7] ss:$0 sm:$0xff] }
 0x478   : > { %v1031_v39 = vmul.f32 1.442695, %v1030_v37  ;;  %v4205_v37 = vld [vmem:[#allocation5 + $0xec] sm:$0xf] }
 0x47a   : > { %4458 = vpow2.f32 %v1031_v39  ;;  %v3562_v39 = vld [vmem:[#allocation5 + $0xf8] sm:$0xf0] }
 0x480   : > { %v4459_v40 = vpop.eup %4458 }
 0x481   : > { %v1033_v41 = vsel %vm909_vm6, %v4459_v40, 0.0 }
 0x482   : > { %1034 = vadd.xlane.f32.xlu2 %v1033_v41 }
 0x485   : > { %v1086_v42 = vpop.xlane.xlu1 %1085 }
 0x486   : > { %v1087_v21 = vsub.f32 %v1083_v28, %v1086_v42 }
 0x488   : > { %v1088_v43 = vmul.f32 1.442695, %v1087_v21  ;;  %v983_v44 = vpop.permute.xlu0 %982 }
 0x489   : > { %v988_v45 = vsel %vm926_vm5, %v983_v44, 0  ;;  %v4202_v44 = vld [vmem:[#allocation5 + $0xcc] sm:$0xf0] }
 0x48a   : > { %4460 = vpow2.f32 %v1088_v43  ;;  %997 = vmatpush.bf16.msrb.mxu0 %v988_v45  ;;  %v3536_v43 = vld [vmem:[#allocation5 + $0xc0] sm:$0xf]  ;;  %v4200_v45 = vld [vmem:[#allocation5 + $0xc4] sm:$0xf] }
 0x490   : > { %v4461_v46 = vpop.eup %4460 }
 0x491   : > { %v1090_v47 = vsel %vm909_vm6, %v4461_v46, 0.0 }
 0x492   : > { %1091 = vadd.xlane.f32.xlu1 %v1090_v47  ;;  %v3538_v47 = vld [vmem:[#allocation5 + $0xd0] sm:$0xf0] }
 0x49a   : > { %1039 = vrot.lane.b32.xlu2 %v4941_v53, %s4715_s25 }
 0x4ab   : > { %1096 = vrot.lane.b32.xlu1 %v4941_v53, %s4717_s4 }
 0x4e5   : > { %v977_v48 = vpop.xlane.xlu2 %976 }
 0x4e6   : > { %4462 = vrcp.f32 %v977_v48  ;;  %v3544_v48 = vld [vmem:[#allocation5 + $0xc8] sm:$0xf] }
 0x4ec   : > { %v4463_v49 = vpop.eup %4462 }
 0x4ed   : > { %v979_v50 = vmul.f32 %v4463_v49, %v4457_v34  ;;  %v4207_v34 = vld [vmem:[#allocation5 + $0xf4] sm:$0xf0] }
 0x4ee   : > { %v3561_v36 = vor.u32 %v4207_v34, %v3560_v33  ;;  %v4203_v49 = vld [vmem:[#allocation5 + $0xd4] sm:$0xf0]  ;;  %v3474_v33 = vld [vmem:[#allocation5 + $0x50] sm:$0xf0]  ;;  %v3480_v34 = vld [vmem:[#allocation5 + $0x48] sm:$0xf] }
 0x4ef   : > { %v980_v51 = vpack.c.bf16 %v979_v50, %v979_v50  ;;  %v3541_v50 = vor.u32 %v4200_v45, %v3538_v47  ;;  %v3458_v45 = vld [vmem:[#allocation5 + $0x30] sm:$0xf0]  ;;  %v4183_v47 = vld [vmem:[#allocation5 + $0x34] sm:$0xf0] }
 0x4f1   : > { %3401 = vmatmul.msk.bf16.vlgmr.msrb.gmra.mxu0 %vm909_vm6, %v980_v51  ;;  %v3545_v51 = vor.u32 %v4203_v49, %v3544_v48  ;;  %1464 = vmatpush.bf16.msrb.mxu3 %v3541_v50  ;;  %v4181_v50 = vld [vmem:[#allocation5 + $0x2c] sm:$0xf] }
 0x4f5   : > { %v1035_v52 = vpop.xlane.xlu2 %1034 }
 0x4f6   : > { %4464 = vrcp.f32 %v1035_v52  ;;  %v4201_v52 = vld [vmem:[#allocation5 + $0xcc] sm:$0xf] }
 0x4fc   : > { %v4465_v54 = vpop.eup %4464 }
 0x4fd   : > { %v1037_v55 = vmul.f32 %v4465_v54, %v4459_v40  ;;  %v1040_v56 = vpop.permute.xlu2 %1039  ;;  %v3565_v40 = vor.u32 %v4205_v37, %v3562_v39  ;;  %v3546_v54 = vld [vmem:[#allocation5 + $0xd8] sm:$0xf0]  ;;  %v3481_v37 = vor.u32 %v4187_v35, %v3480_v34  ;;  %v4185_v39 = vld [vmem:[#allocation5 + $0x4c] sm:$0xf]  ;;  %v4212_v34 = vld [vmem:[#allocation7 + $0x20] sm:$0xff] }
 0x4fe   : > { %v1045_v57 = vsel %vm926_vm5, %v1040_v56, 0  ;;  %v3520_v56 = vld [vmem:[#allocation5 + $0xa0] sm:$0xf] }
 0x4ff   : > { %1054 = vmatpush.bf16.msrb.mxu2 %v1045_v57  ;;  %v1038_v58 = vpack.c.bf16 %v1037_v55, %v1037_v55  ;;  %1489 = vmatpush.bf16.msra.mxu1 %v3565_v40  ;;  %v3549_v55 = vor.u32 %v4201_v52, %v3546_v54  ;;  %v4198_v57 = vld [vmem:[#allocation5 + $0xac] sm:$0xf0]  ;;  %v3482_v40 = vld [vmem:[#allocation5 + $0x58] sm:$0xf0]  ;;  %v3440_v52 = vld [vmem:[#allocation5] sm:$0xf] }
 0x500   : > { %v4220_v35 = vld [vmem:[#allocation7 + $0x60] sm:$0xff] }
 0x502   : > { %3403 = vmatmul.msk.bf16.vlgmr.msrb.gmra.mxu2 %vm909_vm6, %v1038_v58  ;;  %v4196_v58 = vld [vmem:[#allocation5 + $0xa4] sm:$0xf] }
 0x503   : > { %1490 = vmatpush.bf16.msra.mxu1 %v3549_v55  ;;  %v4178_v55 = vld [vmem:[#allocation5 + $0xc] sm:$0xf0] }
 0x505   : > { %v1092_v59 = vpop.xlane.xlu1 %1091 }
 0x506   : > { %4466 = vrcp.f32 %v1092_v59  ;;  %v3521_v59 = vor.u32 %v4198_v57, %v3520_v56  ;;  %v4176_v56 = vld [vmem:[#allocation5 + $0x4] sm:$0xf]  ;;  %v3442_v57 = vld [vmem:[#allocation5 + $0x10] sm:$0xf0] }
 0x50c   : > { %v4467_v53 = vpop.eup %4466 }
 0x50d   : > { %v1094_v60 = vmul.f32 %v4467_v53, %v4461_v46  ;;  %v3537_v46 = vor.u32 %v4202_v44, %v3536_v43  ;;  %v3522_v53 = vld [vmem:[#allocation5 + $0xb0] sm:$0xf0]  ;;  %v4180_v43 = vld [vmem:[#allocation5 + $0x24] sm:$0xf] }
 0x50e   : > { %v3461_v48 = vor.u32 %v4180_v43, %v3458_v45  ;;  %v4218_v43 = vld [vmem:[#allocation7 + $0x50] sm:$0xff]  ;;  %v4232_v45 = vld [vmem:[#allocation7 + $0xc0] sm:$0xff] }
 0x50f   : > { %v1095_v63 = vpack.c.bf16 %v1094_v60, %v1094_v60  ;;  %v3528_v60 = vld [vmem:[#allocation5 + $0xa8] sm:$0xf] }
 0x51d   : > { %v1097_v61 = vpop.permute.xlu1 %1096 }
 0x51e   : > { %v1102_v62 = vsel %vm926_vm5, %v1097_v61, 0  ;;  %v4199_v61 = vld [vmem:[#allocation5 + $0xb4] sm:$0xf0] }
 0x51f   : > { %1111 = vmatpush.bf16.msra.mxu0 %v1102_v62  ;;  %v3525_v62 = vor.u32 %v4196_v58, %v3522_v53  ;;  %v3441_v58 = vor.u32 %v4178_v55, %v3440_v52  ;;  %v3448_v53 = vld [vmem:[#allocation5 + $0x8] sm:$0xf] }
 0x521   : > { %1465 = vmatpush.bf16.msrb.mxu3 %v3525_v62 }
 0x522   : > { %3405 = vmatmul.msk.bf16.vlgmr.msra.gmra.mxu0 %vm909_vm6, %v1095_v63  ;;  %v3529_v63 = vor.u32 %v4199_v61, %v3528_v60  ;;  %v4179_v60 = vld [vmem:[#allocation5 + $0x14] sm:$0xf0]  ;;  %v4177_v61 = vld [vmem:[#allocation5 + $0xc] sm:$0xf] }
 0x523   : > { %1476 = vmatpush.bf16.msrb.mxu0 %v3561_v36  ;;  %v3449_v62 = vor.u32 %v4179_v60, %v3448_v53 }
 0x527   : > { %1477 = vmatpush.bf16.msrb.mxu0 %v3545_v51  ;;  %v3466_v51 = vld [vmem:[#allocation5 + $0x38] sm:$0xf0] }
 0x528   : > { %v3469_v54 = vor.u32 %v4181_v50, %v3466_v51  ;;  %v4216_v50 = vld [vmem:[#allocation7 + $0x40] sm:$0xff] }
 0x52b   : > { %1478 = vmatpush.bf16.msrb.mxu0 %v3529_v63  ;;  %v3450_v63 = vld [vmem:[#allocation5 + $0x18] sm:$0xf0] }
 0x52f   : > { %1479 = vmatpush.bf16.msrb.mxu0 %v3513_v11 }
 0x56e   : > { %v999_v0 = vpop.f32.mrf.mxu0 }
 0x56f   : > { %1118 = vrot.lane.b32.xlu0 %v999_v0, %s4717_s4  ;;  %v4197_v0 = vld [vmem:[#allocation5 + $0xac] sm:$0xf] }
 0x576   : > { %v1001_v1 = vpop.f32.mrf.mxu0 }
 0x577   : > { %v3530_v1 = vld [vmem:[#allocation5 + $0xb8] sm:$0xf0] }
 0x585   : > { %v1056_v2 = vpop.f32.mrf.mxu2 }
 0x586   : > { %1122 = vrot.lane.b32.xlu0 %v1056_v2, %s4715_s25  ;;  %v3533_v2 = vor.u32 %v4197_v0, %v3530_v1  ;;  %v3453_v0 = vor.u32 %v4177_v61, %v3450_v63 }
 0x588   : > { %1491 = vmatpush.bf16.msra.mxu1 %v3533_v2  ;;  %v4231_v2 = vld [vmem:[#allocation7 + $0xb8] sm:$0xff] }
 0x58d   : > { %v1058_v4 = vpop.f32.mrf.mxu2 }
 0x58e   : > { %v4194_v4 = vld [vmem:[#allocation5 + $0x8c] sm:$0xf0] }
 0x59f   : > { %v1113_v5 = vpop.f32.mrf.mxu0 }
 0x5a0   : > { %1126 = vrot.lane.b32.xlu2 %v1113_v5, %s4716_s26  ;;  %v4192_v5 = vld [vmem:[#allocation5 + $0x84] sm:$0xf] }
 0x5a1   : > { %v3509_v10 = vor.u32 %v4192_v5, %v3506_v7  ;;  %v4230_v5 = vld [vmem:[#allocation7 + $0xb0] sm:$0xff] }
 0x5a3   : > { %1466 = vmatpush.bf16.msrb.mxu3 %v3509_v10 }
 0x5a7   : > { %v1115_v6 = vpop.f32.mrf.mxu0 }
 0x5a8   : > { %v3505_v6 = vor.u32 %v4194_v4, %v3504_v3  ;;  %v4239_v3 = vld [vmem:[#allocation7 + $0xf8] sm:$0xff] }
 0x5e1   : > { %v1119_v14 = vpop.permute.xlu0 %1118 }
 0x5e2   : > { %v1129_v16 = vsel %vm888_vm4, %v4959_v15, %v1119_v14  ;;  %v3552_v15 = vld [vmem:[#allocation5 + $0xe0] sm:$0xf]  ;;  %v3517_v14 = vor.u32 %v4193_v12, %v3514_v13 }
 0x5e3   : > { %v3553_v31 = vor.u32 %v4206_v29, %v3552_v15  ;;  %v3472_v29 = vld [vmem:[#allocation5 + $0x40] sm:$0xf] }
 0x5e4   : > { %1492 = vmatpush.bf16.msra.mxu1 %v3517_v14  ;;  %v3473_v32 = vor.u32 %v4186_v30, %v3472_v29  ;;  %v4437_v14 = vld [vmem:[%s5206_s8] ss:$0 sm:$0xff]  ;;  %v4213_v30 = vld [vmem:[#allocation7 + $0x28] sm:$0xff] }
 0x5e5   : > { %1450 = vmatpush.bf16.msra.mxu2 %v3553_v31  ;;  %v4184_v31 = vld [vmem:[#allocation5 + $0x44] sm:$0xf] }
 0x5e6   : > { %v3477_v36 = vor.u32 %v4184_v31, %v3474_v33  ;;  %v4236_v29 = vld [vmem:[#allocation7 + $0xe0] sm:$0xff]  ;;  %v4221_v31 = vld [vmem:[#allocation7 + $0x68] sm:$0xff]  ;;  %v4235_v33 = vld [vmem:[#allocation7 + $0xd8] sm:$0xff] }
 0x5e9   : > { %1451 = vmatpush.bf16.msra.mxu2 %v3537_v46  ;;  %v3464_v46 = vld [vmem:[#allocation5 + $0x28] sm:$0xf] }
 0x5ea   : > { %v3465_v49 = vor.u32 %v4183_v47, %v3464_v46  ;;  %v4209_v46 = vld [vmem:[#allocation7 + $0x8] sm:$0xff] }
 0x5eb   : > { %v4217_v47 = vld [vmem:[#allocation7 + $0x48] sm:$0xff] }
 0x5ed   : > { %1452 = vmatpush.bf16.msra.mxu2 %v3521_v59  ;;  %v3445_v59 = vor.u32 %v4176_v56, %v3442_v57 }
 0x5f1   : > { %1453 = vmatpush.bf16.msra.mxu2 %v3505_v6  ;;  %v4238_v6 = vld [vmem:[#allocation7 + $0xf0] sm:$0xff] }
 0x5f8   : > { %v1123_v17 = vpop.permute.xlu0 %1122 }
 0x5f9   : > { %v1131_v19 = vsel %vm1130_vm7, %v1129_v16, %v1123_v17  ;;  %v3488_v16 = vld [vmem:[#allocation5 + $0x60] sm:$0xf]  ;;  %v4190_v17 = vld [vmem:[#allocation5 + $0x6c] sm:$0xf0] }
 0x5fa   : > { %v1127_v20 = vpop.permute.xlu2 %1126 }
 0x5fb   : > { %v1133_v22 = vsel %vm1132_vm8, %v1131_v19, %v1127_v20  ;;  %v4188_v19 = vld [vmem:[#allocation5 + $0x64] sm:$0xf]  ;;  %v3489_v20 = vor.u32 %v4190_v17, %v3488_v16 }
 0x5fc   : > { %v1134_v23 = vpack.c.bf16 %v1133_v22, %v1133_v22  ;;  %v3490_v22 = vld [vmem:[#allocation5 + $0x70] sm:$0xf0] }
 0x5fd   : > { %1454 = vmatpush.bf16.msra.mxu2 %v3489_v20 }
 0x5fe   : > { %1211 = vmatmul.bf16.vlgmr.msrb.gmra.mxu1 %v1134_v23  ;;  %v3496_v23 = vld [vmem:[#allocation5 + $0x68] sm:$0xf] }
 0x601   : > { %1455 = vmatpush.bf16.msra.mxu2 %v3473_v32  ;;  %v4227_v32 = vld [vmem:[#allocation7 + $0x98] sm:$0xff] }
 0x67b   : > { %v1212_v25 = vpop.f32.mrf.mxu1 }
 0x67c   : > { %v1213_v26 = vadd.f32 %v4436_v24, %v1212_v25  ;;  %v4191_v24 = vld [vmem:[#allocation5 + $0x74] sm:$0xf0]  ;;  %v3493_v25 = vor.u32 %v4188_v19, %v3490_v22  ;;  %v4438_v19 = vld [vmem:[%s5207_s9] ss:$0 sm:$0xff] }
 0x67e   : > { %v1216_v27 = vadd.f32 %v1213_v26, %v4931_v38  ;;  %v3497_v26 = vor.u32 %v4191_v24, %v3496_v23  ;;  %1467 = vmatpush.bf16.msrb.mxu3 %v3493_v25  ;;  %v4215_v24 = vld [vmem:[#allocation7 + $0x38] sm:$0xff] }
 0x67f   : > { %v4223_v25 = vld [vmem:[#allocation7 + $0x78] sm:$0xff] }
 0x680   : > { %1219 = vadd.xlane.f32.xlu0 %v1216_v27  ;;  %1480 = vmatpush.bf16.msrb.mxu0 %v3497_v26  ;;  %v4229_v26 = vld [vmem:[#allocation7 + $0xa8] sm:$0xff] }
 0x682   : > { %1468 = vmatpush.bf16.msrb.mxu3 %v3477_v36  ;;  %v4226_v36 = vld [vmem:[#allocation7 + $0x90] sm:$0xff] }
 0x683   : > { %v1214_v28 = vpop.f32.mrf.mxu1 }
 0x684   : > { %v3498_v28 = vld [vmem:[#allocation5 + $0x78] sm:$0xf0]  ;;  %1481 = vmatpush.bf16.msrb.mxu0 %v3481_v37  ;;  %v4234_v37 = vld [vmem:[#allocation7 + $0xd0] sm:$0xff] }
 0x686   : > { %1469 = vmatpush.bf16.msrb.mxu3 %v3461_v48  ;;  %v1280_v48 = vld [vmem:[%s5209_s11] sm:$0xf] }
 0x687   : > { %v1284_v51 = vperm.slane %v1280_v48, 2  ;;  %v1285_v52 = vperm.slane %v1280_v48, 3 }
 0x688   : > { %1482 = vmatpush.bf16.msrb.mxu0 %v3465_v49  ;;  %v4208_v49 = vld [vmem:[#allocation7] sm:$0xff] }
 0x68a   : > { %1470 = vmatpush.bf16.msrb.mxu3 %v3445_v59  ;;  %v1283_v59 = vperm.slane %v1280_v48, 1 }
 0x68c   : > { %1483 = vmatpush.bf16.msrb.mxu0 %v3449_v62 }
 0x68e   : > { %1815 = vmatpush.bf16.msra.mxu3 %v4223_v25 }
 0x690   : > { %1828 = vmatpush.bf16.msra.mxu0 %v4231_v2 }
 0x694   : > { %1829 = vmatpush.bf16.msra.mxu0 %v4230_v5 }
 0x698   : > { %1830 = vmatpush.bf16.msra.mxu0 %v4229_v26 }
 0x6f3   : > { %v1220_v41 = vpop.xlane.xlu0 %1219 }
 0x6f4   : > { %v1221_v38 = vmul.f32 %v1220_v41, %v4916_v18  ;;  %v3485_v41 = vor.u32 %v4185_v39, %v3482_v40  ;;  %v4211_v39 = vld [vmem:[#allocation7 + $0x18] sm:$0xff] }
 0x6f5   : > { %v4219_v40 = vld [vmem:[#allocation7 + $0x58] sm:$0xff] }
 0x6f6   : > { %v5015_v42 = vsub.f32 %v1216_v27, %v1221_v38  ;;  %v4189_v27 = vld [vmem:[#allocation5 + $0x6c] sm:$0xf]  ;;  %v3456_v38 = vld [vmem:[#allocation5 + $0x20] sm:$0xf] }
 0x6f7   : > { %v3501_v15 = vor.u32 %v4189_v27, %v3498_v28  ;;  %v4214_v27 = vld [vmem:[#allocation7 + $0x30] sm:$0xff] }
 0x6f8   : > { %v1223_v21 = vmul.f32 %v5015_v42, %v5015_v42  ;;  %v4222_v28 = vld [vmem:[#allocation7 + $0x70] sm:$0xff] }
 0x6f9   : > { %1493 = vmatpush.bf16.msra.mxu1 %v3501_v15  ;;  %1816 = vmatpush.bf16.msra.mxu3 %v4222_v28  ;;  %v4228_v15 = vld [vmem:[#allocation7 + $0xa0] sm:$0xff] }
 0x6fa   : > { %1224 = vadd.xlane.f32.xlu1 %v1223_v21  ;;  %v4182_v21 = vld [vmem:[#allocation5 + $0x2c] sm:$0xf0]  ;;  %1831 = vmatpush.bf16.msra.mxu0 %v4228_v15 }
 0x6fb   : > { %v3457_v44 = vor.u32 %v4182_v21, %v3456_v38  ;;  %v4233_v38 = vld [vmem:[#allocation7 + $0xc8] sm:$0xff]  ;;  %v4210_v21 = vld [vmem:[#allocation7 + $0x10] sm:$0xff] }
 0x6fd   : > { %1494 = vmatpush.bf16.msra.mxu1 %v3485_v41  ;;  %1456 = vmatpush.bf16.msra.mxu2 %v3457_v44  ;;  %v4225_v41 = vld [vmem:[#allocation7 + $0x88] sm:$0xff]  ;;  %v4224_v44 = vld [vmem:[#allocation7 + $0x80] sm:$0xff] }
 0x6fe   : > { %1817 = vmatpush.bf16.msra.mxu3 %v4221_v31  ;;  %1832 = vmatpush.bf16.msra.mxu0 %v4227_v32 }
 0x701   : > { %1495 = vmatpush.bf16.msra.mxu1 %v3469_v54  ;;  %1457 = vmatpush.bf16.msra.mxu2 %v3441_v58  ;;  %v1282_v58 = vperm.slane %v1280_v48, 0  ;;  %v4439_v48 = vld [vmem:[%s5211_s13] ss:$0 sm:$0xff] }
 0x702   : > { %1818 = vmatpush.bf16.msra.mxu3 %v4220_v35  ;;  %1833 = vmatpush.bf16.msra.mxu0 %v4226_v36 }
 0x705   : > { %1496 = vmatpush.bf16.msra.mxu1 %v3453_v0  ;;  %1802 = vmatpush.bf16.msrb.mxu2 %v4215_v24 }
 0x706   : > { %1819 = vmatpush.bf16.msra.mxu3 %v4219_v40  ;;  %1834 = vmatpush.bf16.msra.mxu0 %v4225_v41 }
 0x709   : > { %1841 = vmatpush.bf16.msrb.mxu1 %v4239_v3  ;;  %1803 = vmatpush.bf16.msrb.mxu2 %v4214_v27 }
 0x70a   : > { %1820 = vmatpush.bf16.msra.mxu3 %v4218_v43  ;;  %1835 = vmatpush.bf16.msra.mxu0 %v4224_v44 }
 0x70d   : > { %1842 = vmatpush.bf16.msrb.mxu1 %v4238_v6  ;;  %1804 = vmatpush.bf16.msrb.mxu2 %v4213_v30 }
 0x70e   : > { %1821 = vmatpush.bf16.msra.mxu3 %v4217_v47 }
 0x711   : > { %1805 = vmatpush.bf16.msrb.mxu2 %v4212_v34 }
 0x712   : > { %1822 = vmatpush.bf16.msra.mxu3 %v4216_v50 }
 0x715   : > { %1806 = vmatpush.bf16.msrb.mxu2 %v4211_v39 }
 0x719   : > { %1807 = vmatpush.bf16.msrb.mxu2 %v4210_v21 }
 0x71d   : > { %1808 = vmatpush.bf16.msrb.mxu2 %v4209_v46 }
 0x721   : > { %1809 = vmatpush.bf16.msrb.mxu2 %v4208_v49 }
 0x76d   : > { %v1225_v1 = vpop.xlane.xlu1 %1224 }
 0x76e   : > { %v1226_v4 = vmul.f32 %v1225_v1, %v4916_v18 }
 0x770   : > { %v1227_v7 = vadd.f32 1e-12, %v1226_v4 }
 0x772   : > { %4468 = vrsqrt.f32 %v1227_v7  ;;  %vm1234_vm10 = vweird.f32 %v1227_v7 }
 0x778   : > { %v4469_v8 = vpop.eup %4468 }
 0x779   : > { %v1229_v9 = vmul.f32 %v4469_v8, %v1227_v7  ;;  %vm1235_vm9 = vweird.f32 %v4469_v8 }
 0x77a   : > { %vm1236_vm11 = vmor %vm1234_vm10, %vm1235_vm9 }
 0x77b   : > { %v1230_v10 = vmul.f32 %v4469_v8, %v1229_v9 }
 0x77d   : > { %v1231_v11 = vmul.f32 0.5, %v1230_v10 }
 0x77f   : > { %v1232_v12 = vsub.f32 1.5, %v1231_v11 }
 0x781   : > { %v1233_v13 = vmul.f32 %v4469_v8, %v1232_v12 }
 0x783   : > { %v1237_v16 = vsel %vm1236_vm11, %v4469_v8, %v1233_v13 }
 0x784   : > { %v1238_v17 = vmul.f32 %v1237_v16, %v5015_v42  ;;  %v4237_v42 = vld [vmem:[#allocation7 + $0xe8] sm:$0xff] }
 0x785   : > { %1843 = vmatpush.bf16.msrb.mxu1 %v4237_v42 }
 0x786   : > { %v1242_v20 = vmul.f32 %v4437_v14, %v1238_v17 }
 0x788   : > { %v5027_v22 = vadd.f32 %v4438_v19, %v1242_v20 }
 0x789   : > { %1844 = vmatpush.bf16.msrb.mxu1 %v4236_v29 }
 0x78a   : > { %v1247_v23 = vpack.c.bf16 %v5027_v22, %v5027_v22 }
 0x78c   : > { %1458 = vmatmul.bf16.vlgmr.msra.gmra.mxu2 %v1247_v23  ;;  %1471 = vmatmul.bf16.vlgmr.msrb.gmra.mxu3 %v1247_v23 }
 0x78d   : > { %1484 = vmatmul.bf16.vlgmr.msrb.gmra.mxu0 %v1247_v23  ;;  %1497 = vmatmul.bf16.vlgmr.msra.gmra.mxu1 %v1247_v23 }
 0x78e   : > { %1845 = vmatpush.bf16.msrb.mxu1 %v4235_v33 }
 0x792   : > { %1846 = vmatpush.bf16.msrb.mxu1 %v4234_v37 }
 0x796   : > { %1847 = vmatpush.bf16.msrb.mxu1 %v4233_v38 }
 0x79a   : > { %1848 = vmatpush.bf16.msrb.mxu1 %v4232_v45 }
 0x80a   : > { %v1485_v54 = vpop.f32.mrf.mxu0  ;;  %v1498_v55 = vpop.f32.mrf.mxu1 }
 0x80b   : > { %v1486_v56 = vadd.f32 %v1485_v54, %v1284_v51  ;;  %v1499_v57 = vadd.f32 %v1498_v55, %v1285_v52 }
 0x80d   : > { %v1508_v53 = vmul.f32 0.044715, %v1486_v56  ;;  %v1509_v60 = vmul.f32 0.044715, %v1499_v57  ;;  %v1504_v28 = vmul.f32 0.5, %v1486_v56  ;;  %v1505_v29 = vmul.f32 0.5, %v1499_v57 }
 0x80f   : > { %v1512_v61 = vmul.f32 %v1508_v53, %v1486_v56  ;;  %v1513_v62 = vmul.f32 %v1509_v60, %v1499_v57  ;;  %v1459_v63 = vpop.f32.mrf.mxu2  ;;  %v1472_v0 = vpop.f32.mrf.mxu3  ;;  %v3781_v53 = vld [vmem:[#allocation2 + $0x168] sm:$0xf]  ;;  %v4262_v60 = vld [vmem:[#allocation2 + $0x170] sm:$0xf0] }
 0x810   : > { %v1460_v1 = vadd.f32 %v1459_v63, %v1282_v58  ;;  %v1473_v2 = vadd.f32 %v1472_v0, %v1283_v59  ;;  %v3783_v63 = vld [vmem:[#allocation2 + $0x174] sm:$0xf0]  ;;  %v3789_v0 = vld [vmem:[#allocation2 + $0x170] sm:$0xf] }
 0x811   : > { %v1516_v3 = vmul.f32 %v1512_v61, %v1486_v56  ;;  %v1517_v4 = vmul.f32 %v1513_v62, %v1499_v57  ;;  %v4261_v61 = vld [vmem:[#allocation2 + $0x16c] sm:$0xf]  ;;  %v3782_v62 = vor.u32 %v4262_v60, %v3781_v53  ;;  %v3717_v53 = vld [vmem:[#allocation2 + $0xe0] sm:$0xf] }
 0x812   : > { %v1506_v5 = vmul.f32 0.044715, %v1460_v1  ;;  %v1507_v6 = vmul.f32 0.044715, %v1473_v2  ;;  %v1487_v7 = vpop.f32.mrf.mxu0  ;;  %v1500_v8 = vpop.f32.mrf.mxu1  ;;  %v1502_v37 = vmul.f32 0.5, %v1460_v1  ;;  %v1503_v40 = vmul.f32 0.5, %v1473_v2 }
 0x813   : > { %v1520_v9 = vadd.f32 %v1516_v3, %v1486_v56  ;;  %v1521_v10 = vadd.f32 %v1517_v4, %v1499_v57  ;;  %2056 = vmatpush.bf16.msra.mxu2 %v3782_v62  ;;  %v3769_v7 = vld [vmem:[#allocation2 + $0x150] sm:$0xf]  ;;  %v4259_v8 = vld [vmem:[#allocation2 + $0x158] sm:$0xf0]  ;;  %v4245_v60 = vld [vmem:[#allocation2 + $0xe8] sm:$0xf0] }
 0x814   : > { %v1510_v11 = vmul.f32 %v1506_v5, %v1460_v1  ;;  %v1511_v12 = vmul.f32 %v1507_v6, %v1473_v2  ;;  %v3718_v62 = vor.u32 %v4245_v60, %v3717_v53 }
 0x815   : > { %v1524_v13 = vmul.f32 0.7978846, %v1520_v9  ;;  %v1525_v14 = vmul.f32 0.7978846, %v1521_v10  ;;  %v4258_v9 = vld [vmem:[#allocation2 + $0x154] sm:$0xf]  ;;  %v3770_v10 = vor.u32 %v4259_v8, %v3769_v7 }
 0x816   : > { %v1514_v16 = vmul.f32 %v1510_v11, %v1460_v1  ;;  %v1515_v17 = vmul.f32 %v1511_v12, %v1473_v2  ;;  %v3771_v11 = vld [vmem:[#allocation2 + $0x15c] sm:$0xf0]  ;;  %v3777_v12 = vld [vmem:[#allocation2 + $0x158] sm:$0xf] }
 0x817   : > { %v1461_v19 = vpop.f32.mrf.mxu2  ;;  %v1474_v20 = vpop.f32.mrf.mxu3  ;;  %4470 = vtanh.f32 %v1524_v13  ;;  %v4260_v13 = vld [vmem:[#allocation2 + $0x160] sm:$0xf0]  ;;  %2057 = vmatpush.bf16.msra.mxu2 %v3770_v10 }
 0x818   : > { %4472 = vtanh.f32 %v1525_v14  ;;  %v1518_v23 = vadd.f32 %v1514_v16, %v1460_v1  ;;  %v1519_v24 = vadd.f32 %v1515_v17, %v1473_v2  ;;  %v4263_v1 = vld [vmem:[#allocation2 + $0x178] sm:$0xf0]  ;;  %v3786_v2 = vor.u32 %v4261_v61, %v3783_v63  ;;  %v3757_v17 = vld [vmem:[#allocation2 + $0x138] sm:$0xf]  ;;  %v4256_v19 = vld [vmem:[#allocation2 + $0x140] sm:$0xf0] }
 0x819   : > { %v3790_v3 = vor.u32 %v4263_v1, %v3789_v0  ;;  %v3774_v14 = vor.u32 %v4258_v9, %v3771_v11  ;;  %v3778_v16 = vor.u32 %v4260_v13, %v3777_v12  ;;  %v4255_v20 = vld [vmem:[#allocation2 + $0x13c] sm:$0xf]  ;;  %v3697_v63 = vld [vmem:[#allocation2 + $0xc0] sm:$0xf]  ;;  %v4241_v0 = vld [vmem:[#allocation2 + $0xc8] sm:$0xf0] }
 0x81a   : > { %v1522_v25 = vmul.f32 0.7978846, %v1518_v23  ;;  %v1523_v26 = vmul.f32 0.7978846, %v1519_v24  ;;  %2069 = vmatpush.bf16.msrb.mxu3 %v3786_v2  ;;  %v3758_v23 = vor.u32 %v4256_v19, %v3757_v17  ;;  %v3759_v24 = vld [vmem:[#allocation2 + $0x144] sm:$0xf0]  ;;  %v3698_v2 = vor.u32 %v4241_v0, %v3697_v63 }
 0x81b   : > { %2082 = vmatpush.bf16.msrb.mxu0 %v3790_v3  ;;  %v4240_v1 = vld [vmem:[#allocation2 + $0xc4] sm:$0xf]  ;;  %v3699_v3 = vld [vmem:[#allocation2 + $0xcc] sm:$0xf0]  ;;  %v4440_v19 = vld [vmem:[%s5212_s14] ss:$0 sm:$0xff] }
 0x81c   : > { %4474 = vtanh.f32 %v1522_v25  ;;  %v3765_v25 = vld [vmem:[#allocation2 + $0x140] sm:$0xf]  ;;  %2058 = vmatpush.bf16.msra.mxu2 %v3758_v23 }
 0x81d   : > { %v4471_v42 = vpop.eup %4470  ;;  %4476 = vtanh.f32 %v1523_v26  ;;  %v4257_v26 = vld [vmem:[#allocation2 + $0x148] sm:$0xf0] }
 0x81e   : > { %v4473_v27 = vpop.eup %4472  ;;  %v1532_v15 = vadd.f32 1.0, %v4471_v42  ;;  %2070 = vmatpush.bf16.msrb.mxu3 %v3774_v14  ;;  %v3762_v42 = vor.u32 %v4255_v20, %v3759_v24  ;;  %v4441_v24 = vld [vmem:[%s5213_s15] ss:$0 sm:$0xff] }
 0x81f   : > { %v1533_v30 = vadd.f32 1.0, %v4473_v27  ;;  %2083 = vmatpush.bf16.msrb.mxu0 %v3778_v16  ;;  %v3766_v27 = vor.u32 %v4257_v26, %v3765_v25 }
 0x820   : > { %v1536_v31 = vmul.f32 %v1532_v15, %v1504_v28  ;;  %v3745_v28 = vld [vmem:[#allocation2 + $0x120] sm:$0xf]  ;;  %v4253_v15 = vld [vmem:[#allocation2 + $0x128] sm:$0xf0] }
 0x821   : > { %v1537_v32 = vmul.f32 %v1533_v30, %v1505_v29  ;;  %v4252_v29 = vld [vmem:[#allocation2 + $0x124] sm:$0xf]  ;;  %v3746_v30 = vor.u32 %v4253_v15, %v3745_v28 }
 0x822   : > { %v4475_v33 = vpop.eup %4474  ;;  %v1540_v34 = vpack.c.bf16 %v1536_v31, %v1536_v31  ;;  %2071 = vmatpush.bf16.msrb.mxu3 %v3762_v42  ;;  %v3747_v31 = vld [vmem:[#allocation2 + $0x12c] sm:$0xf0] }
 0x823   : > { %v4477_v35 = vpop.eup %4476  ;;  %v1541_v36 = vpack.c.bf16 %v1537_v32, %v1537_v32  ;;  %v1530_v39 = vadd.f32 1.0, %v4475_v33  ;;  %2084 = vmatpush.bf16.msrb.mxu0 %v3766_v27  ;;  %v3753_v32 = vld [vmem:[#allocation2 + $0x128] sm:$0xf]  ;;  %v4254_v33 = vld [vmem:[#allocation2 + $0x130] sm:$0xf0]  ;;  %2059 = vmatpush.bf16.msra.mxu2 %v3746_v30 }
 0x824   : > { %1836 = vmatmul.bf16.vlgmr.msra.gmra.mxu0 %v1540_v34  ;;  %v1531_v41 = vadd.f32 1.0, %v4477_v35  ;;  %v3750_v34 = vor.u32 %v4252_v29, %v3747_v31  ;;  %v3754_v35 = vor.u32 %v4254_v33, %v3753_v32  ;;  %v3694_v27 = vld [vmem:[%s5203_s5 + $0x3] sm:$0x7] }
 0x825   : > { %1849 = vmatmul.bf16.vlgmr.msrb.gmra.mxu1 %v1541_v36  ;;  %v1534_v38 = vmul.f32 %v1530_v39, %v1502_v37  ;;  %v3733_v36 = vld [vmem:[#allocation2 + $0x108] sm:$0xf]  ;;  %v4250_v37 = vld [vmem:[#allocation2 + $0x110] sm:$0xf0]  ;;  %v4249_v39 = vld [vmem:[#allocation2 + $0x10c] sm:$0xf] }
 0x826   : > { %v1535_v21 = vmul.f32 %v1531_v41, %v1503_v40  ;;  %2072 = vmatpush.bf16.msrb.mxu3 %v3750_v34  ;;  %v3734_v40 = vor.u32 %v4250_v37, %v3733_v36  ;;  %v3735_v41 = vld [vmem:[#allocation2 + $0x114] sm:$0xf0]  ;;  %v1924_v28 = vperm.slane %v3694_v27, 2  ;;  %v1922_v29 = vperm.slane %v3694_v27, 0 }
 0x827   : > { %v1538_v43 = vpack.c.bf16 %v1534_v38, %v1534_v38  ;;  %2085 = vmatpush.bf16.msrb.mxu0 %v3754_v35  ;;  %v3741_v38 = vld [vmem:[#allocation2 + $0x110] sm:$0xf]  ;;  %v1923_v30 = vperm.slane %v3694_v27, 1 }
 0x828   : > { %v1539_v44 = vpack.c.bf16 %v1535_v21, %v1535_v21  ;;  %v4251_v21 = vld [vmem:[#allocation2 + $0x118] sm:$0xf0]  ;;  %2060 = vmatpush.bf16.msra.mxu2 %v3734_v40 }
 0x829   : > { %1810 = vmatmul.bf16.vlgmr.msrb.gmra.mxu2 %v1538_v43  ;;  %v3738_v43 = vor.u32 %v4249_v39, %v3735_v41 }
 0x82a   : > { %1823 = vmatmul.bf16.vlgmr.msra.gmra.mxu3 %v1539_v44  ;;  %v3742_v44 = vor.u32 %v4251_v21, %v3741_v38 }
 0x82b   : > { %2073 = vmatpush.bf16.msrb.mxu3 %v3738_v43 }
 0x82c   : > { %2086 = vmatpush.bf16.msrb.mxu0 %v3742_v44 }
 0x8a1   : > { %v1837_v45 = vpop.f32.mrf.mxu0 }
 0x8a2   : > { %v1850_v46 = vpop.f32.mrf.mxu1 }
 0x8a9   : > { %v1839_v47 = vpop.f32.mrf.mxu0 }
 0x8aa   : > { %v1852_v49 = vpop.f32.mrf.mxu1  ;;  %v4246_v47 = vld [vmem:[#allocation2 + $0xf4] sm:$0xf] }
 0x8ab   : > { %v3723_v49 = vld [vmem:[#allocation2 + $0xfc] sm:$0xf0] }
 0x8ac   : > { %v1811_v50 = vpop.f32.mrf.mxu2 }
 0x8ad   : > { %v1812_v51 = vadd.f32 %v4439_v48, %v1811_v50  ;;  %v1824_v52 = vpop.f32.mrf.mxu3  ;;  %v3729_v50 = vld [vmem:[#allocation2 + $0xf8] sm:$0xf] }
 0x8af   : > { %v1825_v54 = vadd.f32 %v1824_v52, %v1812_v51  ;;  %v4248_v51 = vld [vmem:[#allocation2 + $0x100] sm:$0xf0]  ;;  %v3726_v52 = vor.u32 %v4246_v47, %v3723_v49 }
 0x8b1   : > { %v1838_v55 = vadd.f32 %v1837_v45, %v1825_v54  ;;  %v3721_v45 = vld [vmem:[#allocation2 + $0xf0] sm:$0xf]  ;;  %v3730_v54 = vor.u32 %v4248_v51, %v3729_v50  ;;  %2074 = vmatpush.bf16.msrb.mxu3 %v3726_v52 }
 0x8b3   : > { %v1851_v56 = vadd.f32 %v1850_v46, %v1838_v55  ;;  %v4247_v46 = vld [vmem:[#allocation2 + $0xf8] sm:$0xf0]  ;;  %2087 = vmatpush.bf16.msrb.mxu0 %v3730_v54  ;;  %v3709_v55 = vld [vmem:[#allocation2 + $0xd8] sm:$0xf] }
 0x8b4   : > { %v1813_v57 = vpop.f32.mrf.mxu2  ;;  %v3722_v48 = vor.u32 %v4247_v46, %v3721_v45 }
 0x8b5   : > { %v1826_v58 = vpop.f32.mrf.mxu3  ;;  %v1854_v59 = vadd.f32 %v1851_v56, %v5027_v22  ;;  %v4244_v56 = vld [vmem:[#allocation2 + $0xe0] sm:$0xf0]  ;;  %v4243_v57 = vld [vmem:[#allocation2 + $0xdc] sm:$0xf] }
 0x8b6   : > { %2061 = vmatpush.bf16.msra.mxu2 %v3722_v48  ;;  %v3710_v58 = vor.u32 %v4244_v56, %v3709_v55 }
 0x8b7   : > { %1857 = vadd.xlane.f32.xlu2 %v1854_v59  ;;  %2088 = vmatpush.bf16.msrb.mxu0 %v3718_v62 }
 0x8ba   : > { %2062 = vmatpush.bf16.msra.mxu2 %v3710_v58 }
 0x8be   : > { %2063 = vmatpush.bf16.msra.mxu2 %v3698_v2 }
 0x92a   : > { %v1858_v4 = vpop.xlane.xlu2 %1857 }
 0x92b   : > { %v1859_v5 = vmul.f32 %v1858_v4, %v4916_v18  ;;  %v3705_v4 = vld [vmem:[#allocation2 + $0xc8] sm:$0xf] }
 0x92d   : > { %v5039_v6 = vsub.f32 %v1854_v59, %v1859_v5  ;;  %v3711_v59 = vld [vmem:[#allocation2 + $0xe4] sm:$0xf0]  ;;  %v4242_v5 = vld [vmem:[#allocation2 + $0xd0] sm:$0xf0] }
 0x92e   : > { %v3714_v61 = vor.u32 %v4243_v57, %v3711_v59  ;;  %v3706_v7 = vor.u32 %v4242_v5, %v3705_v4 }
 0x92f   : > { %v1861_v22 = vmul.f32 %v5039_v6, %v5039_v6 }
 0x930   : > { %2075 = vmatpush.bf16.msrb.mxu3 %v3714_v61  ;;  %2089 = vmatpush.bf16.msrb.mxu0 %v3706_v7 }
 0x931   : > { %1862 = vadd.xlane.f32.xlu0 %v1861_v22  ;;  %v3702_v22 = vor.u32 %v4240_v1, %v3699_v3 }
 0x934   : > { %2076 = vmatpush.bf16.msrb.mxu3 %v3702_v22 }
 0x9a4   : > { %v1863_v8 = vpop.xlane.xlu0 %1862 }
 0x9a5   : > { %v1864_v9 = vmul.f32 %v1863_v8, %v4916_v18 }
 0x9a7   : > { %v1865_v10 = vadd.f32 1e-12, %v1864_v9 }
 0x9a9   : > { %4478 = vrsqrt.f32 %v1865_v10  ;;  %vm1872_vm13 = vweird.f32 %v1865_v10 }
 0x9af   : > { %v4479_v11 = vpop.eup %4478 }
 0x9b0   : > { %v1867_v12 = vmul.f32 %v4479_v11, %v1865_v10  ;;  %vm1873_vm12 = vweird.f32 %v4479_v11 }
 0x9b1   : > { %vm1874_vm14 = vmor %vm1872_vm13, %vm1873_vm12 }
 0x9b2   : > { %v1868_v13 = vmul.f32 %v4479_v11, %v1867_v12 }
 0x9b4   : > { %v1869_v14 = vmul.f32 0.5, %v1868_v13 }
 0x9b6   : > { %v1870_v16 = vsub.f32 1.5, %v1869_v14 }
 0x9b8   : > { %v1871_v17 = vmul.f32 %v4479_v11, %v1870_v16 }
 0x9ba   : > { %v1875_v20 = vsel %vm1874_vm14, %v4479_v11, %v1871_v17 }
 0x9bb   : > { %v1876_v23 = vmul.f32 %v1875_v20, %v5039_v6 }
 0x9bd   : > { %v1880_v25 = vmul.f32 %v4440_v19, %v1876_v23 }
 0x9bf   : > { %v5051_v26 = vadd.f32 %v4441_v24, %v1880_v25 }
 0x9c1   : > { %v1885_v42 = vpack.c.bf16 %v5051_v26, %v5051_v26 }
 0x9c3   : > { %2064 = vmatmul.bf16.vlgmr.msra.gmra.mxu2 %v1885_v42  ;;  %2077 = vmatmul.bf16.vlgmr.msrb.gmra.mxu3 %v1885_v42 }
 0x9c4   : > { %2090 = vmatmul.bf16.vlgmr.msrb.gmra.mxu0 %v1885_v42 }
 0xa41   : > { %v2091_v15 = vpop.f32.mrf.mxu0 }
 0xa42   : > { %v2092_v6 = vadd.f32 %v2091_v15, %v1924_v28 }
 0xa44   : > { %v5058_v31 = vpack.c.bf16 %v2092_v6, %v2092_v6 }
 0xa46   : > { %v2065_v32 = vpop.f32.mrf.mxu2  ;;  %v2078_v33 = vpop.f32.mrf.mxu3  ;;  %v2134_v34 = vsel %vm926_vm5, %v5058_v31, 0 }
 0xa47   : > { %v2066_v35 = vadd.f32 %v2065_v32, %v1922_v29  ;;  %v2079_v36 = vadd.f32 %v2078_v33, %v1923_v30  ;;  %2143 = vmatpush.bf16.msrb.mxu2 %v2134_v34 }
 0xa49   : > { %v2095_v37 = vpack.c.bf16 %v2066_v35, %v2066_v35  ;;  %v2096_v39 = vpack.c.bf16 %v2079_v36, %v2079_v36  ;;  %v2093_v40 = vpop.f32.mrf.mxu0 }
 0xa4b   : > { %2211 = vrot.lane.b32.xlu0 %v2096_v39, %s4715_s25  ;;  %2153 = vrot.lane.b32.xlu1 %v2096_v39, %s4716_s26  ;;  %v2101_v41 = vsel %vm888_vm4, %v2096_v39, 0 }
 0xa4c   : > { %2150 = vrot.lane.b32.xlu2 %v2095_v37, %s4716_s26  ;;  %2110 = vmatpush.bf16.xpose.msra.mxu1 %v2101_v41 }
 0xa4e   : > { %v2067_v38 = vpop.f32.mrf.mxu2  ;;  %v2080_v21 = vpop.f32.mrf.mxu3 }
 0xa53   : > { %2268 = vrot.lane.b32.xlu1 %v2096_v39, %s4717_s4  ;;  %2209 = vrot.lane.b32.xlu0 %v2095_v37, %s4715_s25 }
 0xa54   : > { %2266 = vrot.lane.b32.xlu2 %v2095_v37, %s4717_s4  ;;  %3791 = vmatmul.msk.bf16.vlgmr.msra.gmra.mxu1 %vm888_vm4, %v2095_v37 }
 0xaa6   : > { %v2151_v47 = vpop.permute.xlu2 %2150 }
 0xaae   : > { %v2267_v55 = vpop.permute.xlu2 %2266 }
 0xabd   : > { %v2212_v43 = vpop.permute.xlu0 %2211  ;;  %v2154_v44 = vpop.permute.xlu1 %2153 }
 0xabe   : > { %v2217_v45 = vsel %vm888_vm4, %v2212_v43, 0  ;;  %v2159_v46 = vsel %vm888_vm4, %v2154_v44, 0 }
 0xabf   : > { %2168 = vmatpush.bf16.xpose.msra.mxu3 %v2159_v46  ;;  %2226 = vmatpush.bf16.xpose.msrb.mxu1 %v2217_v45 }
 0xac5   : > { %v2269_v48 = vpop.permute.xlu1 %2268  ;;  %v2210_v49 = vpop.permute.xlu0 %2209 }
 0xac6   : > { %v2274_v50 = vsel %vm888_vm4, %v2269_v48, 0  ;;  %3793 = vmatmul.msk.bf16.vlgmr.msra.gmra.mxu3 %vm888_vm4, %v2151_v47  ;;  %3795 = vmatmul.msk.bf16.vlgmr.msrb.gmra.mxu1 %vm888_vm4, %v2210_v49 }
 0xac7   : > { %2283 = vmatpush.bf16.xpose.msrb.mxu3 %v2274_v50  ;;  %v4271_v50 = vld [vmem:[%s5204_s6 + $0x78] sm:$0xff] }
 0xac8   : > { %2409 = vmatpush.bf16.msra.mxu1 %v4271_v50  ;;  %v4293_v50 = vld [vmem:[#allocation5 + $0x1ac] sm:$0xf] }
 0xad1   : > { %v2112_v51 = vpop.f32.mrf.mxu1 }
 0xad2   : > { %v2116_v52 = vmul.f32 0.17677669, %v2112_v51  ;;  %v4270_v51 = vld [vmem:[%s5204_s6 + $0x70] sm:$0xff] }
 0xad3   : > { %2410 = vmatpush.bf16.msra.mxu1 %v4270_v51  ;;  %v3943_v51 = vld [vmem:[#allocation5 + $0x1b8] sm:$0xf0] }
 0xad4   : > { %v2117_v54 = vsel %vm909_vm6, %v2116_v52, -inf }
 0xad5   : > { %2118 = vmax.xlane.f32.xlu1 %v2117_v54 }
 0xad6   : > { %3797 = vmatmul.msk.bf16.vlgmr.msrb.gmra.mxu3 %vm888_vm4, %v2267_v55 }
 0xad9   : > { %v2114_v56 = vpop.f32.mrf.mxu1 }
 0xb43   : > { %v2228_v57 = vpop.f32.mrf.mxu1 }
 0xb44   : > { %v2232_v58 = vmul.f32 0.17677669, %v2228_v57 }
 0xb46   : > { %v2233_v59 = vsel %vm909_vm6, %v2232_v58, -inf }
 0xb47   : > { %2234 = vmax.xlane.f32.xlu2 %v2233_v59 }
 0xb48   : > { %v2119_v53 = vpop.xlane.xlu1 %2118 }
 0xb49   : > { %v2120_v60 = vsub.f32 %v2116_v52, %v2119_v53  ;;  %v2170_v61 = vpop.f32.mrf.mxu3  ;;  %v4269_v52 = vld [vmem:[%s5204_s6 + $0x68] sm:$0xff]  ;;  %v4268_v53 = vld [vmem:[%s5204_s6 + $0x60] sm:$0xff] }
 0xb4a   : > { %v2174_v62 = vmul.f32 0.17677669, %v2170_v61  ;;  %2411 = vmatpush.bf16.msra.mxu1 %v4269_v52  ;;  %v4266_v61 = vld [vmem:[%s5204_s6 + $0x50] sm:$0xff]  ;;  %v3946_v52 = vor.u32 %v4293_v50, %v3943_v51 }
 0xb4b   : > { %v2121_v63 = vmul.f32 1.442695, %v2120_v60  ;;  %v2230_v0 = vpop.f32.mrf.mxu1  ;;  %v4267_v60 = vld [vmem:[%s5204_s6 + $0x58] sm:$0xff] }
 0xb4c   : > { %v2175_v1 = vsel %vm909_vm6, %v2174_v62, -inf }
 0xb4d   : > { %4480 = vpow2.f32 %v2121_v63  ;;  %2176 = vmax.xlane.f32.xlu0 %v2175_v1  ;;  %v4264_v63 = vld [vmem:[%s5204_s6 + $0x40] sm:$0xff] }
 0xb4e   : > { %2412 = vmatpush.bf16.msra.mxu1 %v4268_v53  ;;  %v4291_v53 = vld [vmem:[#allocation5 + $0x194] sm:$0xf0] }
 0xb51   : > { %v2172_v2 = vpop.f32.mrf.mxu3 }
 0xb52   : > { %2413 = vmatpush.bf16.msra.mxu1 %v4267_v60 }
 0xb53   : > { %v4481_v3 = vpop.eup %4480 }
 0xb54   : > { %v2123_v4 = vsel %vm909_vm6, %v4481_v3, 0.0 }
 0xb55   : > { %2124 = vadd.xlane.f32.xlu0 %v2123_v4 }
 0xb56   : > { %2414 = vmatpush.bf16.msra.mxu1 %v4266_v61 }
 0xb59   : > { %v2285_v5 = vpop.f32.mrf.mxu3 }
 0xb5a   : > { %v2289_v22 = vmul.f32 0.17677669, %v2285_v5 }
 0xb5c   : > { %v2290_v7 = vsel %vm909_vm6, %v2289_v22, -inf }
 0xb5d   : > { %2291 = vmax.xlane.f32.xlu1 %v2290_v7  ;;  %v4442_v7 = vld [vmem:[%s5205_s7 + $0x1] ss:$0 sm:$0xff] }
 0xb61   : > { %v2287_v8 = vpop.f32.mrf.mxu3 }
 0xb76   : > { %2188 = vrot.lane.b32.xlu1 %v5058_v31, %s4716_s26 }
 0xbba   : > { %v2235_v9 = vpop.xlane.xlu2 %2234 }
 0xbbb   : > { %v2236_v10 = vsub.f32 %v2232_v58, %v2235_v9 }
 0xbbd   : > { %v2237_v11 = vmul.f32 1.442695, %v2236_v10 }
 0xbbf   : > { %4482 = vpow2.f32 %v2237_v11 }
 0xbc0   : > { %v2177_v12 = vpop.xlane.xlu0 %2176 }
 0xbc1   : > { %v2178_v13 = vsub.f32 %v2174_v62, %v2177_v12  ;;  %v4265_v62 = vld [vmem:[%s5204_s6 + $0x48] sm:$0xff]  ;;  %v3965_v12 = vld [vmem:[#allocation5 + $0x1e0] sm:$0xf] }
 0xbc2   : > { %2415 = vmatpush.bf16.msra.mxu1 %v4265_v62  ;;  %v4289_v62 = vld [vmem:[#allocation5 + $0x18c] sm:$0xf] }
 0xbc3   : > { %v2179_v14 = vmul.f32 1.442695, %v2178_v13  ;;  %v4302_v13 = vld [vmem:[#allocation5 + $0x1ec] sm:$0xf0] }
 0xbc5   : > { %v4483_v16 = vpop.eup %4482  ;;  %4484 = vpow2.f32 %v2179_v14  ;;  %v4300_v14 = vld [vmem:[#allocation5 + $0x1e4] sm:$0xf] }
 0xbc6   : > { %v2239_v17 = vsel %vm909_vm6, %v4483_v16, 0.0  ;;  %2416 = vmatpush.bf16.msra.mxu1 %v4264_v63  ;;  %v3927_v63 = vld [vmem:[#allocation5 + $0x198] sm:$0xf0] }
 0xbc7   : > { %2240 = vadd.xlane.f32.xlu0 %v2239_v17  ;;  %v3967_v17 = vld [vmem:[#allocation5 + $0x1f0] sm:$0xf0] }
 0xbc8   : > { %v2125_v19 = vpop.xlane.xlu0 %2124 }
 0xbc9   : > { %4486 = vrcp.f32 %v2125_v19  ;;  %v3973_v19 = vld [vmem:[#allocation5 + $0x1e8] sm:$0xf] }
 0xbcb   : > { %v4485_v20 = vpop.eup %4484 }
 0xbcc   : > { %v2181_v23 = vsel %vm909_vm6, %v4485_v20, 0.0 }
 0xbcd   : > { %2182 = vadd.xlane.f32.xlu2 %v2181_v23  ;;  %v3970_v23 = vor.u32 %v4300_v14, %v3967_v17  ;;  %v4282_v14 = vld [vmem:[#allocation5 + $0x14c] sm:$0xf0] }
 0xbcf   : > { %v4487_v24 = vpop.eup %4486  ;;  %2673 = vmatpush.bf16.msra.mxu3 %v3970_v23  ;;  %v4283_v23 = vld [vmem:[#allocation5 + $0x154] sm:$0xf0] }
 0xbd0   : > { %v2127_v25 = vmul.f32 %v4487_v24, %v4481_v3  ;;  %v2292_v42 = vpop.xlane.xlu1 %2291 }
 0xbd1   : > { %v2293_v27 = vsub.f32 %v2289_v22, %v2292_v42  ;;  %v3975_v42 = vld [vmem:[#allocation5 + $0x1f8] sm:$0xf0] }
 0xbd2   : > { %v2128_v28 = vpack.c.bf16 %v2127_v25, %v2127_v25  ;;  %v4301_v25 = vld [vmem:[#allocation5 + $0x1ec] sm:$0xf] }
 0xbd3   : > { %v2294_v15 = vmul.f32 1.442695, %v2293_v27  ;;  %v3978_v27 = vor.u32 %v4301_v25, %v3975_v42  ;;  %v4281_v42 = vld [vmem:[#allocation5 + $0x14c] sm:$0xf] }
 0xbd4   : > { %3792 = vmatmul.msk.bf16.vlgmr.msrb.gmra.mxu2 %vm909_vm6, %v2128_v28 }
 0xbd5   : > { %4488 = vpow2.f32 %v2294_v15  ;;  %2699 = vmatpush.bf16.msrb.mxu1 %v3978_v27  ;;  %v3895_v27 = vld [vmem:[#allocation5 + $0x158] sm:$0xf0] }
 0xbdb   : > { %v4489_v6 = vpop.eup %4488  ;;  %2245 = vrot.lane.b32.xlu0 %v5058_v31, %s4715_s25 }
 0xbdc   : > { %v2296_v29 = vsel %vm909_vm6, %v4489_v6, 0.0 }
 0xbdd   : > { %2297 = vadd.xlane.f32.xlu2 %v2296_v29  ;;  %v3949_v29 = vld [vmem:[#allocation5 + $0x1c0] sm:$0xf] }
 0xbe8   : > { %v2189_v30 = vpop.permute.xlu1 %2188 }
 0xbe9   : > { %v2194_v32 = vsel %vm926_vm5, %v2189_v30, 0  ;;  %v4298_v30 = vld [vmem:[#allocation5 + $0x1cc] sm:$0xf0] }
 0xbea   : > { %2203 = vmatpush.bf16.msra.mxu0 %v2194_v32  ;;  %v4296_v32 = vld [vmem:[#allocation5 + $0x1c4] sm:$0xf] }
 0xbf5   : > { %2302 = vrot.lane.b32.xlu2 %v5058_v31, %s4717_s4 }
 0xc3a   : > { %v2241_v33 = vpop.xlane.xlu0 %2240 }
 0xc40   : > { %v2183_v34 = vpop.xlane.xlu2 %2182 }
 0xc41   : > { %4490 = vrcp.f32 %v2183_v34  ;;  %v3951_v34 = vld [vmem:[#allocation5 + $0x1d0] sm:$0xf0] }
 0xc42   : > { %4492 = vrcp.f32 %v2241_v33  ;;  %v3950_v33 = vor.u32 %v4298_v30, %v3949_v29  ;;  %v4276_v29 = vld [vmem:[#allocation5 + $0x124] sm:$0xf] }
 0xc47   : > { %v4491_v35 = vpop.eup %4490 }
 0xc48   : > { %v2185_v36 = vmul.f32 %v4491_v35, %v4485_v20  ;;  %v4493_v37 = vpop.eup %4492  ;;  %v4303_v20 = vld [vmem:[#allocation5 + $0x1f4] sm:$0xf0]  ;;  %v3957_v35 = vld [vmem:[#allocation5 + $0x1c8] sm:$0xf] }
 0xc49   : > { %v2243_v40 = vmul.f32 %v4493_v37, %v4483_v16  ;;  %v3966_v16 = vor.u32 %v4302_v13, %v3965_v12  ;;  %v3974_v24 = vor.u32 %v4303_v20, %v3973_v19  ;;  %v3954_v37 = vor.u32 %v4296_v32, %v3951_v34  ;;  %v3885_v13 = vld [vmem:[#allocation5 + $0x140] sm:$0xf]  ;;  %v3887_v19 = vld [vmem:[#allocation5 + $0x150] sm:$0xf0]  ;;  %v3893_v20 = vld [vmem:[#allocation5 + $0x148] sm:$0xf] }
 0xc4a   : > { %v2186_v39 = vpack.c.bf16 %v2185_v36, %v2185_v36  ;;  %v4299_v36 = vld [vmem:[#allocation5 + $0x1d4] sm:$0xf0]  ;;  %v3886_v17 = vor.u32 %v4282_v14, %v3885_v13  ;;  %v3894_v25 = vor.u32 %v4283_v23, %v3893_v20  ;;  %v3871_v32 = vld [vmem:[#allocation5 + $0x130] sm:$0xf0]  ;;  %v4332_v13 = vld [vmem:[#allocation7 + $0x1e0] sm:$0xff] }
 0xc4b   : > { %v2244_v21 = vpack.c.bf16 %v2243_v40, %v2243_v40  ;;  %v4297_v40 = vld [vmem:[#allocation5 + $0x1cc] sm:$0xf]  ;;  %2674 = vmatpush.bf16.msra.mxu3 %v3954_v37  ;;  %v4279_v34 = vld [vmem:[#allocation5 + $0x134] sm:$0xf0]  ;;  %v4308_v20 = vld [vmem:[#allocation7 + $0x120] sm:$0xff] }
 0xc4c   : > { %3794 = vmatmul.msk.bf16.vlgmr.msra.gmra.mxu0 %vm909_vm6, %v2186_v39  ;;  %v3958_v39 = vor.u32 %v4299_v36, %v3957_v35  ;;  %v3874_v35 = vor.u32 %v4276_v29, %v3871_v32  ;;  %v4277_v37 = vld [vmem:[#allocation5 + $0x12c] sm:$0xf]  ;;  %v4316_v23 = vld [vmem:[#allocation7 + $0x160] sm:$0xff]  ;;  %v4314_v29 = vld [vmem:[#allocation7 + $0x150] sm:$0xff] }
 0xc4d   : > { %v2246_v41 = vpop.permute.xlu0 %2245  ;;  %v4309_v14 = vld [vmem:[#allocation7 + $0x128] sm:$0xff]  ;;  %v4328_v32 = vld [vmem:[#allocation7 + $0x1c0] sm:$0xff] }
 0xc4e   : > { %v2251_v38 = vsel %vm926_vm5, %v2246_v41, 0  ;;  %v3959_v41 = vld [vmem:[#allocation5 + $0x1d8] sm:$0xf0] }
 0xc4f   : > { %2260 = vmatpush.bf16.msra.mxu2 %v2251_v38  ;;  %v3962_v38 = vor.u32 %v4297_v40, %v3959_v41  ;;  %v3853_v40 = vld [vmem:[#allocation5 + $0x100] sm:$0xf] }
 0xc50   : > { %v2298_v43 = vpop.xlane.xlu2 %2297 }
 0xc51   : > { %4494 = vrcp.f32 %v2298_v43  ;;  %v4294_v43 = vld [vmem:[#allocation5 + $0x1ac] sm:$0xf0]  ;;  %2700 = vmatpush.bf16.msrb.mxu1 %v3962_v38 }
 0xc52   : > { %3796 = vmatmul.msk.bf16.vlgmr.msra.gmra.mxu2 %vm909_vm6, %v2244_v21  ;;  %v3933_v21 = vld [vmem:[#allocation5 + $0x1a0] sm:$0xf]  ;;  %v4274_v38 = vld [vmem:[#allocation5 + $0x10c] sm:$0xf0] }
 0xc53   : > { %2660 = vmatpush.bf16.msrb.mxu2 %v3966_v16  ;;  %v4280_v16 = vld [vmem:[#allocation5 + $0x144] sm:$0xf] }
 0xc55   : > { %2701 = vmatpush.bf16.msrb.mxu1 %v3946_v52  ;;  %v4327_v52 = vld [vmem:[#allocation7 + $0x1b8] sm:$0xff] }
 0xc57   : > { %v4495_v31 = vpop.eup %4494  ;;  %v2145_v44 = vpop.f32.mrf.mxu2  ;;  %2661 = vmatpush.bf16.msrb.mxu2 %v3950_v33  ;;  %v3877_v33 = vld [vmem:[#allocation5 + $0x128] sm:$0xf] }
 0xc58   : > { %v2300_v45 = vmul.f32 %v4495_v31, %v4489_v6  ;;  %v2303_v46 = vpop.permute.xlu2 %2302  ;;  %v4292_v31 = vld [vmem:[#allocation5 + $0x1a4] sm:$0xf]  ;;  %v3878_v36 = vor.u32 %v4279_v34, %v3877_v33  ;;  %v4305_v33 = vld [vmem:[#allocation7 + $0x108] sm:$0xff] }
 0xc59   : > { %v2308_v47 = vsel %vm926_vm5, %v2303_v46, 0  ;;  %v3941_v46 = vld [vmem:[#allocation5 + $0x1a8] sm:$0xf] }
 0xc5a   : > { %v2301_v48 = vpack.c.bf16 %v2300_v45, %v2300_v45  ;;  %2317 = vmatpush.bf16.msrb.mxu0 %v2308_v47  ;;  %v3935_v45 = vld [vmem:[#allocation5 + $0x1b0] sm:$0xf0]  ;;  %v4295_v47 = vld [vmem:[#allocation5 + $0x1b4] sm:$0xf0]  ;;  %v4313_v34 = vld [vmem:[#allocation7 + $0x148] sm:$0xff] }
 0xc5d   : > { %3798 = vmatmul.msk.bf16.vlgmr.msrb.gmra.mxu0 %vm909_vm6, %v2301_v48  ;;  %v3938_v48 = vor.u32 %v4292_v31, %v3935_v45  ;;  %v3854_v31 = vor.u32 %v4274_v38, %v3853_v40  ;;  %v3861_v45 = vld [vmem:[#allocation5 + $0x108] sm:$0xf] }
 0xc5e   : > { %2686 = vmatpush.bf16.msra.mxu0 %v3974_v24  ;;  %v3890_v24 = vor.u32 %v4280_v16, %v3887_v19  ;;  %v4317_v16 = vld [vmem:[#allocation7 + $0x168] sm:$0xff]  ;;  %v4331_v19 = vld [vmem:[#allocation7 + $0x1d8] sm:$0xff] }
 0xc5f   : > { %v2147_v49 = vpop.f32.mrf.mxu2  ;;  %2675 = vmatpush.bf16.msra.mxu3 %v3938_v48 }
 0xc60   : > { %v3942_v49 = vor.u32 %v4295_v47, %v3941_v46  ;;  %v4275_v46 = vld [vmem:[#allocation5 + $0x114] sm:$0xf0]  ;;  %v4273_v47 = vld [vmem:[#allocation5 + $0x10c] sm:$0xf] }
 0xc61   : > { %v3862_v48 = vor.u32 %v4275_v46, %v3861_v45 }
 0xc62   : > { %2687 = vmatpush.bf16.msra.mxu0 %v3958_v39  ;;  %v3879_v39 = vld [vmem:[#allocation5 + $0x138] sm:$0xf0] }
 0xc63   : > { %v3882_v41 = vor.u32 %v4277_v37, %v3879_v39  ;;  %v4312_v37 = vld [vmem:[#allocation7 + $0x140] sm:$0xff] }
 0xc66   : > { %2688 = vmatpush.bf16.msra.mxu0 %v3942_v49  ;;  %v3863_v49 = vld [vmem:[#allocation5 + $0x118] sm:$0xf0] }
 0xc67   : > { %v3866_v50 = vor.u32 %v4273_v47, %v3863_v49 }
 0xcc9   : > { %v2205_v54 = vpop.f32.mrf.mxu0 }
 0xcca   : > { %2324 = vrot.lane.b32.xlu1 %v2205_v54, %s4717_s4  ;;  %v3917_v54 = vld [vmem:[#allocation5 + $0x180] sm:$0xf] }
 0xcd1   : > { %v2207_v55 = vpop.f32.mrf.mxu0 }
 0xcd2   : > { %v4290_v55 = vld [vmem:[#allocation5 + $0x18c] sm:$0xf0] }
 0xcd5   : > { %v2262_v56 = vpop.f32.mrf.mxu2 }
 0xcd6   : > { %2328 = vrot.lane.b32.xlu0 %v2262_v56, %s4715_s25  ;;  %v4288_v56 = vld [vmem:[#allocation5 + $0x184] sm:$0xf] }
 0xcda   : > { %v2319_v57 = vpop.f32.mrf.mxu0 }
 0xcdb   : > { %2332 = vrot.lane.b32.xlu1 %v2319_v57, %s4716_s26  ;;  %v3918_v57 = vor.u32 %v4290_v55, %v3917_v54  ;;  %v4335_v54 = vld [vmem:[#allocation7 + $0x1f8] sm:$0xff] }
 0xcdd   : > { %v2264_v58 = vpop.f32.mrf.mxu2 }
 0xcde   : > { %v3919_v58 = vld [vmem:[#allocation5 + $0x190] sm:$0xf0] }
 0xcdf   : > { %v3922_v60 = vor.u32 %v4288_v56, %v3919_v58  ;;  %v4326_v56 = vld [vmem:[#allocation7 + $0x1b0] sm:$0xff] }
 0xce1   : > { %2676 = vmatpush.bf16.msra.mxu3 %v3922_v60 }
 0xce2   : > { %v2321_v59 = vpop.f32.mrf.mxu0 }
 0xce3   : > { %v3925_v59 = vld [vmem:[#allocation5 + $0x188] sm:$0xf] }
 0xce4   : > { %v3926_v61 = vor.u32 %v4291_v53, %v3925_v59 }
 0xce6   : > { %2689 = vmatpush.bf16.msra.mxu0 %v3926_v61 }
 0xd3c   : > { %v2325_v0 = vpop.permute.xlu1 %2324 }
 0xd3d   : > { %v2335_v2 = vsel %vm888_vm4, %v2145_v44, %v2325_v0  ;;  %v3934_v44 = vor.u32 %v4294_v43, %v3933_v21  ;;  %v3930_v0 = vor.u32 %v4289_v62, %v3927_v63  ;;  %v4272_v21 = vld [vmem:[#allocation5 + $0x104] sm:$0xf]  ;;  %v3855_v43 = vld [vmem:[#allocation5 + $0x110] sm:$0xf0] }
 0xd3f   : > { %2662 = vmatpush.bf16.msrb.mxu2 %v3934_v44  ;;  %2702 = vmatpush.bf16.msrb.mxu1 %v3930_v0  ;;  %v3858_v44 = vor.u32 %v4272_v21, %v3855_v43  ;;  %v4443_v0 = vld [vmem:[%s5206_s8 + $0x1] ss:$0 sm:$0xff] }
 0xd43   : > { %2663 = vmatpush.bf16.msrb.mxu2 %v3918_v57  ;;  %v4334_v57 = vld [vmem:[#allocation7 + $0x1f0] sm:$0xff] }
 0xd48   : > { %v2329_v1 = vpop.permute.xlu0 %2328 }
 0xd49   : > { %v2336_v3 = vsel %vm1130_vm7, %v2335_v2, %v2329_v1  ;;  %v3901_v1 = vld [vmem:[#allocation5 + $0x160] sm:$0xf]  ;;  %v4286_v2 = vld [vmem:[#allocation5 + $0x16c] sm:$0xf0] }
 0xd4d   : > { %v2333_v4 = vpop.permute.xlu1 %2332 }
 0xd4e   : > { %v2337_v5 = vsel %vm1132_vm8, %v2336_v3, %v2333_v4  ;;  %v4284_v3 = vld [vmem:[#allocation5 + $0x164] sm:$0xf]  ;;  %v3902_v4 = vor.u32 %v4286_v2, %v3901_v1 }
 0xd4f   : > { %v2338_v22 = vpack.c.bf16 %v2337_v5, %v2337_v5  ;;  %v3903_v5 = vld [vmem:[#allocation5 + $0x170] sm:$0xf0] }
 0xd50   : > { %2664 = vmatpush.bf16.msrb.mxu2 %v3902_v4 }
 0xd51   : > { %2417 = vmatmul.bf16.vlgmr.msra.gmra.mxu1 %v2338_v22  ;;  %v3909_v22 = vld [vmem:[#allocation5 + $0x168] sm:$0xf] }
 0xd54   : > { %2665 = vmatpush.bf16.msrb.mxu2 %v3886_v17  ;;  %v4323_v17 = vld [vmem:[#allocation7 + $0x198] sm:$0xff] }
 0xdce   : > { %v2418_v8 = vpop.f32.mrf.mxu1 }
 0xdcf   : > { %v2419_v9 = vadd.f32 %v4442_v7, %v2418_v8  ;;  %v4287_v7 = vld [vmem:[#allocation5 + $0x174] sm:$0xf0]  ;;  %v3906_v8 = vor.u32 %v4284_v3, %v3903_v5  ;;  %v4444_v3 = vld [vmem:[%s5207_s9 + $0x1] ss:$0 sm:$0xff] }
 0xdd1   : > { %v2422_v10 = vadd.f32 %v2419_v9, %v5051_v26  ;;  %v3910_v9 = vor.u32 %v4287_v7, %v3909_v22  ;;  %2677 = vmatpush.bf16.msra.mxu3 %v3906_v8  ;;  %v4311_v7 = vld [vmem:[#allocation7 + $0x138] sm:$0xff] }
 0xdd2   : > { %v4319_v8 = vld [vmem:[#allocation7 + $0x178] sm:$0xff] }
 0xdd3   : > { %2427 = vadd.xlane.f32.xlu2 %v2422_v10  ;;  %2690 = vmatpush.bf16.msra.mxu0 %v3910_v9  ;;  %v4325_v9 = vld [vmem:[#allocation7 + $0x1a8] sm:$0xff] }
 0xdd5   : > { %2678 = vmatpush.bf16.msra.mxu3 %v3890_v24  ;;  %v4322_v24 = vld [vmem:[#allocation7 + $0x190] sm:$0xff] }
 0xdd6   : > { %v2420_v11 = vpop.f32.mrf.mxu1 }
 0xdd7   : > { %v3911_v11 = vld [vmem:[#allocation5 + $0x178] sm:$0xf0]  ;;  %2691 = vmatpush.bf16.msra.mxu0 %v3894_v25  ;;  %v4330_v25 = vld [vmem:[#allocation7 + $0x1d0] sm:$0xff] }
 0xdd9   : > { %2679 = vmatpush.bf16.msra.mxu3 %v3874_v35  ;;  %v3850_v35 = vld [vmem:[%s5209_s11 + $0x4] sm:$0xf] }
 0xdda   : > { %v2494_v39 = vperm.slane %v3850_v35, 2  ;;  %v2495_v40 = vperm.slane %v3850_v35, 3 }
 0xddb   : > { %2692 = vmatpush.bf16.msra.mxu0 %v3878_v36  ;;  %v4304_v36 = vld [vmem:[#allocation7 + $0x100] sm:$0xff] }
 0xddd   : > { %2680 = vmatpush.bf16.msra.mxu3 %v3858_v44  ;;  %v2493_v44 = vperm.slane %v3850_v35, 1 }
 0xddf   : > { %2693 = vmatpush.bf16.msra.mxu0 %v3862_v48 }
 0xde1   : > { %3027 = vmatpush.bf16.msrb.mxu3 %v4319_v8 }
 0xde3   : > { %3040 = vmatpush.bf16.msrb.mxu0 %v4327_v52 }
 0xde7   : > { %3041 = vmatpush.bf16.msrb.mxu0 %v4326_v56 }
 0xdeb   : > { %3042 = vmatpush.bf16.msrb.mxu0 %v4325_v9 }
 0xe46   : > { %v2428_v28 = vpop.xlane.xlu2 %2427 }
 0xe47   : > { %v2429_v26 = vmul.f32 %v2428_v28, %v4916_v18  ;;  %v3898_v28 = vor.u32 %v4281_v42, %v3895_v27  ;;  %v4307_v42 = vld [vmem:[#allocation7 + $0x118] sm:$0xff] }
 0xe48   : > { %v4315_v27 = vld [vmem:[#allocation7 + $0x158] sm:$0xff] }
 0xe49   : > { %v5132_v15 = vsub.f32 %v2422_v10, %v2429_v26  ;;  %v4285_v10 = vld [vmem:[#allocation5 + $0x16c] sm:$0xf]  ;;  %v3869_v26 = vld [vmem:[#allocation5 + $0x120] sm:$0xf] }
 0xe4a   : > { %v3914_v12 = vor.u32 %v4285_v10, %v3911_v11  ;;  %v4310_v10 = vld [vmem:[#allocation7 + $0x130] sm:$0xff] }
 0xe4b   : > { %v2431_v6 = vmul.f32 %v5132_v15, %v5132_v15  ;;  %v4318_v11 = vld [vmem:[#allocation7 + $0x170] sm:$0xff] }
 0xe4c   : > { %2703 = vmatpush.bf16.msrb.mxu1 %v3914_v12  ;;  %3028 = vmatpush.bf16.msrb.mxu3 %v4318_v11  ;;  %v4324_v12 = vld [vmem:[#allocation7 + $0x1a0] sm:$0xff] }
 0xe4d   : > { %2432 = vadd.xlane.f32.xlu0 %v2431_v6  ;;  %v4278_v6 = vld [vmem:[#allocation5 + $0x12c] sm:$0xf0]  ;;  %3043 = vmatpush.bf16.msrb.mxu0 %v4324_v12 }
 0xe4e   : > { %v3870_v30 = vor.u32 %v4278_v6, %v3869_v26  ;;  %v4329_v26 = vld [vmem:[#allocation7 + $0x1c8] sm:$0xff]  ;;  %v4306_v6 = vld [vmem:[#allocation7 + $0x110] sm:$0xff] }
 0xe50   : > { %2704 = vmatpush.bf16.msrb.mxu1 %v3898_v28  ;;  %2666 = vmatpush.bf16.msrb.mxu2 %v3870_v30  ;;  %v4321_v28 = vld [vmem:[#allocation7 + $0x188] sm:$0xff]  ;;  %v4320_v30 = vld [vmem:[#allocation7 + $0x180] sm:$0xff] }
 0xe51   : > { %3029 = vmatpush.bf16.msrb.mxu3 %v4317_v16  ;;  %3044 = vmatpush.bf16.msrb.mxu0 %v4323_v17 }
 0xe54   : > { %2705 = vmatpush.bf16.msrb.mxu1 %v3882_v41  ;;  %2667 = vmatpush.bf16.msrb.mxu2 %v3854_v31  ;;  %v2492_v31 = vperm.slane %v3850_v35, 0  ;;  %v4445_v35 = vld [vmem:[%s5211_s13 + $0x1] ss:$0 sm:$0xff] }
 0xe55   : > { %3030 = vmatpush.bf16.msrb.mxu3 %v4316_v23  ;;  %3045 = vmatpush.bf16.msrb.mxu0 %v4322_v24 }
 0xe58   : > { %2706 = vmatpush.bf16.msrb.mxu1 %v3866_v50  ;;  %3014 = vmatpush.bf16.msra.mxu2 %v4311_v7 }
 0xe59   : > { %3031 = vmatpush.bf16.msrb.mxu3 %v4315_v27  ;;  %3046 = vmatpush.bf16.msrb.mxu0 %v4321_v28 }
 0xe5c   : > { %3053 = vmatpush.bf16.msra.mxu1 %v4335_v54  ;;  %3015 = vmatpush.bf16.msra.mxu2 %v4310_v10 }
 0xe5d   : > { %3032 = vmatpush.bf16.msrb.mxu3 %v4314_v29  ;;  %3047 = vmatpush.bf16.msrb.mxu0 %v4320_v30 }
 0xe60   : > { %3054 = vmatpush.bf16.msra.mxu1 %v4334_v57  ;;  %3016 = vmatpush.bf16.msra.mxu2 %v4309_v14 }
 0xe61   : > { %3033 = vmatpush.bf16.msrb.mxu3 %v4313_v34 }
 0xe64   : > { %3017 = vmatpush.bf16.msra.mxu2 %v4308_v20 }
 0xe65   : > { %3034 = vmatpush.bf16.msrb.mxu3 %v4312_v37 }
 0xe68   : > { %3018 = vmatpush.bf16.msra.mxu2 %v4307_v42 }
 0xe6c   : > { %3019 = vmatpush.bf16.msra.mxu2 %v4306_v6 }
 0xe70   : > { %3020 = vmatpush.bf16.msra.mxu2 %v4305_v33 }
 0xe74   : > { %3021 = vmatpush.bf16.msra.mxu2 %v4304_v36 }
 0xec0   : > { %v2433_v51 = vpop.xlane.xlu0 %2432 }
 0xec1   : > { %v2434_v55 = vmul.f32 %v2433_v51, %v4916_v18 }
 0xec3   : > { %v2435_v58 = vadd.f32 1e-12, %v2434_v55 }
 0xec5   : > { %4496 = vrsqrt.f32 %v2435_v58  ;;  %vm2442_vm0 = vweird.f32 %v2435_v58 }
 0xecb   : > { %v4497_v59 = vpop.eup %4496 }
 0xecc   : > { %v2437_v53 = vmul.f32 %v4497_v59, %v2435_v58  ;;  %vm2443_vm15 = vweird.f32 %v4497_v59 }
 0xecd   : > { %vm2444_vm1 = vmor %vm2442_vm0, %vm2443_vm15 }
 0xece   : > { %v2438_v60 = vmul.f32 %v4497_v59, %v2437_v53 }
 0xed0   : > { %v2439_v61 = vmul.f32 0.5, %v2438_v60 }
 0xed2   : > { %v2440_v62 = vsub.f32 1.5, %v2439_v61 }
 0xed4   : > { %v2441_v63 = vmul.f32 %v4497_v59, %v2440_v62 }
 0xed6   : > { %v2445_v1 = vsel %vm2444_vm1, %v4497_v59, %v2441_v63 }
 0xed7   : > { %v2446_v2 = vmul.f32 %v2445_v1, %v5132_v15  ;;  %v4333_v15 = vld [vmem:[#allocation7 + $0x1e8] sm:$0xff] }
 0xed8   : > { %3055 = vmatpush.bf16.msra.mxu1 %v4333_v15 }
 0xed9   : > { %v2450_v4 = vmul.f32 %v4443_v0, %v2446_v2 }
 0xedb   : > { %v5144_v5 = vadd.f32 %v4444_v3, %v2450_v4 }
 0xedc   : > { %3056 = vmatpush.bf16.msra.mxu1 %v4332_v13 }
 0xedd   : > { %v2455_v22 = vpack.c.bf16 %v5144_v5, %v5144_v5 }
 0xedf   : > { %2668 = vmatmul.bf16.vlgmr.msrb.gmra.mxu2 %v2455_v22  ;;  %2681 = vmatmul.bf16.vlgmr.msra.gmra.mxu3 %v2455_v22 }
 0xee0   : > { %2694 = vmatmul.bf16.vlgmr.msra.gmra.mxu0 %v2455_v22  ;;  %2707 = vmatmul.bf16.vlgmr.msrb.gmra.mxu1 %v2455_v22 }
 0xee1   : > { %3057 = vmatpush.bf16.msra.mxu1 %v4331_v19 }
 0xee5   : > { %3058 = vmatpush.bf16.msra.mxu1 %v4330_v25 }
 0xee9   : > { %3059 = vmatpush.bf16.msra.mxu1 %v4329_v26 }
 0xeed   : > { %3060 = vmatpush.bf16.msra.mxu1 %v4328_v32 }
 0xf5d   : > { %v2695_v41 = vpop.f32.mrf.mxu0  ;;  %v2708_v38 = vpop.f32.mrf.mxu1 }
 0xf5e   : > { %v2696_v21 = vadd.f32 %v2695_v41, %v2494_v39  ;;  %v2709_v43 = vadd.f32 %v2708_v38, %v2495_v40 }
 0xf60   : > { %v2718_v45 = vmul.f32 0.044715, %v2696_v21  ;;  %v2719_v46 = vmul.f32 0.044715, %v2709_v43  ;;  %v2714_v11 = vmul.f32 0.5, %v2696_v21  ;;  %v2715_v13 = vmul.f32 0.5, %v2709_v43 }
 0xf62   : > { %v2722_v47 = vmul.f32 %v2718_v45, %v2696_v21  ;;  %v2723_v48 = vmul.f32 %v2719_v46, %v2709_v43  ;;  %v2669_v49 = vpop.f32.mrf.mxu2  ;;  %v2682_v50 = vpop.f32.mrf.mxu3  ;;  %v4343_v45 = vld [vmem:[#allocation8 + $0x38] sm:$0xff] }
 0xf63   : > { %v2670_v51 = vadd.f32 %v2669_v49, %v2492_v31  ;;  %v2683_v52 = vadd.f32 %v2682_v50, %v2493_v44  ;;  %3165 = vmatpush.bf16.msrb.mxu2 %v4343_v45  ;;  %v4342_v50 = vld [vmem:[#allocation8 + $0x30] sm:$0xff] }
 0xf64   : > { %v2726_v54 = vmul.f32 %v2722_v47, %v2696_v21  ;;  %v2727_v55 = vmul.f32 %v2723_v48, %v2709_v43 }
 0xf65   : > { %v2716_v56 = vmul.f32 0.044715, %v2670_v51  ;;  %v2717_v57 = vmul.f32 0.044715, %v2683_v52  ;;  %v2697_v58 = vpop.f32.mrf.mxu0  ;;  %v2710_v59 = vpop.f32.mrf.mxu1  ;;  %v2712_v25 = vmul.f32 0.5, %v2670_v51  ;;  %v2713_v27 = vmul.f32 0.5, %v2683_v52 }
 0xf66   : > { %v2730_v53 = vadd.f32 %v2726_v54, %v2696_v21  ;;  %v2731_v60 = vadd.f32 %v2727_v55, %v2709_v43  ;;  %v4339_v54 = vld [vmem:[#allocation8 + $0x18] sm:$0xff]  ;;  %v4338_v55 = vld [vmem:[#allocation8 + $0x10] sm:$0xff] }
 0xf67   : > { %v2720_v61 = vmul.f32 %v2716_v56, %v2670_v51  ;;  %v2721_v62 = vmul.f32 %v2717_v57, %v2683_v52  ;;  %3166 = vmatpush.bf16.msrb.mxu2 %v4342_v50  ;;  %v4336_v56 = vld [vmem:[#allocation8] sm:$0xff] }
 0xf68   : > { %v2734_v63 = vmul.f32 0.7978846, %v2730_v53  ;;  %v2735_v0 = vmul.f32 0.7978846, %v2731_v60 }
 0xf69   : > { %v2724_v1 = vmul.f32 %v2720_v61, %v2670_v51  ;;  %v2725_v2 = vmul.f32 %v2721_v62, %v2683_v52 }
 0xf6a   : > { %v2671_v3 = vpop.f32.mrf.mxu2  ;;  %v2684_v4 = vpop.f32.mrf.mxu3  ;;  %4498 = vtanh.f32 %v2734_v63 }
 0xf6b   : > { %4500 = vtanh.f32 %v2735_v0  ;;  %v2728_v22 = vadd.f32 %v2724_v1, %v2670_v51  ;;  %v2729_v7 = vadd.f32 %v2725_v2, %v2683_v52  ;;  %v4341_v51 = vld [vmem:[#allocation8 + $0x28] sm:$0xff]  ;;  %v4340_v52 = vld [vmem:[#allocation8 + $0x20] sm:$0xff] }
 0xf6c   : > { %3167 = vmatpush.bf16.msrb.mxu2 %v4341_v51  ;;  %v4446_v1 = vld [vmem:[%s5212_s14 + $0x1] ss:$0 sm:$0xff] }
 0xf6d   : > { %v2732_v8 = vmul.f32 0.7978846, %v2728_v22  ;;  %v2733_v9 = vmul.f32 0.7978846, %v2729_v7 }
 0xf6f   : > { %4502 = vtanh.f32 %v2732_v8  ;;  %v3116_v8 = vld [vmem:[%s5253_s30] sm:$0x1] }
 0xf70   : > { %v4499_v15 = vpop.eup %4498  ;;  %4504 = vtanh.f32 %v2733_v9  ;;  %3168 = vmatpush.bf16.msrb.mxu2 %v4340_v52 }
 0xf71   : > { %v4501_v10 = vpop.eup %4500  ;;  %v2742_v12 = vadd.f32 1.0, %v4499_v15 }
 0xf72   : > { %v2743_v14 = vadd.f32 1.0, %v4501_v10 }
 0xf73   : > { %v2746_v16 = vmul.f32 %v2742_v12, %v2714_v11 }
 0xf74   : > { %v2747_v17 = vmul.f32 %v2743_v14, %v2715_v13  ;;  %3169 = vmatpush.bf16.msrb.mxu2 %v4339_v54 }
 0xf75   : > { %v4503_v19 = vpop.eup %4502  ;;  %v2750_v20 = vpack.c.bf16 %v2746_v16, %v2746_v16 }
 0xf76   : > { %v4505_v23 = vpop.eup %4504  ;;  %v2751_v24 = vpack.c.bf16 %v2747_v17, %v2747_v17  ;;  %v2740_v42 = vadd.f32 1.0, %v4503_v19 }
 0xf77   : > { %3048 = vmatmul.bf16.vlgmr.msrb.gmra.mxu0 %v2750_v20  ;;  %v2741_v28 = vadd.f32 1.0, %v4505_v23 }
 0xf78   : > { %3061 = vmatmul.bf16.vlgmr.msra.gmra.mxu1 %v2751_v24  ;;  %v2744_v26 = vmul.f32 %v2740_v42, %v2712_v25  ;;  %3170 = vmatpush.bf16.msrb.mxu2 %v4338_v55 }
 0xf79   : > { %v2745_v6 = vmul.f32 %v2741_v28, %v2713_v27 }
 0xf7a   : > { %v2748_v29 = vpack.c.bf16 %v2744_v26, %v2744_v26 }
 0xf7b   : > { %v2749_v30 = vpack.c.bf16 %v2745_v6, %v2745_v6 }
 0xf7c   : > { %3022 = vmatmul.bf16.vlgmr.msra.gmra.mxu2 %v2748_v29 }
 0xf7d   : > { %3035 = vmatmul.bf16.vlgmr.msrb.gmra.mxu3 %v2749_v30 }
 0xff4   : > { %v3049_v32 = vpop.f32.mrf.mxu0 }
 0xff5   : > { %v3062_v33 = vpop.f32.mrf.mxu1 }
 0xffc   : > { %v3051_v34 = vpop.f32.mrf.mxu0 }
 0xffd   : > { %v3064_v36 = vpop.f32.mrf.mxu1 }
 0xfff   : > { %v3023_v37 = vpop.f32.mrf.mxu2 }
0x1000   : > { %v3024_v39 = vadd.f32 %v4445_v35, %v3023_v37  ;;  %v3036_v40 = vpop.f32.mrf.mxu3 }
0x1002   : > { %v3037_v41 = vadd.f32 %v3036_v40, %v3024_v39 }
0x1004   : > { %v3050_v38 = vadd.f32 %v3049_v32, %v3037_v41 }
0x1006   : > { %v3063_v21 = vadd.f32 %v3062_v33, %v3050_v38 }
0x1007   : > { %v3025_v43 = vpop.f32.mrf.mxu2 }
0x1008   : > { %v3038_v31 = vpop.f32.mrf.mxu3  ;;  %v3066_v44 = vadd.f32 %v3063_v21, %v5144_v5  ;;  %v4337_v5 = vld [vmem:[#allocation8 + $0x8] sm:$0xff] }
0x1009   : > { %3171 = vmatpush.bf16.msrb.mxu2 %v4337_v5 }
0x100a   : > { %3071 = vadd.xlane.f32.xlu1 %v3066_v44 }
0x100d   : > { %3172 = vmatpush.bf16.msrb.mxu2 %v4336_v56 }
0x107d   : > { %v3072_v46 = vpop.xlane.xlu1 %3071 }
0x107e   : > { %v3073_v47 = vmul.f32 %v3072_v46, %v4916_v18 }
0x1080   : > { %v3074_v48 = vsub.f32 %v3066_v44, %v3073_v47 }
0x1082   : > { %v3075_v49 = vmul.f32 %v3074_v48, %v3074_v48 }
0x1084   : > { %3076 = vadd.xlane.f32.xlu2 %v3075_v49 }
0x10f7   : > { %v3077_v57 = vpop.xlane.xlu2 %3076 }
0x10f8   : > { %v3078_v58 = vmul.f32 %v3077_v57, %v4916_v18  ;;  %v4447_v18 = vld [vmem:[%s5213_s15 + $0x1] ss:$0 sm:$0xff] }
0x10fa   : > { %v3079_v59 = vadd.f32 1e-12, %v3078_v58 }
0x10fc   : > { %4506 = vrsqrt.f32 %v3079_v59  ;;  %vm3086_vm3 = vweird.f32 %v3079_v59 }
0x1102   : > { %v4507_v53 = vpop.eup %4506 }
0x1103   : > { %v3081_v60 = vmul.f32 %v4507_v53, %v3079_v59  ;;  %vm3087_vm2 = vweird.f32 %v4507_v53 }
0x1104   : > { %vm3088_vm4 = vmor %vm3086_vm3, %vm3087_vm2 }
0x1105   : > { %v3082_v61 = vmul.f32 %v4507_v53, %v3081_v60 }
0x1107   : > { %v3083_v62 = vmul.f32 0.5, %v3082_v61 }
0x1109   : > { %v3084_v63 = vsub.f32 1.5, %v3083_v62 }
0x110b   : > { %v3085_v0 = vmul.f32 %v4507_v53, %v3084_v63 }
0x110d   : > { %v3089_v2 = vsel %vm3088_vm4, %v4507_v53, %v3085_v0 }
0x110e   : > { %v3090_v3 = vmul.f32 %v3089_v2, %v3074_v48 }
0x1110   : > { %v3094_v4 = vmul.f32 %v4446_v1, %v3090_v3 }
0x1112   : > { %v3098_v22 = vadd.f32 %v4447_v18, %v3094_v4 }
0x1114   : > { %v3099_v7 = vpack.c.bf16 %v3098_v22, %v3098_v22 }
0x1116   : > { %3173 = vmatmul.bf16.vlgmr.msrb.gmra.mxu2 %v3099_v7 }
0x1199   : > { %v3174_v9 = vpop.f32.mrf.mxu2 }
0x119a   : > { %v3175_v15 = vadd.f32 %v3174_v9, %v3116_v8 }
0x119c   : > { %v3178_v10 = vmax.f32 %v3175_v15, 0.0 }
0x119e   : > { %3179 = vst [vmem:[%s632_s2] sm:$0x1] %v3178_v10 }
0x119f   : > { %4655 = shalt.err (!%p4652_p8)
}
0x11a0   : > { %4360 = dma.vmem_to_hbm [thread:$0]  (%p4851_p5), %s3192_s23, 16, %s3194_s24, %s3181_s20  }
0x11a1   : > { %v3176_v11 = vpop.f32.mrf.mxu2 }
0x11a2 PF: > { %s5255_s21 = sld [smem:[#allocation18_spill]] }
0x11a3   : > { %s5256_s10 = sld [smem:[#allocation15_spill]] }
0x11a8   : > { %p4387_p9 = scmp.ge.s32.totalorder %s5255_s21, 2 }
0x11a9   : > { %s3205_s27 = sand.u32 1, %s5256_s10  }
0x11aa   : > { %p4376_p10 = pnand %p4387_p9, %p4855_p6  ;;  %s3206_s28 = scalar_lea.sflag [#allocation4], %s3205_s27 }
0x11ac   : > { %p4377_p11 = pneg %p4376_p10 }
0x11ae   : > { %4685 = dma.done.wait (%p4377_p11), %s3206_s28, 16  }
0x11af   : > { %4687 = vsyncadd (%p4377_p11), %s3206_s28, 4294967280  ;;  %s5258_s30 = sld [smem:[#allocation19_spill]] }
0x11b0   : > { %s5259_s27 = sld [smem:[#allocation16_spill]] }
0x11b1   : > { %s5260_s28 = sld [smem:[#allocation17_spill]] }
0x11b2   : > { %s5261_s29 = sld [smem:[#allocation20_spill]] }
0x11b5   : > { %p31_p12 = scmp.ge.s32.totalorder %s5258_s30, 4  }
0x11b7   :  { %33 = sbr.rel (!%p31_p12) target bundleno = 14 (0xe), region = 156 }
0x11bc   :  { %3211 = vsyncpa [#allocation3], 1 }
0x11bd   :  { %3213 = vsyncpa [#allocation3 + $0x1], 1 }
0x11be   :  { %3214 = vsyncpa [#allocation6], 1 }
0x11bf   :  { %3215 = vsyncpa [#allocation9], 1 }
0x11c0   :  { %3216 = vsyncpa [#allocation4], 1 }
0x11c1   :  { %3218 = vsyncpa [#allocation4 + $0x1], 1 }

</bundles_post_ra>
